<compile_context>
chip_gen: v5e
topology: v5e:2x2
jax: 0.10.0
libtpu: 0.0.40
codegen_flags: <defaults>
</compile_context>

<pallas_src>
import functools

import jax
import jax.numpy as jnp
from jax import lax
from jax.experimental import pallas as pl
from jax.experimental.pallas import tpu as pltpu

BN_EPS = 1e-5
LANE = 128


def _detect_vmem_bytes():
    try:
        return int(pltpu.get_tpu_info().vmem_capacity_bytes)
    except Exception:
        return 0


_PHYS_VMEM = _detect_vmem_bytes()
if _PHYS_VMEM >= 100 * 2**20:        # v5e / v6e: 128 MiB physical VMEM
    VMEM_LIMIT = 96 * 2**20
    TARGET_ROWS = 1024
elif _PHYS_VMEM > 0:                 # v7x: 64 MiB physical VMEM
    VMEM_LIMIT = 48 * 2**20
    TARGET_ROWS = 512
else:                                # unknown -> conservative defaults
    VMEM_LIMIT = 32 * 2**20
    TARGET_ROWS = 512


# ------------------------------ small helpers ------------------------------- #

def _round_up(x, m):
    return (x + m - 1) // m * m


def _pick_tile_h(H, W, per_out_row_bytes, target_rows=TARGET_ROWS):
    """Largest divisor of H whose tile fits the row target and the VMEM budget.

    TODO(synk): a prime H degrades to TH=1 (tiny tiles); a cdiv grid with masked
    stats for the partial last tile would be fully shape-robust, but UNet spatial
    sizes are powers of two so the divisor constraint is kept for simplicity.
    """
    budget_th = max(1, (VMEM_LIMIT // 3) // max(per_out_row_bytes, 1))
    cap = max(1, min(target_rows // max(W, 1), budget_th))
    if H > 1:
        cap = min(cap, max(1, H // 2))       # >=2 row tiles so the prefetch overlaps
    best = 1
    for d in range(1, H + 1):
        if H % d == 0 and d <= cap:
            best = d
    return best


# ------------------------------ Pallas kernels ------------------------------ #

def _matmul_conv_kernel(x_ref, w_ref, y_ref, stats_ref, *, TH, W):
    """Conv1 when all 9 taps fold into the contraction dim (9*Cin <= 128).

    x_ref:     (1, TH, W, K)  im2col'd + channel-padded tile (auto pipelined).
    w_ref:     (K, Cpout)     folded weight, resident (constant index map).
    y_ref:     (1, TH, W, Cpout) conv output tile (pre-BN), stored in y dtype.
    stats_ref: (1, 2, Cpout)  per-tile partial [sum; sum-of-squares] (f32).
    """
    K = x_ref.shape[-1]
    Cpout = w_ref.shape[-1]
    x = x_ref[...].reshape(TH * W, K)
    acc = jnp.dot(x, w_ref[...], preferred_element_type=jnp.float32)
    y_ref[...] = acc.reshape(1, TH, W, Cpout).astype(y_ref.dtype)
    s = jnp.sum(acc, axis=0, keepdims=True)
    sq = jnp.sum(acc * acc, axis=0, keepdims=True)
    stats_ref[...] = jnp.concatenate([s, sq], axis=0).reshape(1, 2, Cpout)


def _halo_conv_kernel(src_hbm, w_ref, scale_ref, shift_ref, y_ref, stats_ref,
                      xbuf, sem, acc_ref, *,
                      TH, H, W, R, prologue, compute_dtype):
    """3x3 'same' conv over a (TH+2)-row halo tile, manual double-buffered DMA.

    prologue=False: src is the spatially pre-padded input (N,H+2,W+2,Cs); one
                    uniform halo copy per tile, no activation prologue.
    prologue=True : src is the *unpadded* intermediate (N,H,W,Cs); body rows plus
                    conditional 1-row top/bottom halo copies; fused BN+ReLU of the
                    previous layer with the 'same' border rebuilt as exact zeros.
    kx taps are folded into the contraction dim (3 matmuls with K = 3*Cs).
    """
    n = pl.program_id(0)
    r = pl.program_id(1)
    Cs = xbuf.shape[-1]
    Cpout = w_ref.shape[-1]

    def start_copies(nn, rr, slot):
        if not prologue:
            pltpu.make_async_copy(
                src_hbm.at[nn, pl.ds(rr * TH, TH + 2)],
                xbuf.at[slot], sem.at[slot, 0]).start()
        else:
            pltpu.make_async_copy(
                src_hbm.at[nn, pl.ds(rr * TH, TH)],
                xbuf.at[slot, pl.ds(1, TH)], sem.at[slot, 0]).start()

            @pl.when(rr > 0)
            def _():
                pltpu.make_async_copy(
                    src_hbm.at[nn, pl.ds(rr * TH - 1, 1)],
                    xbuf.at[slot, pl.ds(0, 1)], sem.at[slot, 1]).start()

            @pl.when(rr < R - 1)
            def _():
                pltpu.make_async_copy(
                    src_hbm.at[nn, pl.ds(rr * TH + TH, 1)],
                    xbuf.at[slot, pl.ds(TH + 1, 1)], sem.at[slot, 2]).start()

    def wait_copies(rr, slot):
        if not prologue:
            pltpu.make_async_copy(
                src_hbm.at[0, pl.ds(0, TH + 2)],
                xbuf.at[slot], sem.at[slot, 0]).wait()
        else:
            pltpu.make_async_copy(
                src_hbm.at[0, pl.ds(0, TH)],
                xbuf.at[slot, pl.ds(1, TH)], sem.at[slot, 0]).wait()

            @pl.when(rr > 0)
            def _():
                pltpu.make_async_copy(
                    src_hbm.at[0, pl.ds(0, 1)],
                    xbuf.at[slot, pl.ds(0, 1)], sem.at[slot, 1]).wait()

            @pl.when(rr < R - 1)
            def _():
                pltpu.make_async_copy(
                    src_hbm.at[0, pl.ds(0, 1)],
                    xbuf.at[slot, pl.ds(TH + 1, 1)], sem.at[slot, 2]).wait()

    slot = r & 1

    @pl.when(r == 0)
    def _():
        start_copies(n, r, slot)                   # first tile of this batch element

    @pl.when(r + 1 < R)
    def _():
        start_copies(n, r + 1, (r + 1) & 1)        # prefetch next row tile

    wait_copies(r, slot)

    xb = xbuf[slot]
    if prologue:
        # Fused BN+ReLU of the previous layer.  Stale top/bottom halo rows of the
        # first/last tile are zeroed via the row mask; the left/right 'same'
        # columns are appended below as exact zeros (no column mask needed).
        row = lax.broadcasted_iota(jnp.int32, (TH + 2, 1, 1), 0) + r * TH
        row_ok = (row >= 1) & (row <= H)
        act = jnp.maximum(xb.astype(jnp.float32) * scale_ref[...] + shift_ref[...],
                          0.0)
        act = jnp.where(row_ok, act, 0.0).astype(compute_dtype)
        zcol = jnp.zeros((TH + 2, 1, Cs), compute_dtype)
        xb = jnp.concatenate([zcol, act, zcol], axis=1)        # (TH+2, W+2, Cs)
    else:
        xb = xb.astype(compute_dtype)

    # 3 accumulating MXU matmuls with the kx taps folded into the contraction dim.
    acc_ref[...] = jnp.zeros_like(acc_ref)
    for ky in range(3):
        slab = xb[ky:ky + TH]                                  # (TH, W+2, Cs)
        patch = jnp.concatenate(
            [slab[:, 0:W], slab[:, 1:W + 1], slab[:, 2:W + 2]], axis=-1)
        acc_ref[...] += jnp.dot(patch.reshape(TH * W, 3 * Cs), w_ref[ky],
                                preferred_element_type=jnp.float32)

    acc = acc_ref[...]
    y_ref[...] = acc.reshape(1, TH, W, Cpout).astype(y_ref.dtype)

    # Fused BN-statistics epilogue (per-tile partial sums, reduced in JAX glue).
    s = jnp.sum(acc, axis=0, keepdims=True)
    sq = jnp.sum(acc * acc, axis=0, keepdims=True)
    stats_ref[...] = jnp.concatenate([s, sq], axis=0).reshape(1, 2, Cpout)


def _bn_relu_kernel(y_ref, scale_ref, shift_ref, o_ref):
    # o = relu(y * scale + shift), lane-dense blocks.
    o_ref[...] = jnp.maximum(
        y_ref[...].astype(jnp.float32) * scale_ref[...] + shift_ref[...], 0.0)


# -------------------------------- wrappers ---------------------------------- #

def _conv1_folded(xcol, w, *, H, W, out_dtype):
    """Conv1 when the 9 taps fold into a single matmul (9*Cin <= 128)."""
    N = xcol.shape[0]
    K1 = xcol.shape[-1]
    Cpout = w.shape[-1]
    out_item = jnp.dtype(out_dtype).itemsize
    per_row = W * (2 * K1 * xcol.dtype.itemsize + Cpout * 4 + 2 * Cpout * out_item)
    TH = _pick_tile_h(H, W, per_row)
    R = H // TH

    flops = 2 * N * H * W * K1 * Cpout
    bytes_accessed = (N * H * W * K1 * xcol.dtype.itemsize
                      + int(w.size) * w.dtype.itemsize
                      + N * H * W * Cpout * out_item
                      + 4 * N * R * 2 * Cpout)

    y, stats = pl.pallas_call(
        functools.partial(_matmul_conv_kernel, TH=TH, W=W),
        out_shape=(jax.ShapeDtypeStruct((N, H, W, Cpout), out_dtype),
                   jax.ShapeDtypeStruct((N * R, 2, Cpout), jnp.float32)),
        grid=(N, R),
        in_specs=[pl.BlockSpec((1, TH, W, K1), lambda n, r: (n, r, 0, 0)),
                  pl.BlockSpec((K1, Cpout), lambda n, r: (0, 0))],
        out_specs=(pl.BlockSpec((1, TH, W, Cpout), lambda n, r: (n, r, 0, 0)),
                   pl.BlockSpec((1, 2, Cpout), lambda n, r: (n * R + r, 0, 0))),
        compiler_params=pltpu.CompilerParams(
            dimension_semantics=("parallel", "parallel"),
            vmem_limit_bytes=VMEM_LIMIT),
        cost_estimate=pl.CostEstimate(flops=flops, transcendentals=0,
                                      bytes_accessed=bytes_accessed),
    )(xcol, w)
    return y, stats


def _conv_halo(src, w, scale, shift, *, H, W, prologue, compute_dtype, out_dtype):
    """General 3x3 conv with manual double-buffered halo DMA + fused BN stats."""
    N = src.shape[0]
    Cs = src.shape[-1]
    Cpout = w.shape[-1]
    src_item = src.dtype.itemsize
    cd_item = jnp.dtype(compute_dtype).itemsize
    out_item = jnp.dtype(out_dtype).itemsize
    wcols = W if prologue else W + 2
    per_row = (2 * wcols * Cs * src_item            # 2-slot halo buffer
               + W * 3 * Cs * cd_item               # kx-folded patch
               + W * Cpout * 4                      # f32 accumulator scratch
               + 2 * W * Cpout * out_item)          # double-buffered output blocks
    TH = _pick_tile_h(H, W, per_row)
    R = H // TH

    kernel = functools.partial(
        _halo_conv_kernel, TH=TH, H=H, W=W, R=R,
        prologue=prologue, compute_dtype=compute_dtype)

    flops = 2 * N * H * W * 9 * Cs * Cpout
    bytes_accessed = (N * (H + 2) * (W + 2) * Cs * src_item
                      + int(w.size) * w.dtype.itemsize
                      + N * H * W * Cpout * out_item
                      + 4 * N * R * 2 * Cpout)

    y, stats = pl.pallas_call(
        kernel,
        out_shape=(jax.ShapeDtypeStruct((N, H, W, Cpout), out_dtype),
                   jax.ShapeDtypeStruct((N * R, 2, Cpout), jnp.float32)),
        grid=(N, R),
        in_specs=[
            pl.BlockSpec(memory_space=pl.ANY),                       # source (HBM)
            pl.BlockSpec((3, 3 * Cs, Cpout), lambda n, r: (0, 0, 0)),  # resident weights
            pl.BlockSpec((1, Cs), lambda n, r: (0, 0)),              # prologue scale
            pl.BlockSpec((1, Cs), lambda n, r: (0, 0)),              # prologue shift
        ],
        out_specs=(pl.BlockSpec((1, TH, W, Cpout), lambda n, r: (n, r, 0, 0)),
                   pl.BlockSpec((1, 2, Cpout), lambda n, r: (n * R + r, 0, 0))),
        scratch_shapes=[
            pltpu.VMEM((2, TH + 2, wcols, Cs), src.dtype),   # 2-slot halo buffer
            pltpu.SemaphoreType.DMA((2, 3)),                 # per-slot copy sems
            pltpu.VMEM((TH * W, Cpout), jnp.float32),        # f32 accumulator
        ],
        compiler_params=pltpu.CompilerParams(
            dimension_semantics=("parallel", "arbitrary"),
            vmem_limit_bytes=VMEM_LIMIT),
        cost_estimate=pl.CostEstimate(flops=flops, transcendentals=0,
                                      bytes_accessed=bytes_accessed),
    )(src, w, scale, shift)
    return y, stats


def _bn_scale_shift(stats, count, gamma_p, beta_p):
    """Reduce per-tile partial sums -> per-channel BN affine (scale, shift), f32.

    NOTE: single-pass E[x^2]-E[x]^2 in f32; fine at these magnitudes/counts.
    """
    s = jnp.sum(stats[:, 0, :], axis=0)
    sq = jnp.sum(stats[:, 1, :], axis=0)
    mean = s / count
    var = jnp.maximum(sq / count - mean * mean, 0.0)     # biased (training-mode BN)
    inv = lax.rsqrt(var + BN_EPS)
    scale = gamma_p * inv
    shift = beta_p - mean * scale
    return scale.reshape(1, -1), shift.reshape(1, -1)


def _bn_relu_apply(y2d, scale, shift):
    """Tiled, lane-dense BN-affine + ReLU over (M, Cp); big blocks, cdiv grid."""
    M, Cp = y2d.shape
    TR = M if M <= 2048 else 2048
    steps = pl.cdiv(M, TR)
    return pl.pallas_call(
        _bn_relu_kernel,
        out_shape=jax.ShapeDtypeStruct((M, Cp), jnp.float32),
        grid=(steps,),
        in_specs=[pl.BlockSpec((TR, Cp), lambda i: (i, 0)),
                  pl.BlockSpec((1, Cp), lambda i: (0, 0)),
                  pl.BlockSpec((1, Cp), lambda i: (0, 0))],
        out_specs=pl.BlockSpec((TR, Cp), lambda i: (i, 0)),
        compiler_params=pltpu.CompilerParams(
            dimension_semantics=("parallel",),
            vmem_limit_bytes=VMEM_LIMIT),
        cost_estimate=pl.CostEstimate(
            flops=3 * M * Cp, transcendentals=0,
            bytes_accessed=M * Cp * (y2d.dtype.itemsize + 4) + 8 * Cp),
    )(y2d, scale, shift)


# --------------------------- parameter preparation -------------------------- #

def _pad_channels(v, Cp):
    return jnp.pad(v.astype(jnp.float32), (0, Cp - v.shape[0]))


def _prep_w_folded9(w_hwio, K1, Cpout, dtype):
    kh, kw, ci, co = w_hwio.shape
    w = w_hwio.astype(jnp.float32).reshape(kh * kw * ci, co)     # (ky,kx,ci) order
    w = jnp.pad(w, ((0, K1 - kh * kw * ci), (0, Cpout - co)))
    return w.astype(dtype)


def _prep_w_folded3(w_hwio, Cpin, Cpout, dtype):
    kh, kw, ci, co = w_hwio.shape
    w = jnp.pad(w_hwio.astype(jnp.float32),
                ((0, 0), (0, 0), (0, Cpin - ci), (0, Cpout - co)))
    return w.reshape(kh, kw * Cpin, Cpout).astype(dtype)         # per-ky (kx,ci) order


# ------------------------------- forward pass -------------------------------- #

def conv_block_forward(x_nchw, params,
                       compute_dtype=jnp.float32,
                       intermediate_dtype=jnp.bfloat16):
    N, Cin, H, W = x_nchw.shape
    Cout = params["w1"].shape[-1]
    Cpout = _round_up(Cout, LANE)
    count = N * H * W

    # NCHW -> NHWC once at the module boundary.
    x = jnp.transpose(x_nchw, (0, 2, 3, 1)).astype(jnp.float32)

    g1 = _pad_channels(params["g1"], Cpout)
    be1 = _pad_channels(params["beta1"], Cpout)
    g2 = _pad_channels(params["g2"], Cpout)
    be2 = _pad_channels(params["beta2"], Cpout)
    # Conv biases params["b1"]/params["b2"] are intentionally unused: a per-channel
    # constant added right before training-mode BatchNorm is cancelled exactly by
    # the batch-mean subtraction (the pure-JAX reference keeps them to prove it).

    # ---- conv1 (+ fused BN1 statistics epilogue) ----
    if 9 * Cin <= LANE:
        # Tiny Cin: fold all 9 taps into the contraction dim -> one K=128 matmul per
        # tile, no zero-FLOP waste from padding Cin to a full lane.
        K1 = LANE
        xpad = jnp.pad(x, ((0, 0), (1, 1), (1, 1), (0, 0)))
        cols = [xpad[:, ky:ky + H, kx:kx + W, :]
                for ky in range(3) for kx in range(3)]
        xcol = jnp.concatenate(cols, axis=-1)                     # (N,H,W,9*Cin)
        xcol = jnp.pad(xcol, ((0, 0), (0, 0), (0, 0), (0, K1 - 9 * Cin)))
        xcol = xcol.astype(compute_dtype)
        w1 = _prep_w_folded9(params["w1"], K1, Cpout, compute_dtype)
        y1, st1 = _conv1_folded(xcol, w1, H=H, W=W, out_dtype=intermediate_dtype)
    else:
        # General path: halo-DMA conv over a spatially + channel padded input.
        Cpin = _round_up(Cin, LANE)
        xp = jnp.pad(x, ((0, 0), (1, 1), (1, 1), (0, Cpin - Cin))).astype(compute_dtype)
        w1 = _prep_w_folded3(params["w1"], Cpin, Cpout, compute_dtype)
        dummy = jnp.zeros((1, Cpin), jnp.float32)
        y1, st1 = _conv_halo(xp, w1, dummy, dummy, H=H, W=W, prologue=False,
                             compute_dtype=compute_dtype,
                             out_dtype=intermediate_dtype)

    sc1, sh1 = _bn_scale_shift(st1, count, g1, be1)

    # ---- conv2: BN1+ReLU fused into the input prologue, reads y1 directly
    #      (no jnp.pad round trip of the intermediate) ----
    w2 = _prep_w_folded3(params["w2"], Cpout, Cpout, compute_dtype)
    y2, st2 = _conv_halo(y1, w2, sc1, sh1, H=H, W=W, prologue=True,
                         compute_dtype=compute_dtype,
                         out_dtype=intermediate_dtype)
    sc2, sh2 = _bn_scale_shift(st2, count, g2, be2)

    # ---- final BN2 + ReLU (lane-dense elementwise kernel) ----
    z = _bn_relu_apply(y2.reshape(N * H * W, Cpout), sc2, sh2)
    z = z.reshape(N, H, W, Cpout)[..., :Cout]
    return jnp.transpose(z, (0, 3, 1, 2))                        # NHWC -> NCHW


# ----------------------------- pure-JAX reference ---------------------------- #

def reference_forward(x_nchw, params):
    x = jnp.transpose(x_nchw, (0, 2, 3, 1))

    def conv(x, w, b):
        y = lax.conv_general_dilated(
            x, w, window_strides=(1, 1), padding="SAME",
            dimension_numbers=("NHWC", "HWIO", "NHWC"),
            precision=lax.Precision.HIGHEST)
        return y + b

    def bn_relu(y, g, be):
        mean = jnp.mean(y, axis=(0, 1, 2), keepdims=True)
        var = jnp.mean((y - mean) ** 2, axis=(0, 1, 2), keepdims=True)
        yh = (y - mean) * lax.rsqrt(var + BN_EPS) * g + be
        return jnp.maximum(yh, 0.0)

    y = bn_relu(conv(x, params["w1"], params["b1"]), params["g1"], params["beta1"])
    y = bn_relu(conv(y, params["w2"], params["b2"]), params["g2"], params["beta2"])
    return jnp.transpose(y, (0, 3, 1, 2))


# ---------------------------------- main ------------------------------------- #

def _make_params(key, cin, cout):
    ks = jax.random.split(key, 8)
    return {
        # conv weights stored HWIO (3, 3, Cin, Cout)
        "w1": 0.1 * jax.random.normal(ks[0], (3, 3, cin, cout), jnp.float32),
        "b1": 0.1 * jax.random.normal(ks[1], (cout,), jnp.float32),
        "g1": 1.0 + 0.1 * jax.random.normal(ks[2], (cout,), jnp.float32),
        "beta1": 0.1 * jax.random.normal(ks[3], (cout,), jnp.float32),
        "w2": 0.1 * jax.random.normal(ks[4], (3, 3, cout, cout), jnp.float32),
        "b2": 0.1 * jax.random.normal(ks[5], (cout,), jnp.float32),
        "g2": 1.0 + 0.1 * jax.random.normal(ks[6], (cout,), jnp.float32),
        "beta2": 0.1 * jax.random.normal(ks[7], (cout,), jnp.float32),
    }


if __name__ == "__main__":
    root = jax.random.PRNGKey(0)
    k_a, k_c, kx_a, kx_c = jax.random.split(root, 4)

    # --- Config A: module-spec shapes, faithful f32 end to end (folded conv1) ---
    N, Cin, Cout, H, W = 2, 4, 8, 16, 16
    params = _make_params(k_a, Cin, Cout)
    x = jax.random.normal(kx_a, (N, Cin, H, W), jnp.float32)   # NCHW input
    ref = reference_forward(x, params)

    fwd_f32 = jax.jit(functools.partial(conv_block_forward,
                                        compute_dtype=jnp.float32,
                                        intermediate_dtype=jnp.float32))
    out = jax.block_until_ready(fwd_f32(x, params))
    assert out.shape == (N, Cout, H, W)
    assert jnp.allclose(out, ref, atol=5e-3, rtol=5e-3), "f32 kernel mismatch vs reference"

    # --- Config B: bf16 MXU operands + bf16 intermediate storage (fast path);
    #     accumulation and BN statistics stay f32 ---
    fwd_bf16 = jax.jit(functools.partial(conv_block_forward,
                                         compute_dtype=jnp.bfloat16,
                                         intermediate_dtype=jnp.bfloat16))
    out_bf16 = jax.block_until_ready(fwd_bf16(x, params))
    assert jnp.allclose(out_bf16, ref, atol=2e-1, rtol=2e-1), "bf16 kernel mismatch vs reference"

    # --- Config C: larger in_channels exercises the general halo-DMA conv1 path ---
    N2, Cin2, Cout2, H2, W2 = 1, 16, 8, 8, 8
    params2 = _make_params(k_c, Cin2, Cout2)
    x2 = jax.random.normal(kx_c, (N2, Cin2, H2, W2), jnp.float32)
    ref2 = reference_forward(x2, params2)
    out2 = jax.block_until_ready(fwd_f32(x2, params2))
    assert out2.shape == (N2, Cout2, H2, W2)
    assert jnp.allclose(out2, ref2, atol=5e-3, rtol=5e-3), "general-path mismatch vs reference"

    print("KERNEL_OK")
</pallas_src>

<mosaic_0001>
module attributes {stable_mosaic.version = 11 : i64} {
  func.func @_matmul_conv_kernel(%arg0: i32, %arg1: i32, %arg2: memref<1x8x16x128xf32, #tpu.memory_space<vmem>>, %arg3: memref<128x128xf32, #tpu.memory_space<vmem>>, %arg4: memref<1x8x16x128xf32, #tpu.memory_space<vmem>>, %arg5: memref<1x2x128xf32, #tpu.memory_space<vmem>>) attributes {dimension_semantics = [#tpu.dimension_semantics<parallel>, #tpu.dimension_semantics<parallel>], iteration_bounds = array<i64: 2, 2>, scalar_prefetch = 0 : i64, scratch_operands = 0 : i64, tpu.core_type = #tpu.core_type<tc>, window_params = [{transform_indices = @transform_0, window_bounds = array<i64: 1, 8, 16, 128>}, {pipeline_mode = #tpu.pipeline_mode<synchronous>, transform_indices = @transform_1, window_bounds = array<i64: 128, 128>}, {transform_indices = @transform_2, window_bounds = array<i64: 1, 8, 16, 128>}, {transform_indices = @transform_3, window_bounds = array<i64: 1, 2, 128>}]} {
    %c0 = arith.constant 0 : index
    %c0_0 = arith.constant 0 : index
    %c0_1 = arith.constant 0 : index
    %c0_2 = arith.constant 0 : index
    %0 = vector.load %arg2[%c0, %c0_0, %c0_1, %c0_2] : memref<1x8x16x128xf32, #tpu.memory_space<vmem>>, vector<1x8x16x128xf32>
    %1 = vector.shape_cast %0 : vector<1x8x16x128xf32> to vector<128x128xf32>
    %c0_3 = arith.constant 0 : index
    %c0_4 = arith.constant 0 : index
    %2 = vector.load %arg3[%c0_3, %c0_4] : memref<128x128xf32, #tpu.memory_space<vmem>>, vector<128x128xf32>
    %cst = arith.constant dense<0.000000e+00> : vector<128x128xf32>
    %3 = tpu.matmul %1, %2, %cst {dimension_numbers = #tpu.dot_dimension_numbers<[1], [0], [0], [1], [0, 0, 1, 1], [], []>} : vector<128x128xf32>, vector<128x128xf32>, vector<128x128xf32> -> vector<128x128xf32>
    %4 = vector.shape_cast %3 : vector<128x128xf32> to vector<1x8x16x128xf32>
    %c0_5 = arith.constant 0 : index
    %c0_6 = arith.constant 0 : index
    %c0_7 = arith.constant 0 : index
    %c0_8 = arith.constant 0 : index
    %5 = vector.load %arg4[%c0_5, %c0_6, %c0_7, %c0_8] : memref<1x8x16x128xf32, #tpu.memory_space<vmem>>, vector<1x8x16x128xf32>
    tpu.vector_store %arg4[%c0_5, %c0_6, %c0_7, %c0_8], %4 {strides = array<i32>} : memref<1x8x16x128xf32, #tpu.memory_space<vmem>>, vector<1x8x16x128xf32>,
    %cst_9 = arith.constant dense<0.000000e+00> : vector<128xf32>
    %6 = vector.multi_reduction <add>, %3, %cst_9 [0] : vector<128x128xf32> to vector<128xf32>
    %7 = vector.shape_cast %6 : vector<128xf32> to vector<1x128xf32>
    %8 = arith.mulf %3, %3 : vector<128x128xf32>
    %cst_10 = arith.constant dense<0.000000e+00> : vector<128xf32>
    %9 = vector.multi_reduction <add>, %8, %cst_10 [0] : vector<128x128xf32> to vector<128xf32>
    %10 = vector.shape_cast %9 : vector<128xf32> to vector<1x128xf32>
    %11 = tpu.concatenate %7, %10 in 0 : vector<1x128xf32>, vector<1x128xf32> -> vector<2x128xf32>
    %12 = vector.shape_cast %11 : vector<2x128xf32> to vector<1x2x128xf32>
    %c0_11 = arith.constant 0 : index
    %c0_12 = arith.constant 0 : index
    %c0_13 = arith.constant 0 : index
    %13 = vector.load %arg5[%c0_11, %c0_12, %c0_13] : memref<1x2x128xf32, #tpu.memory_space<vmem>>, vector<1x2x128xf32>
    tpu.vector_store %arg5[%c0_11, %c0_12, %c0_13], %12 {strides = array<i32>} : memref<1x2x128xf32, #tpu.memory_space<vmem>>, vector<1x2x128xf32>,
    return
  }
  func.func @transform_0(%arg0: i32, %arg1: i32) -> (i32, i32, i32, i32) {
    %c0_i32 = arith.constant 0 : i32
    %c0_i32_0 = arith.constant 0 : i32
    %c0_i32_1 = arith.constant 0 : i32
    return %arg0, %arg1, %c0_i32, %c0_i32_0 : i32, i32, i32, i32
  }
  func.func @transform_1(%arg0: i32, %arg1: i32) -> (i32, i32) {
    %c0_i32 = arith.constant 0 : i32
    %c0_i32_0 = arith.constant 0 : i32
    %c0_i32_1 = arith.constant 0 : i32
    return %c0_i32, %c0_i32_0 : i32, i32
  }
  func.func @transform_2(%arg0: i32, %arg1: i32) -> (i32, i32, i32, i32) {
    %c0_i32 = arith.constant 0 : i32
    %c0_i32_0 = arith.constant 0 : i32
    %c0_i32_1 = arith.constant 0 : i32
    return %arg0, %arg1, %c0_i32, %c0_i32_0 : i32, i32, i32, i32
  }
  func.func @transform_3(%arg0: i32, %arg1: i32) -> (i32, i32, i32) {
    %c2_i32 = arith.constant 2 : i32
    %0 = arith.muli %arg0, %c2_i32 : i32
    %1 = arith.addi %0, %arg1 : i32
    %c0_i32 = arith.constant 0 : i32
    %c0_i32_0 = arith.constant 0 : i32
    %c0_i32_1 = arith.constant 0 : i32
    return %1, %c0_i32, %c0_i32_0 : i32, i32, i32
  }
}

module attributes {stable_mosaic.version = 11 : i64} {
  func.func @_halo_conv_kernel(%arg0: i32, %arg1: i32, %arg2: memref<2x16x16x128xf32, #tpu.memory_space<any>>, %arg3: memref<3x384x128xf32, #tpu.memory_space<vmem>>, %arg4: memref<1x128xf32, #tpu.memory_space<vmem>>, %arg5: memref<1x128xf32, #tpu.memory_space<vmem>>, %arg6: memref<1x8x16x128xf32, #tpu.memory_space<vmem>>, %arg7: memref<1x2x128xf32, #tpu.memory_space<vmem>>, %arg8: memref<2x10x16x128xf32, #tpu.memory_space<vmem>>, %arg9: memref<2x3x!tpu.dma_semaphore, #tpu.memory_space<semaphore_mem>>, %arg10: memref<128x128xf32, #tpu.memory_space<vmem>>) attributes {dimension_semantics = [#tpu.dimension_semantics<parallel>, #tpu.dimension_semantics<arbitrary>], iteration_bounds = array<i64: 2, 2>, scalar_prefetch = 0 : i64, scratch_operands = 3 : i64, tpu.core_type = #tpu.core_type<tc>, window_params = [{}, {pipeline_mode = #tpu.pipeline_mode<synchronous>, transform_indices = @transform_1, window_bounds = array<i64: 3, 384, 128>}, {pipeline_mode = #tpu.pipeline_mode<synchronous>, transform_indices = @transform_2, window_bounds = array<i64: 1, 128>}, {pipeline_mode = #tpu.pipeline_mode<synchronous>, transform_indices = @transform_3, window_bounds = array<i64: 1, 128>}, {transform_indices = @transform_4, window_bounds = array<i64: 1, 8, 16, 128>}, {transform_indices = @transform_5, window_bounds = array<i64: 1, 2, 128>}]} {
    %c1_i32 = arith.constant 1 : i32
    %0 = arith.andi %arg1, %c1_i32 : i32
    %c0_i32 = arith.constant 0 : i32
    %1 = arith.cmpi eq, %arg1, %c0_i32 : i32
    %2 = arith.extui %1 : i1 to i32
    %c0_i32_0 = arith.constant 0 : i32
    %3 = arith.cmpi ne, %2, %c0_i32_0 : i32
    scf.if %3 {
      %c8_i32_60 = arith.constant 8 : i32
      %97 = arith.muli %arg1, %c8_i32_60 : i32
      %c0_i32_61 = arith.constant 0 : i32
      %c0_i32_62 = arith.constant 0 : i32
      %c0_i32_63 = arith.constant 0 : i32
      %98 = tpu.memref_slice %arg2[%arg0, %97, %c0_i32_62, %c0_i32_63] : memref<2x16x16x128xf32, #tpu.memory_space<any>> -> memref<1x8x16x128xf32, #tpu.memory_space<any>>
      %99 = tpu.memref_squeeze %98 : memref<1x8x16x128xf32, #tpu.memory_space<any>> -> memref<8x16x128xf32, #tpu.memory_space<any>>
      %c1_i32_64 = arith.constant 1 : i32
      %c0_i32_65 = arith.constant 0 : i32
      %c0_i32_66 = arith.constant 0 : i32
      %100 = tpu.memref_slice %arg8[%0, %c1_i32_64, %c0_i32_65, %c0_i32_66] : memref<2x10x16x128xf32, #tpu.memory_space<vmem>> -> memref<1x8x16x128xf32, #tpu.memory_space<vmem>>
      %101 = tpu.memref_squeeze %100 : memref<1x8x16x128xf32, #tpu.memory_space<vmem>> -> memref<8x16x128xf32, #tpu.memory_space<vmem>>
      %102 = tpu.memref_slice %arg9[%0, %c0_i32_61] : memref<2x3x!tpu.dma_semaphore, #tpu.memory_space<semaphore_mem>> -> memref<1x1x!tpu.dma_semaphore, #tpu.memory_space<semaphore_mem>>
      %103 = tpu.memref_squeeze %102 : memref<1x1x!tpu.dma_semaphore, #tpu.memory_space<semaphore_mem>> -> memref<!tpu.dma_semaphore, #tpu.memory_space<semaphore_mem>>
      tpu.enqueue_dma source(%99 : memref<8x16x128xf32, #tpu.memory_space<any>>) target(%101 : memref<8x16x128xf32, #tpu.memory_space<vmem>>) target_semaphore(%103 : memref<!tpu.dma_semaphore, #tpu.memory_space<semaphore_mem>>)
      %c0_i32_67 = arith.constant 0 : i32
      %104 = arith.cmpi sgt, %arg1, %c0_i32_67 : i32
      %105 = arith.extui %104 : i1 to i32
      %c0_i32_68 = arith.constant 0 : i32
      %106 = arith.cmpi ne, %105, %c0_i32_68 : i32
      scf.if %106 {
        %c8_i32_71 = arith.constant 8 : i32
        %110 = arith.muli %arg1, %c8_i32_71 : i32
        %c1_i32_72 = arith.constant 1 : i32
        %111 = arith.subi %110, %c1_i32_72 : i32
        %c1_i32_73 = arith.constant 1 : i32
        %c0_i32_74 = arith.constant 0 : i32
        %c0_i32_75 = arith.constant 0 : i32
        %112 = tpu.memref_slice %arg2[%arg0, %111, %c0_i32_74, %c0_i32_75] : memref<2x16x16x128xf32, #tpu.memory_space<any>> -> memref<1x1x16x128xf32, #tpu.memory_space<any>>
        %113 = tpu.memref_squeeze %112 : memref<1x1x16x128xf32, #tpu.memory_space<any>> -> memref<1x16x128xf32, #tpu.memory_space<any>>
        %c0_i32_76 = arith.constant 0 : i32
        %c0_i32_77 = arith.constant 0 : i32
        %c0_i32_78 = arith.constant 0 : i32
        %114 = tpu.memref_slice %arg8[%0, %c0_i32_76, %c0_i32_77, %c0_i32_78] : memref<2x10x16x128xf32, #tpu.memory_space<vmem>> -> memref<1x1x16x128xf32, #tpu.memory_space<vmem>>
        %115 = tpu.memref_squeeze %114 : memref<1x1x16x128xf32, #tpu.memory_space<vmem>> -> memref<1x16x128xf32, #tpu.memory_space<vmem>>
        %116 = tpu.memref_slice %arg9[%0, %c1_i32_73] : memref<2x3x!tpu.dma_semaphore, #tpu.memory_space<semaphore_mem>> -> memref<1x1x!tpu.dma_semaphore, #tpu.memory_space<semaphore_mem>>
        %117 = tpu.memref_squeeze %116 : memref<1x1x!tpu.dma_semaphore, #tpu.memory_space<semaphore_mem>> -> memref<!tpu.dma_semaphore, #tpu.memory_space<semaphore_mem>>
        tpu.enqueue_dma source(%113 : memref<1x16x128xf32, #tpu.memory_space<any>>) target(%115 : memref<1x16x128xf32, #tpu.memory_space<vmem>>) target_semaphore(%117 : memref<!tpu.dma_semaphore, #tpu.memory_space<semaphore_mem>>)
      } else {
      }
      %c1_i32_69 = arith.constant 1 : i32
      %107 = arith.cmpi slt, %arg1, %c1_i32_69 : i32
      %108 = arith.extui %107 : i1 to i32
      %c0_i32_70 = arith.constant 0 : i32
      %109 = arith.cmpi ne, %108, %c0_i32_70 : i32
      scf.if %109 {
        %c8_i32_71 = arith.constant 8 : i32
        %110 = arith.muli %arg1, %c8_i32_71 : i32
        %c8_i32_72 = arith.constant 8 : i32
        %111 = arith.addi %110, %c8_i32_72 : i32
        %c2_i32_73 = arith.constant 2 : i32
        %c0_i32_74 = arith.constant 0 : i32
        %c0_i32_75 = arith.constant 0 : i32
        %112 = tpu.memref_slice %arg2[%arg0, %111, %c0_i32_74, %c0_i32_75] : memref<2x16x16x128xf32, #tpu.memory_space<any>> -> memref<1x1x16x128xf32, #tpu.memory_space<any>>
        %113 = tpu.memref_squeeze %112 : memref<1x1x16x128xf32, #tpu.memory_space<any>> -> memref<1x16x128xf32, #tpu.memory_space<any>>
        %c9_i32 = arith.constant 9 : i32
        %c0_i32_76 = arith.constant 0 : i32
        %c0_i32_77 = arith.constant 0 : i32
        %114 = tpu.memref_slice %arg8[%0, %c9_i32, %c0_i32_76, %c0_i32_77] : memref<2x10x16x128xf32, #tpu.memory_space<vmem>> -> memref<1x1x16x128xf32, #tpu.memory_space<vmem>>
        %115 = tpu.memref_squeeze %114 : memref<1x1x16x128xf32, #tpu.memory_space<vmem>> -> memref<1x16x128xf32, #tpu.memory_space<vmem>>
        %116 = tpu.memref_slice %arg9[%0, %c2_i32_73] : memref<2x3x!tpu.dma_semaphore, #tpu.memory_space<semaphore_mem>> -> memref<1x1x!tpu.dma_semaphore, #tpu.memory_space<semaphore_mem>>
        %117 = tpu.memref_squeeze %116 : memref<1x1x!tpu.dma_semaphore, #tpu.memory_space<semaphore_mem>> -> memref<!tpu.dma_semaphore, #tpu.memory_space<semaphore_mem>>
        tpu.enqueue_dma source(%113 : memref<1x16x128xf32, #tpu.memory_space<any>>) target(%115 : memref<1x16x128xf32, #tpu.memory_space<vmem>>) target_semaphore(%117 : memref<!tpu.dma_semaphore, #tpu.memory_space<semaphore_mem>>)
      } else {
      }
    } else {
    }
    %c1_i32_1 = arith.constant 1 : i32
    %4 = arith.addi %arg1, %c1_i32_1 : i32
    %c2_i32 = arith.constant 2 : i32
    %5 = arith.cmpi slt, %4, %c2_i32 : i32
    %6 = arith.extui %5 : i1 to i32
    %c0_i32_2 = arith.constant 0 : i32
    %7 = arith.cmpi ne, %6, %c0_i32_2 : i32
    scf.if %7 {
      %c1_i32_60 = arith.constant 1 : i32
      %97 = arith.addi %arg1, %c1_i32_60 : i32
      %c1_i32_61 = arith.constant 1 : i32
      %98 = arith.addi %arg1, %c1_i32_61 : i32
      %c1_i32_62 = arith.constant 1 : i32
      %99 = arith.andi %98, %c1_i32_62 : i32
      %c8_i32_63 = arith.constant 8 : i32
      %100 = arith.muli %97, %c8_i32_63 : i32
      %c0_i32_64 = arith.constant 0 : i32
      %c0_i32_65 = arith.constant 0 : i32
      %c0_i32_66 = arith.constant 0 : i32
      %101 = tpu.memref_slice %arg2[%arg0, %100, %c0_i32_65, %c0_i32_66] : memref<2x16x16x128xf32, #tpu.memory_space<any>> -> memref<1x8x16x128xf32, #tpu.memory_space<any>>
      %102 = tpu.memref_squeeze %101 : memref<1x8x16x128xf32, #tpu.memory_space<any>> -> memref<8x16x128xf32, #tpu.memory_space<any>>
      %c1_i32_67 = arith.constant 1 : i32
      %c0_i32_68 = arith.constant 0 : i32
      %c0_i32_69 = arith.constant 0 : i32
      %103 = tpu.memref_slice %arg8[%99, %c1_i32_67, %c0_i32_68, %c0_i32_69] : memref<2x10x16x128xf32, #tpu.memory_space<vmem>> -> memref<1x8x16x128xf32, #tpu.memory_space<vmem>>
      %104 = tpu.memref_squeeze %103 : memref<1x8x16x128xf32, #tpu.memory_space<vmem>> -> memref<8x16x128xf32, #tpu.memory_space<vmem>>
      %105 = tpu.memref_slice %arg9[%99, %c0_i32_64] : memref<2x3x!tpu.dma_semaphore, #tpu.memory_space<semaphore_mem>> -> memref<1x1x!tpu.dma_semaphore, #tpu.memory_space<semaphore_mem>>
      %106 = tpu.memref_squeeze %105 : memref<1x1x!tpu.dma_semaphore, #tpu.memory_space<semaphore_mem>> -> memref<!tpu.dma_semaphore, #tpu.memory_space<semaphore_mem>>
      tpu.enqueue_dma source(%102 : memref<8x16x128xf32, #tpu.memory_space<any>>) target(%104 : memref<8x16x128xf32, #tpu.memory_space<vmem>>) target_semaphore(%106 : memref<!tpu.dma_semaphore, #tpu.memory_space<semaphore_mem>>)
      %c0_i32_70 = arith.constant 0 : i32
      %107 = arith.cmpi sgt, %97, %c0_i32_70 : i32
      %108 = arith.extui %107 : i1 to i32
      %c0_i32_71 = arith.constant 0 : i32
      %109 = arith.cmpi ne, %108, %c0_i32_71 : i32
      scf.if %109 {
        %c8_i32_74 = arith.constant 8 : i32
        %113 = arith.muli %97, %c8_i32_74 : i32
        %c1_i32_75 = arith.constant 1 : i32
        %114 = arith.subi %113, %c1_i32_75 : i32
        %c1_i32_76 = arith.constant 1 : i32
        %c0_i32_77 = arith.constant 0 : i32
        %c0_i32_78 = arith.constant 0 : i32
        %115 = tpu.memref_slice %arg2[%arg0, %114, %c0_i32_77, %c0_i32_78] : memref<2x16x16x128xf32, #tpu.memory_space<any>> -> memref<1x1x16x128xf32, #tpu.memory_space<any>>
        %116 = tpu.memref_squeeze %115 : memref<1x1x16x128xf32, #tpu.memory_space<any>> -> memref<1x16x128xf32, #tpu.memory_space<any>>
        %c0_i32_79 = arith.constant 0 : i32
        %c0_i32_80 = arith.constant 0 : i32
        %c0_i32_81 = arith.constant 0 : i32
        %117 = tpu.memref_slice %arg8[%99, %c0_i32_79, %c0_i32_80, %c0_i32_81] : memref<2x10x16x128xf32, #tpu.memory_space<vmem>> -> memref<1x1x16x128xf32, #tpu.memory_space<vmem>>
        %118 = tpu.memref_squeeze %117 : memref<1x1x16x128xf32, #tpu.memory_space<vmem>> -> memref<1x16x128xf32, #tpu.memory_space<vmem>>
        %119 = tpu.memref_slice %arg9[%99, %c1_i32_76] : memref<2x3x!tpu.dma_semaphore, #tpu.memory_space<semaphore_mem>> -> memref<1x1x!tpu.dma_semaphore, #tpu.memory_space<semaphore_mem>>
        %120 = tpu.memref_squeeze %119 : memref<1x1x!tpu.dma_semaphore, #tpu.memory_space<semaphore_mem>> -> memref<!tpu.dma_semaphore, #tpu.memory_space<semaphore_mem>>
        tpu.enqueue_dma source(%116 : memref<1x16x128xf32, #tpu.memory_space<any>>) target(%118 : memref<1x16x128xf32, #tpu.memory_space<vmem>>) target_semaphore(%120 : memref<!tpu.dma_semaphore, #tpu.memory_space<semaphore_mem>>)
      } else {
      }
      %c1_i32_72 = arith.constant 1 : i32
      %110 = arith.cmpi slt, %97, %c1_i32_72 : i32
      %111 = arith.extui %110 : i1 to i32
      %c0_i32_73 = arith.constant 0 : i32
      %112 = arith.cmpi ne, %111, %c0_i32_73 : i32
      scf.if %112 {
        %c8_i32_74 = arith.constant 8 : i32
        %113 = arith.muli %97, %c8_i32_74 : i32
        %c8_i32_75 = arith.constant 8 : i32
        %114 = arith.addi %113, %c8_i32_75 : i32
        %c2_i32_76 = arith.constant 2 : i32
        %c0_i32_77 = arith.constant 0 : i32
        %c0_i32_78 = arith.constant 0 : i32
        %115 = tpu.memref_slice %arg2[%arg0, %114, %c0_i32_77, %c0_i32_78] : memref<2x16x16x128xf32, #tpu.memory_space<any>> -> memref<1x1x16x128xf32, #tpu.memory_space<any>>
        %116 = tpu.memref_squeeze %115 : memref<1x1x16x128xf32, #tpu.memory_space<any>> -> memref<1x16x128xf32, #tpu.memory_space<any>>
        %c9_i32 = arith.constant 9 : i32
        %c0_i32_79 = arith.constant 0 : i32
        %c0_i32_80 = arith.constant 0 : i32
        %117 = tpu.memref_slice %arg8[%99, %c9_i32, %c0_i32_79, %c0_i32_80] : memref<2x10x16x128xf32, #tpu.memory_space<vmem>> -> memref<1x1x16x128xf32, #tpu.memory_space<vmem>>
        %118 = tpu.memref_squeeze %117 : memref<1x1x16x128xf32, #tpu.memory_space<vmem>> -> memref<1x16x128xf32, #tpu.memory_space<vmem>>
        %119 = tpu.memref_slice %arg9[%99, %c2_i32_76] : memref<2x3x!tpu.dma_semaphore, #tpu.memory_space<semaphore_mem>> -> memref<1x1x!tpu.dma_semaphore, #tpu.memory_space<semaphore_mem>>
        %120 = tpu.memref_squeeze %119 : memref<1x1x!tpu.dma_semaphore, #tpu.memory_space<semaphore_mem>> -> memref<!tpu.dma_semaphore, #tpu.memory_space<semaphore_mem>>
        tpu.enqueue_dma source(%116 : memref<1x16x128xf32, #tpu.memory_space<any>>) target(%118 : memref<1x16x128xf32, #tpu.memory_space<vmem>>) target_semaphore(%120 : memref<!tpu.dma_semaphore, #tpu.memory_space<semaphore_mem>>)
      } else {
      }
    } else {
    }
    %c0_i32_3 = arith.constant 0 : i32
    %c0_i32_4 = arith.constant 0 : i32
    %c0_i32_5 = arith.constant 0 : i32
    %c0_i32_6 = arith.constant 0 : i32
    %c0_i32_7 = arith.constant 0 : i32
    %8 = tpu.memref_slice %arg2[%c0_i32_3, %c0_i32_5, %c0_i32_6, %c0_i32_7] : memref<2x16x16x128xf32, #tpu.memory_space<any>> -> memref<1x8x16x128xf32, #tpu.memory_space<any>>
    %9 = tpu.memref_squeeze %8 : memref<1x8x16x128xf32, #tpu.memory_space<any>> -> memref<8x16x128xf32, #tpu.memory_space<any>>
    %c1_i32_8 = arith.constant 1 : i32
    %c0_i32_9 = arith.constant 0 : i32
    %c0_i32_10 = arith.constant 0 : i32
    %10 = tpu.memref_slice %arg8[%0, %c1_i32_8, %c0_i32_9, %c0_i32_10] : memref<2x10x16x128xf32, #tpu.memory_space<vmem>> -> memref<1x8x16x128xf32, #tpu.memory_space<vmem>>
    %11 = tpu.memref_squeeze %10 : memref<1x8x16x128xf32, #tpu.memory_space<vmem>> -> memref<8x16x128xf32, #tpu.memory_space<vmem>>
    %12 = tpu.memref_slice %arg9[%0, %c0_i32_4] : memref<2x3x!tpu.dma_semaphore, #tpu.memory_space<semaphore_mem>> -> memref<1x1x!tpu.dma_semaphore, #tpu.memory_space<semaphore_mem>>
    %13 = tpu.memref_squeeze %12 : memref<1x1x!tpu.dma_semaphore, #tpu.memory_space<semaphore_mem>> -> memref<!tpu.dma_semaphore, #tpu.memory_space<semaphore_mem>>
    tpu.wait_dma2 semaphore(%13 : memref<!tpu.dma_semaphore, #tpu.memory_space<semaphore_mem>>) src(%9 : memref<8x16x128xf32, #tpu.memory_space<any>>) dst(%11 : memref<8x16x128xf32, #tpu.memory_space<vmem>>)
    %c0_i32_11 = arith.constant 0 : i32
    %14 = arith.cmpi sgt, %arg1, %c0_i32_11 : i32
    %15 = arith.extui %14 : i1 to i32
    %c0_i32_12 = arith.constant 0 : i32
    %16 = arith.cmpi ne, %15, %c0_i32_12 : i32
    scf.if %16 {
      %c0_i32_60 = arith.constant 0 : i32
      %c1_i32_61 = arith.constant 1 : i32
      %c0_i32_62 = arith.constant 0 : i32
      %c0_i32_63 = arith.constant 0 : i32
      %c0_i32_64 = arith.constant 0 : i32
      %97 = tpu.memref_slice %arg2[%c0_i32_60, %c0_i32_62, %c0_i32_63, %c0_i32_64] : memref<2x16x16x128xf32, #tpu.memory_space<any>> -> memref<1x1x16x128xf32, #tpu.memory_space<any>>
      %98 = tpu.memref_squeeze %97 : memref<1x1x16x128xf32, #tpu.memory_space<any>> -> memref<1x16x128xf32, #tpu.memory_space<any>>
      %c0_i32_65 = arith.constant 0 : i32
      %c0_i32_66 = arith.constant 0 : i32
      %c0_i32_67 = arith.constant 0 : i32
      %99 = tpu.memref_slice %arg8[%0, %c0_i32_65, %c0_i32_66, %c0_i32_67] : memref<2x10x16x128xf32, #tpu.memory_space<vmem>> -> memref<1x1x16x128xf32, #tpu.memory_space<vmem>>
      %100 = tpu.memref_squeeze %99 : memref<1x1x16x128xf32, #tpu.memory_space<vmem>> -> memref<1x16x128xf32, #tpu.memory_space<vmem>>
      %101 = tpu.memref_slice %arg9[%0, %c1_i32_61] : memref<2x3x!tpu.dma_semaphore, #tpu.memory_space<semaphore_mem>> -> memref<1x1x!tpu.dma_semaphore, #tpu.memory_space<semaphore_mem>>
      %102 = tpu.memref_squeeze %101 : memref<1x1x!tpu.dma_semaphore, #tpu.memory_space<semaphore_mem>> -> memref<!tpu.dma_semaphore, #tpu.memory_space<semaphore_mem>>
      tpu.wait_dma2 semaphore(%102 : memref<!tpu.dma_semaphore, #tpu.memory_space<semaphore_mem>>) src(%98 : memref<1x16x128xf32, #tpu.memory_space<any>>) dst(%100 : memref<1x16x128xf32, #tpu.memory_space<vmem>>)
    } else {
    }
    %c1_i32_13 = arith.constant 1 : i32
    %17 = arith.cmpi slt, %arg1, %c1_i32_13 : i32
    %18 = arith.extui %17 : i1 to i32
    %c0_i32_14 = arith.constant 0 : i32
    %19 = arith.cmpi ne, %18, %c0_i32_14 : i32
    scf.if %19 {
      %c0_i32_60 = arith.constant 0 : i32
      %c2_i32_61 = arith.constant 2 : i32
      %c0_i32_62 = arith.constant 0 : i32
      %c0_i32_63 = arith.constant 0 : i32
      %c0_i32_64 = arith.constant 0 : i32
      %97 = tpu.memref_slice %arg2[%c0_i32_60, %c0_i32_62, %c0_i32_63, %c0_i32_64] : memref<2x16x16x128xf32, #tpu.memory_space<any>> -> memref<1x1x16x128xf32, #tpu.memory_space<any>>
      %98 = tpu.memref_squeeze %97 : memref<1x1x16x128xf32, #tpu.memory_space<any>> -> memref<1x16x128xf32, #tpu.memory_space<any>>
      %c9_i32 = arith.constant 9 : i32
      %c0_i32_65 = arith.constant 0 : i32
      %c0_i32_66 = arith.constant 0 : i32
      %99 = tpu.memref_slice %arg8[%0, %c9_i32, %c0_i32_65, %c0_i32_66] : memref<2x10x16x128xf32, #tpu.memory_space<vmem>> -> memref<1x1x16x128xf32, #tpu.memory_space<vmem>>
      %100 = tpu.memref_squeeze %99 : memref<1x1x16x128xf32, #tpu.memory_space<vmem>> -> memref<1x16x128xf32, #tpu.memory_space<vmem>>
      %101 = tpu.memref_slice %arg9[%0, %c2_i32_61] : memref<2x3x!tpu.dma_semaphore, #tpu.memory_space<semaphore_mem>> -> memref<1x1x!tpu.dma_semaphore, #tpu.memory_space<semaphore_mem>>
      %102 = tpu.memref_squeeze %101 : memref<1x1x!tpu.dma_semaphore, #tpu.memory_space<semaphore_mem>> -> memref<!tpu.dma_semaphore, #tpu.memory_space<semaphore_mem>>
      tpu.wait_dma2 semaphore(%102 : memref<!tpu.dma_semaphore, #tpu.memory_space<semaphore_mem>>) src(%98 : memref<1x16x128xf32, #tpu.memory_space<any>>) dst(%100 : memref<1x16x128xf32, #tpu.memory_space<vmem>>)
    } else {
    }
    %20 = arith.index_cast %0 : i32 to index
    %c0 = arith.constant 0 : index
    %c0_15 = arith.constant 0 : index
    %c0_16 = arith.constant 0 : index
    %21 = vector.load %arg8[%20, %c0, %c0_15, %c0_16] : memref<2x10x16x128xf32, #tpu.memory_space<vmem>>, vector<1x10x16x128xf32>
    %22 = vector.shape_cast %21 : vector<1x10x16x128xf32> to vector<10x16x128xf32>
    %23 = tpu.iota {dimensions = array<i32: 0>} : vector<10x1x1xi32>
    %c8_i32 = arith.constant 8 : i32
    %24 = arith.muli %arg1, %c8_i32 : i32
    %25 = vector.broadcast %24 : i32 to vector<10x1x1xi32>
    %26 = arith.addi %23, %25 : vector<10x1x1xi32>
    %c1_i32_17 = arith.constant 1 : i32
    %27 = vector.broadcast %c1_i32_17 : i32 to vector<10x1x1xi32>
    %28 = arith.cmpi sge, %26, %27 : vector<10x1x1xi32>
    %c16_i32 = arith.constant 16 : i32
    %29 = vector.broadcast %c16_i32 : i32 to vector<10x1x1xi32>
    %30 = arith.cmpi sle, %26, %29 : vector<10x1x1xi32>
    %31 = arith.andi %28, %30 : vector<10x1x1xi1>
    %c0_18 = arith.constant 0 : index
    %c0_19 = arith.constant 0 : index
    %32 = vector.load %arg4[%c0_18, %c0_19] : memref<1x128xf32, #tpu.memory_space<vmem>>, vector<1x128xf32>
    %33 = vector.shape_cast %32 : vector<1x128xf32> to vector<1x1x128xf32>
    %34 = vector.broadcast %33 : vector<1x1x128xf32> to vector<10x16x128xf32>
    %35 = arith.mulf %22, %34 : vector<10x16x128xf32>
    %c0_20 = arith.constant 0 : index
    %c0_21 = arith.constant 0 : index
    %36 = vector.load %arg5[%c0_20, %c0_21] : memref<1x128xf32, #tpu.memory_space<vmem>>, vector<1x128xf32>
    %37 = vector.shape_cast %36 : vector<1x128xf32> to vector<1x1x128xf32>
    %38 = vector.broadcast %37 : vector<1x1x128xf32> to vector<10x16x128xf32>
    %39 = arith.addf %35, %38 : vector<10x16x128xf32>
    %cst = arith.constant 0.000000e+00 : f32
    %40 = vector.broadcast %cst : f32 to vector<10x16x128xf32>
    %41 = arith.maximumf %39, %40 : vector<10x16x128xf32>
    %cst_22 = arith.constant 0.000000e+00 : f32
    %42 = vector.shape_cast %31 : vector<10x1x1xi1> to vector<10x1x1xi1>
    %43 = vector.broadcast %42 : vector<10x1x1xi1> to vector<10x16x128xi1>
    %44 = vector.broadcast %cst_22 : f32 to vector<10x16x128xf32>
    %45 = arith.select %43, %41, %44 : vector<10x16x128xi1>, vector<10x16x128xf32>
    %cst_23 = arith.constant 0.000000e+00 : f32
    %46 = vector.broadcast %cst_23 : f32 to vector<10x1x128xf32>
    %47 = tpu.concatenate %46, %45, %46 in 1 : vector<10x1x128xf32>, vector<10x16x128xf32>, vector<10x1x128xf32> -> vector<10x18x128xf32>
    %cst_24 = arith.constant 0.000000e+00 : f32
    %48 = vector.broadcast %cst_24 : f32 to vector<128x128xf32>
    %c0_25 = arith.constant 0 : index
    %c0_26 = arith.constant 0 : index
    %49 = vector.load %arg10[%c0_25, %c0_26] : memref<128x128xf32, #tpu.memory_space<vmem>>, vector<128x128xf32>
    tpu.vector_store %arg10[%c0_25, %c0_26], %48 {strides = array<i32>} : memref<128x128xf32, #tpu.memory_space<vmem>>, vector<128x128xf32>,
    %50 = vector.extract_strided_slice %47 {offsets = [0, 0, 0], sizes = [8, 18, 128], strides = [1, 1, 1]} : vector<10x18x128xf32> to vector<8x18x128xf32>
    %51 = vector.extract_strided_slice %50 {offsets = [0, 0, 0], sizes = [8, 16, 128], strides = [1, 1, 1]} : vector<8x18x128xf32> to vector<8x16x128xf32>
    %52 = vector.extract_strided_slice %50 {offsets = [0, 1, 0], sizes = [8, 16, 128], strides = [1, 1, 1]} : vector<8x18x128xf32> to vector<8x16x128xf32>
    %53 = vector.extract_strided_slice %50 {offsets = [0, 2, 0], sizes = [8, 16, 128], strides = [1, 1, 1]} : vector<8x18x128xf32> to vector<8x16x128xf32>
    %54 = tpu.concatenate %51, %52, %53 in 2 : vector<8x16x128xf32>, vector<8x16x128xf32>, vector<8x16x128xf32> -> vector<8x16x384xf32>
    %c0_27 = arith.constant 0 : index
    %c0_28 = arith.constant 0 : index
    %55 = vector.load %arg10[%c0_27, %c0_28] : memref<128x128xf32, #tpu.memory_space<vmem>>, vector<128x128xf32>
    %56 = vector.shape_cast %54 : vector<8x16x384xf32> to vector<128x384xf32>
    %c0_29 = arith.constant 0 : index
    %c0_30 = arith.constant 0 : index
    %c0_31 = arith.constant 0 : index
    %57 = vector.load %arg3[%c0_29, %c0_30, %c0_31] : memref<3x384x128xf32, #tpu.memory_space<vmem>>, vector<1x384x128xf32>
    %58 = vector.shape_cast %57 : vector<1x384x128xf32> to vector<384x128xf32>
    %cst_32 = arith.constant dense<0.000000e+00> : vector<128x128xf32>
    %59 = tpu.matmul %56, %58, %cst_32 {dimension_numbers = #tpu.dot_dimension_numbers<[1], [0], [0], [1], [0, 0, 1, 1], [], []>} : vector<128x384xf32>, vector<384x128xf32>, vector<128x128xf32> -> vector<128x128xf32>
    %60 = arith.addf %55, %59 : vector<128x128xf32>
    %c0_33 = arith.constant 0 : index
    %c0_34 = arith.constant 0 : index
    %61 = vector.load %arg10[%c0_33, %c0_34] : memref<128x128xf32, #tpu.memory_space<vmem>>, vector<128x128xf32>
    tpu.vector_store %arg10[%c0_33, %c0_34], %60 {strides = array<i32>} : memref<128x128xf32, #tpu.memory_space<vmem>>, vector<128x128xf32>,
    %62 = vector.extract_strided_slice %47 {offsets = [1, 0, 0], sizes = [8, 18, 128], strides = [1, 1, 1]} : vector<10x18x128xf32> to vector<8x18x128xf32>
    %63 = vector.extract_strided_slice %62 {offsets = [0, 0, 0], sizes = [8, 16, 128], strides = [1, 1, 1]} : vector<8x18x128xf32> to vector<8x16x128xf32>
    %64 = vector.extract_strided_slice %62 {offsets = [0, 1, 0], sizes = [8, 16, 128], strides = [1, 1, 1]} : vector<8x18x128xf32> to vector<8x16x128xf32>
    %65 = vector.extract_strided_slice %62 {offsets = [0, 2, 0], sizes = [8, 16, 128], strides = [1, 1, 1]} : vector<8x18x128xf32> to vector<8x16x128xf32>
    %66 = tpu.concatenate %63, %64, %65 in 2 : vector<8x16x128xf32>, vector<8x16x128xf32>, vector<8x16x128xf32> -> vector<8x16x384xf32>
    %c0_35 = arith.constant 0 : index
    %c0_36 = arith.constant 0 : index
    %67 = vector.load %arg10[%c0_35, %c0_36] : memref<128x128xf32, #tpu.memory_space<vmem>>, vector<128x128xf32>
    %68 = vector.shape_cast %66 : vector<8x16x384xf32> to vector<128x384xf32>
    %c1 = arith.constant 1 : index
    %c0_37 = arith.constant 0 : index
    %c0_38 = arith.constant 0 : index
    %69 = vector.load %arg3[%c1, %c0_37, %c0_38] : memref<3x384x128xf32, #tpu.memory_space<vmem>>, vector<1x384x128xf32>
    %70 = vector.shape_cast %69 : vector<1x384x128xf32> to vector<384x128xf32>
    %cst_39 = arith.constant dense<0.000000e+00> : vector<128x128xf32>
    %71 = tpu.matmul %68, %70, %cst_39 {dimension_numbers = #tpu.dot_dimension_numbers<[1], [0], [0], [1], [0, 0, 1, 1], [], []>} : vector<128x384xf32>, vector<384x128xf32>, vector<128x128xf32> -> vector<128x128xf32>
    %72 = arith.addf %67, %71 : vector<128x128xf32>
    %c0_40 = arith.constant 0 : index
    %c0_41 = arith.constant 0 : index
    %73 = vector.load %arg10[%c0_40, %c0_41] : memref<128x128xf32, #tpu.memory_space<vmem>>, vector<128x128xf32>
    tpu.vector_store %arg10[%c0_40, %c0_41], %72 {strides = array<i32>} : memref<128x128xf32, #tpu.memory_space<vmem>>, vector<128x128xf32>,
    %74 = vector.extract_strided_slice %47 {offsets = [2, 0, 0], sizes = [8, 18, 128], strides = [1, 1, 1]} : vector<10x18x128xf32> to vector<8x18x128xf32>
    %75 = vector.extract_strided_slice %74 {offsets = [0, 0, 0], sizes = [8, 16, 128], strides = [1, 1, 1]} : vector<8x18x128xf32> to vector<8x16x128xf32>
    %76 = vector.extract_strided_slice %74 {offsets = [0, 1, 0], sizes = [8, 16, 128], strides = [1, 1, 1]} : vector<8x18x128xf32> to vector<8x16x128xf32>
    %77 = vector.extract_strided_slice %74 {offsets = [0, 2, 0], sizes = [8, 16, 128], strides = [1, 1, 1]} : vector<8x18x128xf32> to vector<8x16x128xf32>
    %78 = tpu.concatenate %75, %76, %77 in 2 : vector<8x16x128xf32>, vector<8x16x128xf32>, vector<8x16x128xf32> -> vector<8x16x384xf32>
    %c0_42 = arith.constant 0 : index
    %c0_43 = arith.constant 0 : index
    %79 = vector.load %arg10[%c0_42, %c0_43] : memref<128x128xf32, #tpu.memory_space<vmem>>, vector<128x128xf32>
    %80 = vector.shape_cast %78 : vector<8x16x384xf32> to vector<128x384xf32>
    %c2 = arith.constant 2 : index
    %c0_44 = arith.constant 0 : index
    %c0_45 = arith.constant 0 : index
    %81 = vector.load %arg3[%c2, %c0_44, %c0_45] : memref<3x384x128xf32, #tpu.memory_space<vmem>>, vector<1x384x128xf32>
    %82 = vector.shape_cast %81 : vector<1x384x128xf32> to vector<384x128xf32>
    %cst_46 = arith.constant dense<0.000000e+00> : vector<128x128xf32>
    %83 = tpu.matmul %80, %82, %cst_46 {dimension_numbers = #tpu.dot_dimension_numbers<[1], [0], [0], [1], [0, 0, 1, 1], [], []>} : vector<128x384xf32>, vector<384x128xf32>, vector<128x128xf32> -> vector<128x128xf32>
    %84 = arith.addf %79, %83 : vector<128x128xf32>
    %c0_47 = arith.constant 0 : index
    %c0_48 = arith.constant 0 : index
    %85 = vector.load %arg10[%c0_47, %c0_48] : memref<128x128xf32, #tpu.memory_space<vmem>>, vector<128x128xf32>
    tpu.vector_store %arg10[%c0_47, %c0_48], %84 {strides = array<i32>} : memref<128x128xf32, #tpu.memory_space<vmem>>, vector<128x128xf32>,
    %c0_49 = arith.constant 0 : index
    %c0_50 = arith.constant 0 : index
    %86 = vector.load %arg10[%c0_49, %c0_50] : memref<128x128xf32, #tpu.memory_space<vmem>>, vector<128x128xf32>
    %87 = vector.shape_cast %86 : vector<128x128xf32> to vector<1x8x16x128xf32>
    %c0_51 = arith.constant 0 : index
    %c0_52 = arith.constant 0 : index
    %c0_53 = arith.constant 0 : index
    %c0_54 = arith.constant 0 : index
    %88 = vector.load %arg6[%c0_51, %c0_52, %c0_53, %c0_54] : memref<1x8x16x128xf32, #tpu.memory_space<vmem>>, vector<1x8x16x128xf32>
    tpu.vector_store %arg6[%c0_51, %c0_52, %c0_53, %c0_54], %87 {strides = array<i32>} : memref<1x8x16x128xf32, #tpu.memory_space<vmem>>, vector<1x8x16x128xf32>,
    %cst_55 = arith.constant dense<0.000000e+00> : vector<128xf32>
    %89 = vector.multi_reduction <add>, %86, %cst_55 [0] : vector<128x128xf32> to vector<128xf32>
    %90 = vector.shape_cast %89 : vector<128xf32> to vector<1x128xf32>
    %91 = arith.mulf %86, %86 : vector<128x128xf32>
    %cst_56 = arith.constant dense<0.000000e+00> : vector<128xf32>
    %92 = vector.multi_reduction <add>, %91, %cst_56 [0] : vector<128x128xf32> to vector<128xf32>
    %93 = vector.shape_cast %92 : vector<128xf32> to vector<1x128xf32>
    %94 = tpu.concatenate %90, %93 in 0 : vector<1x128xf32>, vector<1x128xf32> -> vector<2x128xf32>
    %95 = vector.shape_cast %94 : vector<2x128xf32> to vector<1x2x128xf32>
    %c0_57 = arith.constant 0 : index
    %c0_58 = arith.constant 0 : index
    %c0_59 = arith.constant 0 : index
    %96 = vector.load %arg7[%c0_57, %c0_58, %c0_59] : memref<1x2x128xf32, #tpu.memory_space<vmem>>, vector<1x2x128xf32>
    tpu.vector_store %arg7[%c0_57, %c0_58, %c0_59], %95 {strides = array<i32>} : memref<1x2x128xf32, #tpu.memory_space<vmem>>, vector<1x2x128xf32>,
    return
  }
  func.func @transform_1(%arg0: i32, %arg1: i32) -> (i32, i32, i32) {
    %c0_i32 = arith.constant 0 : i32
    %c0_i32_0 = arith.constant 0 : i32
    %c0_i32_1 = arith.constant 0 : i32
    %c0_i32_2 = arith.constant 0 : i32
    return %c0_i32, %c0_i32_0, %c0_i32_1 : i32, i32, i32
  }
  func.func @transform_2(%arg0: i32, %arg1: i32) -> (i32, i32) {
    %c0_i32 = arith.constant 0 : i32
    %c0_i32_0 = arith.constant 0 : i32
    %c0_i32_1 = arith.constant 0 : i32
    return %c0_i32, %c0_i32_0 : i32, i32
  }
  func.func @transform_3(%arg0: i32, %arg1: i32) -> (i32, i32) {
    %c0_i32 = arith.constant 0 : i32
    %c0_i32_0 = arith.constant 0 : i32
    %c0_i32_1 = arith.constant 0 : i32
    return %c0_i32, %c0_i32_0 : i32, i32
  }
  func.func @transform_4(%arg0: i32, %arg1: i32) -> (i32, i32, i32, i32) {
    %c0_i32 = arith.constant 0 : i32
    %c0_i32_0 = arith.constant 0 : i32
    %c0_i32_1 = arith.constant 0 : i32
    return %arg0, %arg1, %c0_i32, %c0_i32_0 : i32, i32, i32, i32
  }
  func.func @transform_5(%arg0: i32, %arg1: i32) -> (i32, i32, i32) {
    %c2_i32 = arith.constant 2 : i32
    %0 = arith.muli %arg0, %c2_i32 : i32
    %1 = arith.addi %0, %arg1 : i32
    %c0_i32 = arith.constant 0 : i32
    %c0_i32_0 = arith.constant 0 : i32
    %c0_i32_1 = arith.constant 0 : i32
    return %1, %c0_i32, %c0_i32_0 : i32, i32, i32
  }
}

module attributes {stable_mosaic.version = 11 : i64} {
  func.func @_bn_relu_kernel(%arg0: i32, %arg1: memref<512x128xf32, #tpu.memory_space<vmem>>, %arg2: memref<1x128xf32, #tpu.memory_space<vmem>>, %arg3: memref<1x128xf32, #tpu.memory_space<vmem>>, %arg4: memref<512x128xf32, #tpu.memory_space<vmem>>) attributes {dimension_semantics = [#tpu.dimension_semantics<parallel>], iteration_bounds = array<i64: 1>, scalar_prefetch = 0 : i64, scratch_operands = 0 : i64, tpu.core_type = #tpu.core_type<tc>, window_params = [{transform_indices = @transform_0, window_bounds = array<i64: 512, 128>}, {pipeline_mode = #tpu.pipeline_mode<synchronous>, transform_indices = @transform_1, window_bounds = array<i64: 1, 128>}, {pipeline_mode = #tpu.pipeline_mode<synchronous>, transform_indices = @transform_2, window_bounds = array<i64: 1, 128>}, {transform_indices = @transform_3, window_bounds = array<i64: 512, 128>}]} {
    %c0 = arith.constant 0 : index
    %c0_0 = arith.constant 0 : index
    %0 = vector.load %arg1[%c0, %c0_0] : memref<512x128xf32, #tpu.memory_space<vmem>>, vector<512x128xf32>
    %c0_1 = arith.constant 0 : index
    %c0_2 = arith.constant 0 : index
    %1 = vector.load %arg2[%c0_1, %c0_2] : memref<1x128xf32, #tpu.memory_space<vmem>>, vector<1x128xf32>
    %2 = vector.broadcast %1 : vector<1x128xf32> to vector<512x128xf32>
    %3 = arith.mulf %0, %2 : vector<512x128xf32>
    %c0_3 = arith.constant 0 : index
    %c0_4 = arith.constant 0 : index
    %4 = vector.load %arg3[%c0_3, %c0_4] : memref<1x128xf32, #tpu.memory_space<vmem>>, vector<1x128xf32>
    %5 = vector.broadcast %4 : vector<1x128xf32> to vector<512x128xf32>
    %6 = arith.addf %3, %5 : vector<512x128xf32>
    %cst = arith.constant 0.000000e+00 : f32
    %7 = vector.broadcast %cst : f32 to vector<512x128xf32>
    %8 = arith.maximumf %6, %7 : vector<512x128xf32>
    %c0_5 = arith.constant 0 : index
    %c0_6 = arith.constant 0 : index
    %9 = vector.load %arg4[%c0_5, %c0_6] : memref<512x128xf32, #tpu.memory_space<vmem>>, vector<512x128xf32>
    tpu.vector_store %arg4[%c0_5, %c0_6], %8 {strides = array<i32>} : memref<512x128xf32, #tpu.memory_space<vmem>>, vector<512x128xf32>,
    return
  }
  func.func @transform_0(%arg0: i32) -> (i32, i32) {
    %c0_i32 = arith.constant 0 : i32
    %c0_i32_0 = arith.constant 0 : i32
    return %arg0, %c0_i32 : i32, i32
  }
  func.func @transform_1(%arg0: i32) -> (i32, i32) {
    %c0_i32 = arith.constant 0 : i32
    %c0_i32_0 = arith.constant 0 : i32
    %c0_i32_1 = arith.constant 0 : i32
    return %c0_i32, %c0_i32_0 : i32, i32
  }
  func.func @transform_2(%arg0: i32) -> (i32, i32) {
    %c0_i32 = arith.constant 0 : i32
    %c0_i32_0 = arith.constant 0 : i32
    %c0_i32_1 = arith.constant 0 : i32
    return %c0_i32, %c0_i32_0 : i32, i32
  }
  func.func @transform_3(%arg0: i32) -> (i32, i32) {
    %c0_i32 = arith.constant 0 : i32
    %c0_i32_0 = arith.constant 0 : i32
    return %arg0, %c0_i32 : i32, i32
  }
}

</mosaic_0001>

<bundles_post_ra>
// kernel: conv_block_forward.3
= control target key start
LH: loop header
LB: loop body
LE: loop exit
PB: predicated region body
PF: predicated region fallthrough
CT: control target
= control target key end

     0   :  { %s713_s12 = smov 0   ;;  %s715_s13 = smov 0   ;;  %s867_s0 = inlined_call_operand.vmem [shape: f32[2,16,16,128], index: 0, kind: input, shape index: {}]   ;;  %s868_s1 = inlined_call_operand.vmem [shape: f32[128,128], index: 1, kind: input, shape index: {}]   ;;  %s869_s2 = inlined_call_operand.vmem [shape: f32[2,16,16,128], index: 2, kind: output, shape index: {0}]   ;;  %s870_s3 = inlined_call_operand.vmem [shape: f32[4,2,128], index: 3, kind: output, shape index: {1}]  }
   0x1   :  { %s717_s14 = smov 0   ;;  %s719_s15 = smov 0  }
   0x2   :  { %s721_s16 = smov 0  }
   0x3 LB: > { %s23_s17 = sadd.s32 1, %s683_s14  ;;  %s26_s18 = sadd.s32 1, %s687_s15  ;;  %s691_s16 = sphi %s721_s16, %s14_s16   ;;  %s687_s15 = sphi %s719_s15, %s874_s15   ;;  %s683_s14 = sphi %s717_s14, %s873_s14   ;;  %s679_s13 = sphi %s715_s13, %s872_s13   ;;  %s675_s12 = sphi %s713_s12, %s871_s12  }
   0x4   : > { %p24_p0 = scmp.ge.s32.totalorder %s23_s17, 2  ;;  %p552_p1 = scmp.ge.s32.totalorder %s691_s16, 1 }
   0x5   : > { %p166_p2 = scmp.lt.s32.totalorder %s691_s16, 5 }
   0x6   : > { %s876_s17 = smov (%p24_p0, %s23_s17), 0  ;;  %s878_s18 = smov (!%p24_p0, %s26_s18), %s687_s15 }
   0x7   : > { %p167_p3 = pnand %p552_p1, %p166_p2  ;;  %p28_p4 = scmp.ge.s32.totalorder %s878_s18, 2 }
   0x8   : > { %s553_s29 = sshll.u32 (!%p167_p3), %s675_s12, 3  ;;  %p207_p5 = scmp.lt.s32.totalorder (!%p167_p3), %s679_s13, 1 }
   0x9   : > { %s880_s18 = smov (%p28_p4, %s878_s18), 0  ;;  %170 = sbr.rel (%p167_p3) target bundleno = 238 (0xee), region = 28 }
   0xa   : > { %p209_p6 = scmp.lt.s32.totalorder (!%p167_p3), %s553_s29, 15  ;;  %s561_s23 = sshll.u32 (!%p167_p3), %s679_s13, 1 }
   0xb   : > { %s229_s24 = sadd.s32 (!%p167_p3), %s675_s12, %s561_s23 }
   0xc   : > { %p230_p7 = scmp.lt.s32.totalorder (!%p167_p3), %s229_s24, 3 }
   0xe   : > { %v267_v0 = vld [vmem:[%s868_s1 + $0x78] sm:$0xff]  ;;  %v266_v1 = vld [vmem:[%s868_s1 + $0x70] sm:$0xff]  ;;  %v265_v2 = vld [vmem:[%s868_s1 + $0x68] sm:$0xff]  ;;  %s208_s9 = scalar_select %p207_p5, %s679_s13, 1  ;;  %vm407_vm0 = vcmask 1040384  }
   0xf   : > { %268 = vmatpush.msra.mxu0 %v267_v0  ;;  %565 = vmatpush.msra.mxu1 %v267_v0  ;;  %v264_v3 = vld [vmem:[%s868_s1 + $0x60] sm:$0xff]  ;;  %v263_v4 = vld [vmem:[%s868_s1 + $0x58] sm:$0xff]  ;;  %v262_v5 = vld [vmem:[%s868_s1 + $0x50] sm:$0xff]  ;;  %s882_s29 = smov (!%p209_p6, %s553_s29), 15  ;;  %s884_s24 = smov (!%p230_p7, %s229_s24), 3 }
  0x10   : > { %566 = vmatpush.msra.mxu2 %v267_v0  ;;  %567 = vmatpush.msra.mxu3 %v267_v0  ;;  %v261_v6 = vld [vmem:[%s868_s1 + $0x48] sm:$0xff]  ;;  %v260_v7 = vld [vmem:[%s868_s1 + $0x40] sm:$0xff]  ;;  %v259_v8 = vld [vmem:[%s868_s1 + $0x38] sm:$0xff]  ;;  %s554_s21 = sshll.u32 %s882_s29, 1  ;;  %s555_s22 = sshll.u32 %s208_s9, 5 }
  0x11   : > { %269 = vmatpush.msra.mxu0 %v266_v1  ;;  %568 = vmatpush.msra.mxu1 %v266_v1  ;;  %v258_v9 = vld [vmem:[%s868_s1 + $0x30] sm:$0xff]  ;;  %v257_v10 = vld [vmem:[%s868_s1 + $0x28] sm:$0xff]  ;;  %v256_v11 = vld [vmem:[%s868_s1 + $0x20] sm:$0xff]  ;;  %s786_s27 = sadd.s32 %s555_s22, %s554_s21  ;;  %s562_s13 = sshll.u32 %s884_s24, 1 }
  0x12   : > { %569 = vmatpush.msra.mxu2 %v266_v1  ;;  %570 = vmatpush.msra.mxu3 %v266_v1  ;;  %v255_v12 = vld [vmem:[%s868_s1 + $0x18] sm:$0xff]  ;;  %s556_s30 = sshll.u32 %s786_s27, 3  ;;  %v254_v13 = vld [vmem:[%s868_s1 + $0x10] sm:$0xff]  ;;  %v253_v14 = vld [vmem:[%s868_s1 + $0x8] sm:$0xff]  ;;  %s233_s12 = scalar_lea.vmem %s870_s3, %s562_s13 }
  0x13   : > { %270 = vmatpush.msra.mxu0 %v265_v2  ;;  %571 = vmatpush.msra.mxu1 %v265_v2  ;;  %s803_s10 = scalar_lea.vmem %s867_s0, %s556_s30  ;;  %v252_v15 = vld [vmem:[%s868_s1] sm:$0xff]  ;;  %s829_s22 = scalar_lea.vmem %s869_s2, %s556_s30 }
  0x14   : > { %572 = vmatpush.msra.mxu2 %v265_v2  ;;  %573 = vmatpush.msra.mxu3 %v265_v2  ;;  %v236_v16 = vld [vmem:[%s803_s10] sm:$0xff]  ;;  %v237_v20 = vld [vmem:[%s803_s10 + $0x8] sm:$0xff]  ;;  %v238_v24 = vld [vmem:[%s803_s10 + $0x10] sm:$0xff] }
  0x15   : > { %271 = vmatpush.msra.mxu0 %v264_v3  ;;  %574 = vmatpush.msra.mxu1 %v264_v3  ;;  %v240_v17 = vld [vmem:[%s803_s10 + $0x20] sm:$0xff]  ;;  %v241_v21 = vld [vmem:[%s803_s10 + $0x28] sm:$0xff]  ;;  %v242_v25 = vld [vmem:[%s803_s10 + $0x30] sm:$0xff] }
  0x16   : > { %575 = vmatpush.msra.mxu2 %v264_v3  ;;  %576 = vmatpush.msra.mxu3 %v264_v3  ;;  %v244_v18 = vld [vmem:[%s803_s10 + $0x40] sm:$0xff]  ;;  %v245_v22 = vld [vmem:[%s803_s10 + $0x48] sm:$0xff]  ;;  %v246_v26 = vld [vmem:[%s803_s10 + $0x50] sm:$0xff] }
  0x17   : > { %272 = vmatpush.msra.mxu0 %v263_v4  ;;  %577 = vmatpush.msra.mxu1 %v263_v4  ;;  %v248_v19 = vld [vmem:[%s803_s10 + $0x60] sm:$0xff]  ;;  %v249_v23 = vld [vmem:[%s803_s10 + $0x68] sm:$0xff]  ;;  %v250_v27 = vld [vmem:[%s803_s10 + $0x70] sm:$0xff] }
  0x18   : > { %578 = vmatpush.msra.mxu2 %v263_v4  ;;  %579 = vmatpush.msra.mxu3 %v263_v4  ;;  %v239_v28 = vld [vmem:[%s803_s10 + $0x18] sm:$0xff] }
  0x19   : > { %273 = vmatpush.msra.mxu0 %v262_v5  ;;  %580 = vmatpush.msra.mxu1 %v262_v5  ;;  %v243_v29 = vld [vmem:[%s803_s10 + $0x38] sm:$0xff] }
  0x1a   : > { %581 = vmatpush.msra.mxu2 %v262_v5  ;;  %582 = vmatpush.msra.mxu3 %v262_v5  ;;  %v247_v30 = vld [vmem:[%s803_s10 + $0x58] sm:$0xff] }
  0x1b   : > { %274 = vmatpush.msra.mxu0 %v261_v6  ;;  %583 = vmatpush.msra.mxu1 %v261_v6  ;;  %v251_v31 = vld [vmem:[%s803_s10 + $0x78] sm:$0xff] }
  0x1c   : > { %584 = vmatpush.msra.mxu2 %v261_v6  ;;  %585 = vmatpush.msra.mxu3 %v261_v6 }
  0x1d   : > { %275 = vmatpush.msra.mxu0 %v260_v7  ;;  %586 = vmatpush.msra.mxu1 %v260_v7 }
  0x1e   : > { %587 = vmatpush.msra.mxu2 %v260_v7  ;;  %588 = vmatpush.msra.mxu3 %v260_v7 }
  0x1f   : > { %276 = vmatpush.msra.mxu0 %v259_v8  ;;  %589 = vmatpush.msra.mxu1 %v259_v8 }
  0x20   : > { %590 = vmatpush.msra.mxu2 %v259_v8  ;;  %591 = vmatpush.msra.mxu3 %v259_v8 }
  0x21   : > { %277 = vmatpush.msra.mxu0 %v258_v9  ;;  %592 = vmatpush.msra.mxu1 %v258_v9 }
  0x22   : > { %593 = vmatpush.msra.mxu2 %v258_v9  ;;  %594 = vmatpush.msra.mxu3 %v258_v9 }
  0x23   : > { %278 = vmatpush.msra.mxu0 %v257_v10  ;;  %595 = vmatpush.msra.mxu1 %v257_v10 }
  0x24   : > { %596 = vmatpush.msra.mxu2 %v257_v10  ;;  %597 = vmatpush.msra.mxu3 %v257_v10 }
  0x25   : > { %279 = vmatpush.msra.mxu0 %v256_v11  ;;  %598 = vmatpush.msra.mxu1 %v256_v11 }
  0x26   : > { %599 = vmatpush.msra.mxu2 %v256_v11  ;;  %600 = vmatpush.msra.mxu3 %v256_v11 }
  0x27   : > { %280 = vmatpush.msra.mxu0 %v255_v12  ;;  %601 = vmatpush.msra.mxu1 %v255_v12 }
  0x28   : > { %602 = vmatpush.msra.mxu2 %v255_v12  ;;  %603 = vmatpush.msra.mxu3 %v255_v12 }
  0x29   : > { %281 = vmatpush.msra.mxu0 %v254_v13  ;;  %604 = vmatpush.msra.mxu1 %v254_v13 }
  0x2a   : > { %605 = vmatpush.msra.mxu2 %v254_v13  ;;  %606 = vmatpush.msra.mxu3 %v254_v13 }
  0x2b   : > { %282 = vmatpush.msra.mxu0 %v253_v14  ;;  %607 = vmatpush.msra.mxu1 %v253_v14 }
  0x2c   : > { %608 = vmatpush.msra.mxu2 %v253_v14  ;;  %609 = vmatpush.msra.mxu3 %v253_v14 }
  0x2d   : > { %283 = vmatpush.msra.mxu0 %v252_v15  ;;  %610 = vmatpush.msra.mxu1 %v252_v15 }
  0x2e   : > { %284 = vmatmul.f32.vlgmr.msra.gmra.mxu0 %v236_v16  ;;  %296 = vmatmul.f32.vlgmr.msra.gmra.mxu1 %v240_v17 }
  0x2f   : > { %611 = vmatpush.msra.mxu2 %v252_v15  ;;  %612 = vmatpush.msra.mxu3 %v252_v15 }
  0x30   : > { %308 = vmatmul.f32.vlgmr.msra.gmra.mxu2 %v244_v18  ;;  %320 = vmatmul.f32.vlgmr.msra.gmra.mxu3 %v248_v19 }
  0x36   : > { %287 = vmatmul.f32.gmra.mxu0 %v237_v20  ;;  %299 = vmatmul.f32.gmra.mxu1 %v241_v21 }
  0x38   : > { %311 = vmatmul.f32.gmra.mxu2 %v245_v22  ;;  %323 = vmatmul.f32.gmra.mxu3 %v249_v23 }
  0x3e   : > { %290 = vmatmul.f32.gmra.mxu0 %v238_v24  ;;  %302 = vmatmul.f32.gmra.mxu1 %v242_v25 }
  0x40   : > { %314 = vmatmul.f32.gmra.mxu2 %v246_v26  ;;  %326 = vmatmul.f32.gmra.mxu3 %v250_v27 }
  0x46   : > { %293 = vmatmul.f32.gmra.mxu0 %v239_v28  ;;  %305 = vmatmul.f32.gmra.mxu1 %v243_v29 }
  0x48   : > { %317 = vmatmul.f32.gmra.mxu2 %v247_v30  ;;  %329 = vmatmul.f32.gmra.mxu3 %v251_v31 }
  0xab   : > { %v285_v32 = vpop.f32.mrf.mxu0  ;;  %v297_v33 = vpop.f32.mrf.mxu1 }
  0xac   : > { %333 = vst [vmem:[%s829_s22] sm:$0xff] %v285_v32  ;;  %v370_v43 = vmul.f32 %v285_v32, %v285_v32  ;;  %v374_v55 = vmul.f32 %v297_v33, %v297_v33 }
  0xad   : > { %337 = vst [vmem:[%s829_s22 + $0x20] sm:$0xff] %v297_v33 }
  0xb3   : > { %v288_v34 = vpop.f32.mrf.mxu0  ;;  %v300_v35 = vpop.f32.mrf.mxu1 }
  0xb4   : > { %334 = vst [vmem:[%s829_s22 + $0x8] sm:$0xff] %v288_v34  ;;  %v309_v36 = vpop.f32.mrf.mxu2  ;;  %v321_v37 = vpop.f32.mrf.mxu3  ;;  %v371_v42 = vmul.f32 %v288_v34, %v288_v34  ;;  %v349_v44 = vadd.f32 %v288_v34, %v285_v32  ;;  %v375_v58 = vmul.f32 %v300_v35, %v300_v35 }
  0xb5   : > { %338 = vst [vmem:[%s829_s22 + $0x28] sm:$0xff] %v300_v35  ;;  %v378_v5 = vmul.f32 %v309_v36, %v309_v36  ;;  %v382_v17 = vmul.f32 %v321_v37, %v321_v37 }
  0xb6   : > { %341 = vst [vmem:[%s829_s22 + $0x40] sm:$0xff] %v309_v36  ;;  %v386_v46 = vadd.f32 %v371_v42, %v370_v43 }
  0xb7   : > { %345 = vst [vmem:[%s829_s22 + $0x60] sm:$0xff] %v321_v37 }
  0xbb   : > { %v291_v38 = vpop.f32.mrf.mxu0  ;;  %v303_v39 = vpop.f32.mrf.mxu1 }
  0xbc   : > { %335 = vst [vmem:[%s829_s22 + $0x10] sm:$0xff] %v291_v38  ;;  %v312_v40 = vpop.f32.mrf.mxu2  ;;  %v324_v41 = vpop.f32.mrf.mxu3  ;;  %v372_v45 = vmul.f32 %v291_v38, %v291_v38  ;;  %v350_v47 = vadd.f32 %v349_v44, %v291_v38  ;;  %v376_v62 = vmul.f32 %v303_v39, %v303_v39 }
  0xbd   : > { %339 = vst [vmem:[%s829_s22 + $0x30] sm:$0xff] %v303_v39  ;;  %v379_v8 = vmul.f32 %v312_v40, %v312_v40  ;;  %v383_v20 = vmul.f32 %v324_v41, %v324_v41 }
  0xbe   : > { %342 = vst [vmem:[%s829_s22 + $0x48] sm:$0xff] %v312_v40  ;;  %v387_v50 = vadd.f32 %v386_v46, %v372_v45 }
  0xbf   : > { %346 = vst [vmem:[%s829_s22 + $0x68] sm:$0xff] %v324_v41 }
  0xc3   : > { %v294_v48 = vpop.f32.mrf.mxu0  ;;  %v306_v49 = vpop.f32.mrf.mxu1 }
  0xc4   : > { %336 = vst [vmem:[%s829_s22 + $0x18] sm:$0xff] %v294_v48  ;;  %v351_v51 = vadd.f32 %v350_v47, %v294_v48  ;;  %v373_v52 = vmul.f32 %v294_v48, %v294_v48  ;;  %v315_v53 = vpop.f32.mrf.mxu2  ;;  %v327_v54 = vpop.f32.mrf.mxu3  ;;  %v377_v0 = vmul.f32 %v306_v49, %v306_v49 }
  0xc5   : > { %340 = vst [vmem:[%s829_s22 + $0x38] sm:$0xff] %v306_v49  ;;  %v380_v12 = vmul.f32 %v315_v53, %v315_v53  ;;  %v384_v24 = vmul.f32 %v327_v54, %v327_v54 }
  0xc6   : > { %v352_v56 = vadd.f32 %v351_v51, %v297_v33  ;;  %v388_v57 = vadd.f32 %v387_v50, %v373_v52  ;;  %343 = vst [vmem:[%s829_s22 + $0x50] sm:$0xff] %v315_v53 }
  0xc7   : > { %347 = vst [vmem:[%s829_s22 + $0x70] sm:$0xff] %v327_v54 }
  0xc8   : > { %v389_v59 = vadd.f32 %v388_v57, %v374_v55  ;;  %v353_v60 = vadd.f32 %v352_v56, %v300_v35 }
  0xca   : > { %v354_v61 = vadd.f32 %v353_v60, %v303_v39  ;;  %v390_v63 = vadd.f32 %v389_v59, %v375_v58 }
  0xcc   : > { %v391_v1 = vadd.f32 %v390_v63, %v376_v62  ;;  %v355_v2 = vadd.f32 %v354_v61, %v306_v49  ;;  %v318_v3 = vpop.f32.mrf.mxu2  ;;  %v330_v4 = vpop.f32.mrf.mxu3 }
  0xcd   : > { %344 = vst [vmem:[%s829_s22 + $0x58] sm:$0xff] %v318_v3  ;;  %v381_v14 = vmul.f32 %v318_v3, %v318_v3  ;;  %v385_v26 = vmul.f32 %v330_v4, %v330_v4 }
  0xce   : > { %v356_v6 = vadd.f32 %v355_v2, %v309_v36  ;;  %v392_v7 = vadd.f32 %v391_v1, %v377_v0  ;;  %348 = vst [vmem:[%s829_s22 + $0x78] sm:$0xff] %v330_v4 }
  0xd0   : > { %v393_v9 = vadd.f32 %v392_v7, %v378_v5  ;;  %v357_v10 = vadd.f32 %v356_v6, %v312_v40 }
  0xd2   : > { %v358_v11 = vadd.f32 %v357_v10, %v315_v53  ;;  %v394_v13 = vadd.f32 %v393_v9, %v379_v8 }
  0xd4   : > { %v395_v15 = vadd.f32 %v394_v13, %v380_v12  ;;  %v359_v16 = vadd.f32 %v358_v11, %v318_v3 }
  0xd6   : > { %v360_v18 = vadd.f32 %v359_v16, %v321_v37  ;;  %v396_v19 = vadd.f32 %v395_v15, %v381_v14 }
  0xd8   : > { %v397_v21 = vadd.f32 %v396_v19, %v382_v17  ;;  %v361_v22 = vadd.f32 %v360_v18, %v324_v41 }
  0xda   : > { %v362_v23 = vadd.f32 %v361_v22, %v327_v54  ;;  %v398_v25 = vadd.f32 %v397_v21, %v383_v20 }
  0xdc   : > { %v399_v27 = vadd.f32 %v398_v25, %v384_v24  ;;  %v363_v28 = vadd.f32 %v362_v23, %v330_v4 }
  0xde   : > { %v364_v29 = vrot.slane %v363_v28, 4  ;;  %v400_v30 = vadd.f32 %v399_v27, %v385_v26 }
  0xe0   : > { %v365_v31 = vadd.f32 %v364_v29, %v363_v28  ;;  %v401_v32 = vrot.slane %v400_v30, 4 }
  0xe2   : > { %v366_v33 = vrot.slane %v365_v31, 2  ;;  %v402_v34 = vadd.f32 %v401_v32, %v400_v30 }
  0xe4   : > { %v367_v35 = vadd.f32 %v366_v33, %v365_v31  ;;  %v403_v36 = vrot.slane %v402_v34, 2 }
  0xe6   : > { %v368_v37 = vrot.slane %v367_v35, 1  ;;  %v404_v38 = vadd.f32 %v403_v36, %v402_v34 }
  0xe8   : > { %v405_v39 = vrot.slane %v404_v38, 1  ;;  %v369_v40 = vadd.f32 %v368_v37, %v367_v35 }
  0xea   : > { %v406_v41 = vadd.f32 %v405_v39, %v404_v38 }
  0xec   : > { %v408_v42 = vsel %vm407_vm0, %v369_v40, %v406_v41 }
  0xed   : > { %409 = vst [vmem:[%s233_s12] sm:$0x3] %v408_v42 }
  0xee PF: > { %s14_s16 = sadd.s32 1, %s691_s16   ;;  %s871_s12 = smov %s683_s14 }
  0xef   : > { %p11_p8 = scmp.ge.s32.totalorder %s14_s16, 6   ;;  %s872_s13 = smov %s687_s15 }
  0xf0   : > { %s873_s14 = smov %s876_s17  ;;  %s874_s15 = smov %s880_s18 }
  0xf1   :  { %13 = sbr.rel (!%p11_p8) target bundleno = 3 (0x3), region = 70 }

// kernel: conv_block_forward.5
= control target key start
LH: loop header
LB: loop body
LE: loop exit
PB: predicated region body
PF: predicated region fallthrough
CT: control target
= control target key end

     0   :  { %s893_s0 = inlined_call_operand.vmem [shape: f32[512,128], index: 0, kind: input, shape index: {}]   ;;  %s894_s1 = inlined_call_operand.vmem [shape: f32[1,128], index: 1, kind: input, shape index: {}]   ;;  %s895_s2 = inlined_call_operand.vmem [shape: f32[1,128], index: 2, kind: input, shape index: {}]   ;;  %s896_s3 = inlined_call_operand.vmem [shape: f32[512,128], index: 3, kind: output, shape index: {}]  }
   0x1   :  { %v14_v0 = vld [vmem:[%s893_s0] sm:$0xff]  ;;  %v15_v3 = vld [vmem:[%s893_s0 + $0x8] sm:$0xff]  ;;  %v16_v6 = vld [vmem:[%s893_s0 + $0x10] sm:$0xff] }
   0x2   :  { %v374_v1 = vld [vmem:[%s894_s1] ss:$0 sm:$0xff]  ;;  %v17_v7 = vld [vmem:[%s893_s0 + $0x18] sm:$0xff]  ;;  %v19_v12 = vld [vmem:[%s893_s0 + $0x28] sm:$0xff] }
   0x3   :  { %v379_v2 = vld [vmem:[%s895_s2] ss:$0 sm:$0xff]  ;;  %v82_v4 = vmul.f32 %v374_v1, %v14_v0  ;;  %v83_v5 = vmul.f32 %v374_v1, %v15_v3  ;;  %v84_v9 = vmul.f32 %v374_v1, %v16_v6  ;;  %v85_v10 = vmul.f32 %v374_v1, %v17_v7  ;;  %v20_v13 = vld [vmem:[%s893_s0 + $0x30] sm:$0xff]  ;;  %v21_v14 = vld [vmem:[%s893_s0 + $0x38] sm:$0xff] }
   0x4   :  { %v18_v8 = vld [vmem:[%s893_s0 + $0x20] sm:$0xff]  ;;  %v87_v17 = vmul.f32 %v374_v1, %v19_v12  ;;  %v88_v18 = vmul.f32 %v374_v1, %v20_v13  ;;  %v89_v22 = vmul.f32 %v374_v1, %v21_v14  ;;  %v23_v24 = vld [vmem:[%s893_s0 + $0x48] sm:$0xff]  ;;  %v24_v29 = vld [vmem:[%s893_s0 + $0x50] sm:$0xff] }
   0x5   :  { %v86_v11 = vmul.f32 %v374_v1, %v18_v8  ;;  %v150_v15 = vadd.f32 %v379_v2, %v82_v4  ;;  %v151_v16 = vadd.f32 %v379_v2, %v83_v5  ;;  %v152_v19 = vadd.f32 %v379_v2, %v84_v9  ;;  %v22_v23 = vld [vmem:[%s893_s0 + $0x40] sm:$0xff]  ;;  %v25_v30 = vld [vmem:[%s893_s0 + $0x58] sm:$0xff]  ;;  %v27_v35 = vld [vmem:[%s893_s0 + $0x68] sm:$0xff] }
   0x6   :  { %v153_v20 = vadd.f32 %v379_v2, %v85_v10  ;;  %v155_v27 = vadd.f32 %v379_v2, %v87_v17  ;;  %v156_v28 = vadd.f32 %v379_v2, %v88_v18  ;;  %v26_v31 = vld [vmem:[%s893_s0 + $0x60] sm:$0xff]  ;;  %v157_v34 = vadd.f32 %v379_v2, %v89_v22  ;;  %v28_v36 = vld [vmem:[%s893_s0 + $0x70] sm:$0xff]  ;;  %v29_v41 = vld [vmem:[%s893_s0 + $0x78] sm:$0xff] }
   0x7   :  { %v154_v21 = vadd.f32 %v379_v2, %v86_v11  ;;  %v214_v25 = vmax.f32 %v150_v15, 0.0  ;;  %v215_v26 = vmax.f32 %v151_v16, 0.0  ;;  %v216_v32 = vmax.f32 %v152_v19, 0.0  ;;  %v30_v54 = vld [vmem:[%s893_s0 + $0x80] sm:$0xff]  ;;  %v31_v55 = vld [vmem:[%s893_s0 + $0x88] sm:$0xff]  ;;  %v32_v58 = vld [vmem:[%s893_s0 + $0x90] sm:$0xff] }
   0x8   :  { %v217_v33 = vmax.f32 %v153_v20, 0.0  ;;  %v219_v38 = vmax.f32 %v155_v27, 0.0  ;;  %v90_v39 = vmul.f32 %v374_v1, %v22_v23  ;;  %v91_v40 = vmul.f32 %v374_v1, %v23_v24  ;;  %v33_v59 = vld [vmem:[%s893_s0 + $0x98] sm:$0xff]  ;;  %v34_v62 = vld [vmem:[%s893_s0 + $0xa0] sm:$0xff]  ;;  %v35_v5 = vld [vmem:[%s893_s0 + $0xa8] sm:$0xff] }
   0x9   :  { %278 = vst [vmem:[%s896_s3] sm:$0xff] %v214_v25  ;;  %v218_v37 = vmax.f32 %v154_v21, 0.0  ;;  %v220_v42 = vmax.f32 %v156_v28, 0.0  ;;  %v92_v43 = vmul.f32 %v374_v1, %v24_v29  ;;  %v93_v44 = vmul.f32 %v374_v1, %v25_v30  ;;  %v36_v10 = vld [vmem:[%s893_s0 + $0xb0] sm:$0xff]  ;;  %v37_v14 = vld [vmem:[%s893_s0 + $0xb8] sm:$0xff]  ;;  %v38_v18 = vld [vmem:[%s893_s0 + $0xc0] sm:$0xff] }
   0xa   :  { %279 = vst [vmem:[%s896_s3 + $0x8] sm:$0xff] %v215_v26  ;;  %v94_v45 = vmul.f32 %v374_v1, %v26_v31  ;;  %v158_v46 = vadd.f32 %v379_v2, %v90_v39  ;;  %v159_v47 = vadd.f32 %v379_v2, %v91_v40  ;;  %v95_v48 = vmul.f32 %v374_v1, %v27_v35  ;;  %v39_v22 = vld [vmem:[%s893_s0 + $0xc8] sm:$0xff]  ;;  %v40_v26 = vld [vmem:[%s893_s0 + $0xd0] sm:$0xff]  ;;  %v41_v30 = vld [vmem:[%s893_s0 + $0xd8] sm:$0xff] }
   0xb   :  { %280 = vst [vmem:[%s896_s3 + $0x10] sm:$0xff] %v216_v32  ;;  %v96_v49 = vmul.f32 %v374_v1, %v28_v36  ;;  %v221_v50 = vmax.f32 %v157_v34, 0.0  ;;  %v160_v51 = vadd.f32 %v379_v2, %v92_v43  ;;  %v161_v52 = vadd.f32 %v379_v2, %v93_v44  ;;  %v42_v34 = vld [vmem:[%s893_s0 + $0xe0] sm:$0xff] }
   0xc   :  { %281 = vst [vmem:[%s896_s3 + $0x18] sm:$0xff] %v217_v33  ;;  %v97_v53 = vmul.f32 %v374_v1, %v29_v41  ;;  %v222_v56 = vmax.f32 %v158_v46, 0.0  ;;  %v162_v57 = vadd.f32 %v379_v2, %v94_v45  ;;  %v223_v60 = vmax.f32 %v159_v47, 0.0  ;;  %v45_v46 = vld [vmem:[%s893_s0 + $0xf8] sm:$0xff] }
   0xd   :  { %282 = vst [vmem:[%s896_s3 + $0x20] sm:$0xff] %v218_v37  ;;  %v163_v61 = vadd.f32 %v379_v2, %v95_v48  ;;  %v224_v63 = vmax.f32 %v160_v51, 0.0  ;;  %v164_v0 = vadd.f32 %v379_v2, %v96_v49  ;;  %v98_v3 = vmul.f32 %v374_v1, %v30_v54  ;;  %v47_v54 = vld [vmem:[%s893_s0 + $0x108] sm:$0xff] }
   0xe   :  { %283 = vst [vmem:[%s896_s3 + $0x28] sm:$0xff] %v219_v38  ;;  %v99_v4 = vmul.f32 %v374_v1, %v31_v55  ;;  %v225_v6 = vmax.f32 %v161_v52, 0.0  ;;  %v165_v7 = vadd.f32 %v379_v2, %v97_v53  ;;  %v100_v8 = vmul.f32 %v374_v1, %v32_v58  ;;  %v43_v38 = vld [vmem:[%s893_s0 + $0xe8] sm:$0xff]  ;;  %v48_v58 = vld [vmem:[%s893_s0 + $0x110] sm:$0xff] }
   0xf   :  { %284 = vst [vmem:[%s896_s3 + $0x30] sm:$0xff] %v220_v42  ;;  %v101_v9 = vmul.f32 %v374_v1, %v33_v59  ;;  %v226_v11 = vmax.f32 %v162_v57, 0.0  ;;  %v166_v12 = vadd.f32 %v379_v2, %v98_v3  ;;  %v102_v13 = vmul.f32 %v374_v1, %v34_v62  ;;  %v44_v42 = vld [vmem:[%s893_s0 + $0xf0] sm:$0xff]  ;;  %v49_v62 = vld [vmem:[%s893_s0 + $0x118] sm:$0xff] }
  0x10   :  { %285 = vst [vmem:[%s896_s3 + $0x38] sm:$0xff] %v221_v50  ;;  %v227_v15 = vmax.f32 %v163_v61, 0.0  ;;  %v167_v16 = vadd.f32 %v379_v2, %v99_v4  ;;  %v103_v17 = vmul.f32 %v374_v1, %v35_v5  ;;  %v228_v19 = vmax.f32 %v164_v0, 0.0  ;;  %v46_v50 = vld [vmem:[%s893_s0 + $0x100] sm:$0xff] }
  0x11   :  { %286 = vst [vmem:[%s896_s3 + $0x40] sm:$0xff] %v222_v56  ;;  %v168_v20 = vadd.f32 %v379_v2, %v100_v8  ;;  %v104_v21 = vmul.f32 %v374_v1, %v36_v10  ;;  %v229_v23 = vmax.f32 %v165_v7, 0.0  ;;  %v169_v24 = vadd.f32 %v379_v2, %v101_v9  ;;  %v50_v4 = vld [vmem:[%s893_s0 + $0x120] sm:$0xff]  ;;  %v51_v8 = vld [vmem:[%s893_s0 + $0x128] sm:$0xff] }
  0x12   :  { %287 = vst [vmem:[%s896_s3 + $0x48] sm:$0xff] %v223_v60  ;;  %v105_v25 = vmul.f32 %v374_v1, %v37_v14  ;;  %v230_v27 = vmax.f32 %v166_v12, 0.0  ;;  %v170_v28 = vadd.f32 %v379_v2, %v102_v13  ;;  %v106_v29 = vmul.f32 %v374_v1, %v38_v18  ;;  %v52_v12 = vld [vmem:[%s893_s0 + $0x130] sm:$0xff] }
  0x13   :  { %288 = vst [vmem:[%s896_s3 + $0x50] sm:$0xff] %v224_v63  ;;  %v231_v31 = vmax.f32 %v167_v16, 0.0  ;;  %v171_v32 = vadd.f32 %v379_v2, %v103_v17  ;;  %v107_v33 = vmul.f32 %v374_v1, %v39_v22  ;;  %v232_v35 = vmax.f32 %v168_v20, 0.0  ;;  %v53_v16 = vld [vmem:[%s893_s0 + $0x138] sm:$0xff]  ;;  %v54_v20 = vld [vmem:[%s893_s0 + $0x140] sm:$0xff] }
  0x14   :  { %289 = vst [vmem:[%s896_s3 + $0x58] sm:$0xff] %v225_v6  ;;  %v172_v36 = vadd.f32 %v379_v2, %v104_v21  ;;  %v108_v37 = vmul.f32 %v374_v1, %v40_v26  ;;  %v233_v39 = vmax.f32 %v169_v24, 0.0  ;;  %v173_v40 = vadd.f32 %v379_v2, %v105_v25  ;;  %v55_v24 = vld [vmem:[%s893_s0 + $0x148] sm:$0xff] }
  0x15   :  { %290 = vst [vmem:[%s896_s3 + $0x60] sm:$0xff] %v226_v11  ;;  %v109_v41 = vmul.f32 %v374_v1, %v41_v30  ;;  %v234_v43 = vmax.f32 %v170_v28, 0.0  ;;  %v174_v44 = vadd.f32 %v379_v2, %v106_v29  ;;  %v110_v45 = vmul.f32 %v374_v1, %v42_v34  ;;  %v56_v28 = vld [vmem:[%s893_s0 + $0x150] sm:$0xff] }
  0x16   :  { %291 = vst [vmem:[%s896_s3 + $0x68] sm:$0xff] %v227_v15  ;;  %v235_v47 = vmax.f32 %v171_v32, 0.0  ;;  %v175_v48 = vadd.f32 %v379_v2, %v107_v33  ;;  %v111_v49 = vmul.f32 %v374_v1, %v43_v38  ;;  %v236_v51 = vmax.f32 %v172_v36, 0.0  ;;  %v57_v32 = vld [vmem:[%s893_s0 + $0x158] sm:$0xff]  ;;  %v58_v36 = vld [vmem:[%s893_s0 + $0x160] sm:$0xff] }
  0x17   :  { %292 = vst [vmem:[%s896_s3 + $0x70] sm:$0xff] %v228_v19  ;;  %v176_v52 = vadd.f32 %v379_v2, %v108_v37  ;;  %v112_v53 = vmul.f32 %v374_v1, %v44_v42  ;;  %v237_v55 = vmax.f32 %v173_v40, 0.0  ;;  %v177_v56 = vadd.f32 %v379_v2, %v109_v41  ;;  %v59_v40 = vld [vmem:[%s893_s0 + $0x168] sm:$0xff] }
  0x18   :  { %293 = vst [vmem:[%s896_s3 + $0x78] sm:$0xff] %v229_v23  ;;  %v113_v57 = vmul.f32 %v374_v1, %v45_v46  ;;  %v238_v59 = vmax.f32 %v174_v44, 0.0  ;;  %v178_v60 = vadd.f32 %v379_v2, %v110_v45  ;;  %v114_v61 = vmul.f32 %v374_v1, %v46_v50  ;;  %v60_v44 = vld [vmem:[%s893_s0 + $0x170] sm:$0xff] }
  0x19   :  { %294 = vst [vmem:[%s896_s3 + $0x80] sm:$0xff] %v230_v27  ;;  %v239_v63 = vmax.f32 %v175_v48, 0.0  ;;  %v179_v0 = vadd.f32 %v379_v2, %v111_v49  ;;  %v115_v3 = vmul.f32 %v374_v1, %v47_v54  ;;  %v240_v5 = vmax.f32 %v176_v52, 0.0  ;;  %v61_v48 = vld [vmem:[%s893_s0 + $0x178] sm:$0xff]  ;;  %v62_v52 = vld [vmem:[%s893_s0 + $0x180] sm:$0xff] }
  0x1a   :  { %295 = vst [vmem:[%s896_s3 + $0x88] sm:$0xff] %v231_v31  ;;  %v180_v6 = vadd.f32 %v379_v2, %v112_v53  ;;  %v116_v7 = vmul.f32 %v374_v1, %v48_v58  ;;  %v241_v9 = vmax.f32 %v177_v56, 0.0  ;;  %v181_v10 = vadd.f32 %v379_v2, %v113_v57  ;;  %v63_v56 = vld [vmem:[%s893_s0 + $0x188] sm:$0xff] }
  0x1b   :  { %296 = vst [vmem:[%s896_s3 + $0x90] sm:$0xff] %v232_v35  ;;  %v117_v11 = vmul.f32 %v374_v1, %v49_v62  ;;  %v242_v13 = vmax.f32 %v178_v60, 0.0  ;;  %v182_v14 = vadd.f32 %v379_v2, %v114_v61  ;;  %v118_v15 = vmul.f32 %v374_v1, %v50_v4  ;;  %v64_v60 = vld [vmem:[%s893_s0 + $0x190] sm:$0xff] }
  0x1c   :  { %297 = vst [vmem:[%s896_s3 + $0x98] sm:$0xff] %v233_v39  ;;  %v243_v17 = vmax.f32 %v179_v0, 0.0  ;;  %v183_v18 = vadd.f32 %v379_v2, %v115_v3  ;;  %v119_v19 = vmul.f32 %v374_v1, %v51_v8  ;;  %v244_v21 = vmax.f32 %v180_v6, 0.0  ;;  %v65_v0 = vld [vmem:[%s893_s0 + $0x198] sm:$0xff] }
  0x1d   :  { %298 = vst [vmem:[%s896_s3 + $0xa0] sm:$0xff] %v234_v43  ;;  %v184_v22 = vadd.f32 %v379_v2, %v116_v7  ;;  %v120_v23 = vmul.f32 %v374_v1, %v52_v12  ;;  %v245_v25 = vmax.f32 %v181_v10, 0.0  ;;  %v185_v26 = vadd.f32 %v379_v2, %v117_v11  ;;  %v77_v3 = vld [vmem:[%s893_s0 + $0x1f8] sm:$0xff]  ;;  %v66_v7 = vld [vmem:[%s893_s0 + $0x1a0] sm:$0xff]  ;;  %v67_v11 = vld [vmem:[%s893_s0 + $0x1a8] sm:$0xff] }
  0x1e   :  { %299 = vst [vmem:[%s896_s3 + $0xa8] sm:$0xff] %v235_v47  ;;  %v121_v27 = vmul.f32 %v374_v1, %v53_v16  ;;  %v246_v29 = vmax.f32 %v182_v14, 0.0  ;;  %v186_v30 = vadd.f32 %v379_v2, %v118_v15  ;;  %v122_v31 = vmul.f32 %v374_v1, %v54_v20  ;;  %v68_v15 = vld [vmem:[%s893_s0 + $0x1b0] sm:$0xff]  ;;  %v69_v20 = vld [vmem:[%s893_s0 + $0x1b8] sm:$0xff] }
  0x1f   :  { %300 = vst [vmem:[%s896_s3 + $0xb0] sm:$0xff] %v236_v51  ;;  %v247_v33 = vmax.f32 %v183_v18, 0.0  ;;  %v187_v34 = vadd.f32 %v379_v2, %v119_v19  ;;  %v123_v35 = vmul.f32 %v374_v1, %v55_v24  ;;  %v248_v37 = vmax.f32 %v184_v22, 0.0  ;;  %v70_v24 = vld [vmem:[%s893_s0 + $0x1c0] sm:$0xff] }
  0x20   :  { %301 = vst [vmem:[%s896_s3 + $0xb8] sm:$0xff] %v237_v55  ;;  %v188_v38 = vadd.f32 %v379_v2, %v120_v23  ;;  %v124_v39 = vmul.f32 %v374_v1, %v56_v28  ;;  %v249_v41 = vmax.f32 %v185_v26, 0.0  ;;  %v189_v42 = vadd.f32 %v379_v2, %v121_v27 }
  0x21   :  { %302 = vst [vmem:[%s896_s3 + $0xc0] sm:$0xff] %v238_v59  ;;  %v125_v43 = vmul.f32 %v374_v1, %v57_v32  ;;  %v250_v45 = vmax.f32 %v186_v30, 0.0  ;;  %v190_v46 = vadd.f32 %v379_v2, %v122_v31  ;;  %v126_v47 = vmul.f32 %v374_v1, %v58_v36 }
  0x22   :  { %303 = vst [vmem:[%s896_s3 + $0xc8] sm:$0xff] %v239_v63  ;;  %v251_v49 = vmax.f32 %v187_v34, 0.0  ;;  %v191_v50 = vadd.f32 %v379_v2, %v123_v35  ;;  %v127_v51 = vmul.f32 %v374_v1, %v59_v40  ;;  %v252_v53 = vmax.f32 %v188_v38, 0.0 }
  0x23   :  { %304 = vst [vmem:[%s896_s3 + $0xd0] sm:$0xff] %v240_v5  ;;  %v192_v54 = vadd.f32 %v379_v2, %v124_v39  ;;  %v128_v55 = vmul.f32 %v374_v1, %v60_v44  ;;  %v253_v57 = vmax.f32 %v189_v42, 0.0  ;;  %v193_v58 = vadd.f32 %v379_v2, %v125_v43 }
  0x24   :  { %305 = vst [vmem:[%s896_s3 + $0xd8] sm:$0xff] %v241_v9  ;;  %v129_v59 = vmul.f32 %v374_v1, %v61_v48  ;;  %v254_v61 = vmax.f32 %v190_v46, 0.0  ;;  %v194_v62 = vadd.f32 %v379_v2, %v126_v47  ;;  %v130_v63 = vmul.f32 %v374_v1, %v62_v52 }
  0x25   :  { %306 = vst [vmem:[%s896_s3 + $0xe0] sm:$0xff] %v242_v13  ;;  %v255_v4 = vmax.f32 %v191_v50, 0.0  ;;  %v195_v5 = vadd.f32 %v379_v2, %v127_v51  ;;  %v131_v6 = vmul.f32 %v374_v1, %v63_v56  ;;  %v256_v8 = vmax.f32 %v192_v54, 0.0 }
  0x26   :  { %307 = vst [vmem:[%s896_s3 + $0xe8] sm:$0xff] %v243_v17  ;;  %v196_v9 = vadd.f32 %v379_v2, %v128_v55  ;;  %v132_v10 = vmul.f32 %v374_v1, %v64_v60  ;;  %v257_v12 = vmax.f32 %v193_v58, 0.0  ;;  %v197_v13 = vadd.f32 %v379_v2, %v129_v59 }
  0x27   :  { %308 = vst [vmem:[%s896_s3 + $0xf0] sm:$0xff] %v244_v21  ;;  %v133_v14 = vmul.f32 %v374_v1, %v65_v0  ;;  %v145_v16 = vmul.f32 %v374_v1, %v77_v3  ;;  %v258_v17 = vmax.f32 %v194_v62, 0.0  ;;  %v198_v18 = vadd.f32 %v379_v2, %v130_v63 }
  0x28   :  { %309 = vst [vmem:[%s896_s3 + $0xf8] sm:$0xff] %v245_v25  ;;  %v134_v19 = vmul.f32 %v374_v1, %v66_v7  ;;  %v259_v21 = vmax.f32 %v195_v5, 0.0  ;;  %v199_v22 = vadd.f32 %v379_v2, %v131_v6  ;;  %v135_v23 = vmul.f32 %v374_v1, %v67_v11 }
  0x29   :  { %310 = vst [vmem:[%s896_s3 + $0x100] sm:$0xff] %v246_v29  ;;  %v784_v25 = vadd.f32 %v379_v2, %v145_v16  ;;  %v260_v26 = vmax.f32 %v196_v9, 0.0  ;;  %v200_v27 = vadd.f32 %v379_v2, %v132_v10  ;;  %v136_v28 = vmul.f32 %v374_v1, %v68_v15  ;;  %v71_v29 = vld [vmem:[%s893_s0 + $0x1c8] sm:$0xff] }
  0x2a   :  { %311 = vst [vmem:[%s896_s3 + $0x108] sm:$0xff] %v247_v33  ;;  %v261_v30 = vmax.f32 %v197_v13, 0.0  ;;  %v201_v31 = vadd.f32 %v379_v2, %v133_v14  ;;  %v137_v32 = vmul.f32 %v374_v1, %v69_v20  ;;  %v72_v33 = vld [vmem:[%s893_s0 + $0x1d0] sm:$0xff]  ;;  %v262_v34 = vmax.f32 %v198_v18, 0.0 }
  0x2b   :  { %312 = vst [vmem:[%s896_s3 + $0x110] sm:$0xff] %v248_v37  ;;  %v202_v35 = vadd.f32 %v379_v2, %v134_v19  ;;  %v138_v36 = vmul.f32 %v374_v1, %v70_v24  ;;  %v73_v37 = vld [vmem:[%s893_s0 + $0x1d8] sm:$0xff]  ;;  %v263_v38 = vmax.f32 %v199_v22, 0.0  ;;  %v203_v39 = vadd.f32 %v379_v2, %v135_v23 }
  0x2c   :  { %313 = vst [vmem:[%s896_s3 + $0x118] sm:$0xff] %v249_v41  ;;  %v139_v40 = vmul.f32 %v374_v1, %v71_v29  ;;  %v74_v41 = vld [vmem:[%s893_s0 + $0x1e0] sm:$0xff]  ;;  %v264_v42 = vmax.f32 %v200_v27, 0.0  ;;  %v204_v43 = vadd.f32 %v379_v2, %v136_v28  ;;  %v140_v44 = vmul.f32 %v374_v1, %v72_v33 }
  0x2d   :  { %314 = vst [vmem:[%s896_s3 + $0x120] sm:$0xff] %v250_v45  ;;  %v75_v45 = vld [vmem:[%s893_s0 + $0x1e8] sm:$0xff]  ;;  %v265_v46 = vmax.f32 %v201_v31, 0.0  ;;  %v205_v47 = vadd.f32 %v379_v2, %v137_v32  ;;  %v141_v48 = vmul.f32 %v374_v1, %v73_v37  ;;  %v266_v50 = vmax.f32 %v202_v35, 0.0 }
  0x2e   :  { %315 = vst [vmem:[%s896_s3 + $0x128] sm:$0xff] %v251_v49  ;;  %v76_v49 = vld [vmem:[%s893_s0 + $0x1f0] sm:$0xff]  ;;  %v206_v51 = vadd.f32 %v379_v2, %v138_v36  ;;  %v142_v52 = vmul.f32 %v374_v1, %v74_v41  ;;  %v207_v54 = vadd.f32 %v379_v2, %v139_v40  ;;  %v143_v55 = vmul.f32 %v374_v1, %v75_v45 }
  0x2f   :  { %316 = vst [vmem:[%s896_s3 + $0x130] sm:$0xff] %v252_v53  ;;  %v267_v53 = vmax.f32 %v203_v39, 0.0  ;;  %v268_v56 = vmax.f32 %v204_v43, 0.0  ;;  %v144_v58 = vmul.f32 %v374_v1, %v76_v49  ;;  %v269_v59 = vmax.f32 %v205_v47, 0.0 }
  0x30   :  { %317 = vst [vmem:[%s896_s3 + $0x138] sm:$0xff] %v253_v57  ;;  %v208_v57 = vadd.f32 %v379_v2, %v140_v44  ;;  %v209_v60 = vadd.f32 %v379_v2, %v141_v48  ;;  %v210_v62 = vadd.f32 %v379_v2, %v142_v52  ;;  %v271_v63 = vmax.f32 %v207_v54, 0.0 }
  0x31   :  { %318 = vst [vmem:[%s896_s3 + $0x140] sm:$0xff] %v254_v61  ;;  %v270_v61 = vmax.f32 %v206_v51, 0.0  ;;  %v211_v1 = vadd.f32 %v379_v2, %v143_v55  ;;  %v212_v3 = vadd.f32 %v379_v2, %v144_v58  ;;  %v277_v7 = vmax.f32 %v784_v25, 0.0 }
  0x32   :  { %319 = vst [vmem:[%s896_s3 + $0x148] sm:$0xff] %v255_v4  ;;  %v272_v0 = vmax.f32 %v208_v57, 0.0  ;;  %v273_v4 = vmax.f32 %v209_v60, 0.0  ;;  %v274_v5 = vmax.f32 %v210_v62, 0.0 }
  0x33   :  { %320 = vst [vmem:[%s896_s3 + $0x150] sm:$0xff] %v256_v8  ;;  %v275_v6 = vmax.f32 %v211_v1, 0.0  ;;  %v276_v2 = vmax.f32 %v212_v3, 0.0 }
  0x34   :  { %321 = vst [vmem:[%s896_s3 + $0x158] sm:$0xff] %v257_v12 }
  0x35   :  { %322 = vst [vmem:[%s896_s3 + $0x160] sm:$0xff] %v258_v17 }
  0x36   :  { %323 = vst [vmem:[%s896_s3 + $0x168] sm:$0xff] %v259_v21 }
  0x37   :  { %324 = vst [vmem:[%s896_s3 + $0x170] sm:$0xff] %v260_v26 }
  0x38   :  { %325 = vst [vmem:[%s896_s3 + $0x178] sm:$0xff] %v261_v30 }
  0x39   :  { %326 = vst [vmem:[%s896_s3 + $0x180] sm:$0xff] %v262_v34 }
  0x3a   :  { %327 = vst [vmem:[%s896_s3 + $0x188] sm:$0xff] %v263_v38 }
  0x3b   :  { %328 = vst [vmem:[%s896_s3 + $0x190] sm:$0xff] %v264_v42 }
  0x3c   :  { %329 = vst [vmem:[%s896_s3 + $0x198] sm:$0xff] %v265_v46 }
  0x3d   :  { %330 = vst [vmem:[%s896_s3 + $0x1a0] sm:$0xff] %v266_v50 }
  0x3e   :  { %331 = vst [vmem:[%s896_s3 + $0x1a8] sm:$0xff] %v267_v53 }
  0x3f   :  { %332 = vst [vmem:[%s896_s3 + $0x1b0] sm:$0xff] %v268_v56 }
  0x40   :  { %333 = vst [vmem:[%s896_s3 + $0x1b8] sm:$0xff] %v269_v59 }
  0x41   :  { %334 = vst [vmem:[%s896_s3 + $0x1c0] sm:$0xff] %v270_v61 }
  0x42   :  { %335 = vst [vmem:[%s896_s3 + $0x1c8] sm:$0xff] %v271_v63 }
  0x43   :  { %336 = vst [vmem:[%s896_s3 + $0x1d0] sm:$0xff] %v272_v0 }
  0x44   :  { %337 = vst [vmem:[%s896_s3 + $0x1d8] sm:$0xff] %v273_v4 }
  0x45   :  { %338 = vst [vmem:[%s896_s3 + $0x1e0] sm:$0xff] %v274_v5 }
  0x46   :  { %339 = vst [vmem:[%s896_s3 + $0x1e8] sm:$0xff] %v275_v6 }
  0x47   :  { %340 = vst [vmem:[%s896_s3 + $0x1f0] sm:$0xff] %v276_v2 }
  0x48   :  { %341 = vst [vmem:[%s896_s3 + $0x1f8] sm:$0xff] %v277_v7 }

// kernel: conv_block_forward.4
= control target key start
LH: loop header
LB: loop body
LE: loop exit
PB: predicated region body
PF: predicated region fallthrough
CT: control target
= control target key end

     0   :  { %s2601_s18 = smov 0   ;;  %s2603_s19 = smov 0   ;;  %s4040_s0 = inlined_call_operand.vmem [shape: f32[2,16,16,128], index: 0, kind: input, shape index: {}]   ;;  %s4041_s1 = inlined_call_operand.vmem [shape: f32[3,384,128], index: 1, kind: input, shape index: {}]   ;;  %s4042_s2 = inlined_call_operand.vmem [shape: f32[1,128], index: 2, kind: input, shape index: {}]   ;;  %s4043_s3 = inlined_call_operand.vmem [shape: f32[1,128], index: 3, kind: input, shape index: {}]   ;;  %s4044_s4 = inlined_call_operand.vmem [shape: f32[2,16,16,128], index: 4, kind: output, shape index: {0}]   ;;  %s4045_s5 = inlined_call_operand.vmem [shape: f32[4,2,128], index: 5, kind: output, shape index: {1}]  }
   0x1   :  { %s2605_s20 = smov 0   ;;  %s2607_s21 = smov 0  }
   0x2   :  { %s2609_s22 = smov 0  }
   0x3 LB: > { %s25_s23 = sadd.s32 1, %s2561_s20  ;;  %s28_s24 = sadd.s32 1, %s2565_s21  ;;  %s2569_s22 = sphi %s2609_s22, %s16_s22   ;;  %s2565_s21 = sphi %s2607_s21, %s4084_s21   ;;  %s2561_s20 = sphi %s2605_s20, %s4083_s20   ;;  %s2557_s19 = sphi %s2603_s19, %s4082_s19   ;;  %s2553_s18 = sphi %s2601_s18, %s4081_s18  }
   0x4   : > { %p26_p0 = scmp.ge.s32.totalorder %s25_s23, 2  ;;  %p2177_p1 = scmp.ge.s32.totalorder %s2569_s22, 1 }
   0x5   : > { %p174_p2 = scmp.lt.s32.totalorder %s2569_s22, 5 }
   0x6   : > { %s4086_s23 = smov (%p26_p0, %s25_s23), 0  ;;  %s4088_s24 = smov (!%p26_p0, %s28_s24), %s2565_s21 }
   0x7   : > { %p175_p3 = pnand %p2177_p1, %p174_p2  ;;  %p30_p4 = scmp.ge.s32.totalorder %s4088_s24, 2 }
   0x9   : > { %s4090_s24 = smov (%p30_p4, %s4088_s24), 0  ;;  %178 = sbr.rel (%p175_p3) target bundleno = 602 (0x25a), region = 32 }
   0xe   : > { %s2636_s25 = sshll.u32 %s2553_s18, 3  ;;  %p207_p5 = scmp.lt.s32.totalorder %s2557_s19, 1 }
   0xf   : > { %p209_p6 = scmp.lt.s32.totalorder %s2636_s25, 15  ;;  %s2182_s26 = sshll.u32 %s2557_s19, 1 }
  0x10   : > { %s208_s27 = scalar_select %p207_p5, %s2557_s19, 1 }
  0x11   : > { %s210_s28 = scalar_select %p209_p6, %s2636_s25, 15 }
  0x12   : > { %s2180_s29 = sshll.u32 %s208_s27, 5  ;;  %s218_s30 = sadd.s32 %s2553_s18, %s2182_s26 }
  0x13   : > { %s2179_s6 = sshll.u32 %s210_s28, 1  ;;  %p219_p7 = scmp.lt.s32.totalorder %s218_s30, 3 }
  0x14   : > { %s213_s7 = sadd.s32 %s2180_s29, %s2179_s6  ;;  %s2645_s8 = sand.u32 1, %s2553_s18 }
  0x15   : > { %s2181_s9 = sshll.u32 %s213_s7, 3  ;;  %s4092_s30 = smov (!%p219_p7, %s218_s30), 3 }
  0x16   : > { %s2650_s12 = scalar_lea.vmem %s4044_s4, %s2181_s9  ;;  %s2183_s13 = sshll.u32 %s4092_s30, 1 }
  0x17   : > { %s2655_s16 = scalar_lea.vmem %s4045_s5, %s2183_s13  ;;  %p2184_p8 = scmp.ne.s32.totalorder %s2553_s18, 0 }
  0x18   : > { %s2418_s17 = sshll.u32 (!%p2184_p8), %s2553_s18, 7  ;;  %s2187_s26 = sshll.u32 (!%p2184_p8), %s2557_s19, 8 }
  0x19   : > { %229 = sbr.rel (%p2184_p8) target bundleno = 69 (0x45), region = 36  ;;  %s233_s27 = sadd.s32 (!%p2184_p8), %s2418_s17, %s2187_s26 }
  0x1a   : > { %s235_s28 = smul.u32 (!%p2184_p8), 160, %s2645_s8  ;;  %s2666_s6 = scalar_lea.vmem (!%p2184_p8), %s4040_s0, %s233_s27 }
  0x1b   : > { %s238_s7 = smul.u32 (!%p2184_p8), 3, %s2645_s8 }
  0x1c   : > { %s2672_s9 = scalar_lea.vmem (!%p2184_p8), [#allocation2], %s235_s28 }
  0x1d   : > { %s239_s10 = scalar_lea.sflag (!%p2184_p8), [#allocation3], %s238_s7 }
  0x1e   : > { %v250_v0 = vld [vmem:[%s2666_s6] sm:$0xff]  ;;  %v252_v1 = vld [vmem:[%s2666_s6 + $0x8] sm:$0xff]  ;;  %v254_v2 = vld [vmem:[%s2666_s6 + $0x10] sm:$0xff] }
  0x1f   : > { %2188 = vst [vmem:[%s2672_s9 + $0x10] sm:$0xff] %v250_v0  ;;  %v256_v3 = vld [vmem:[%s2666_s6 + $0x18] sm:$0xff]  ;;  %v258_v4 = vld [vmem:[%s2666_s6 + $0x20] sm:$0xff]  ;;  %v260_v5 = vld [vmem:[%s2666_s6 + $0x28] sm:$0xff] }
  0x20   : > { %2189 = vst [vmem:[%s2672_s9 + $0x18] sm:$0xff] %v252_v1  ;;  %v262_v6 = vld [vmem:[%s2666_s6 + $0x30] sm:$0xff]  ;;  %v264_v7 = vld [vmem:[%s2666_s6 + $0x38] sm:$0xff]  ;;  %v266_v8 = vld [vmem:[%s2666_s6 + $0x40] sm:$0xff] }
  0x21   : > { %2190 = vst [vmem:[%s2672_s9 + $0x20] sm:$0xff] %v254_v2  ;;  %v268_v9 = vld [vmem:[%s2666_s6 + $0x48] sm:$0xff]  ;;  %v270_v10 = vld [vmem:[%s2666_s6 + $0x50] sm:$0xff]  ;;  %v272_v11 = vld [vmem:[%s2666_s6 + $0x58] sm:$0xff] }
  0x22   : > { %2191 = vst [vmem:[%s2672_s9 + $0x28] sm:$0xff] %v256_v3  ;;  %v274_v12 = vld [vmem:[%s2666_s6 + $0x60] sm:$0xff]  ;;  %v276_v13 = vld [vmem:[%s2666_s6 + $0x68] sm:$0xff]  ;;  %v278_v14 = vld [vmem:[%s2666_s6 + $0x70] sm:$0xff] }
  0x23   : > { %2192 = vst [vmem:[%s2672_s9 + $0x30] sm:$0xff] %v258_v4  ;;  %v280_v15 = vld [vmem:[%s2666_s6 + $0x78] sm:$0xff] }
  0x24   : > { %2193 = vst [vmem:[%s2672_s9 + $0x38] sm:$0xff] %v260_v5 }
  0x25   : > { %2194 = vst [vmem:[%s2672_s9 + $0x40] sm:$0xff] %v262_v6 }
  0x26   : > { %2195 = vst [vmem:[%s2672_s9 + $0x48] sm:$0xff] %v264_v7 }
  0x27   : > { %2196 = vst [vmem:[%s2672_s9 + $0x50] sm:$0xff] %v266_v8 }
  0x28   : > { %2197 = vst [vmem:[%s2672_s9 + $0x58] sm:$0xff] %v268_v9 }
  0x29   : > { %2198 = vst [vmem:[%s2672_s9 + $0x60] sm:$0xff] %v270_v10 }
  0x2a   : > { %2199 = vst [vmem:[%s2672_s9 + $0x68] sm:$0xff] %v272_v11 }
  0x2b   : > { %2200 = vst [vmem:[%s2672_s9 + $0x70] sm:$0xff] %v274_v12 }
  0x2c   : > { %2201 = vst [vmem:[%s2672_s9 + $0x78] sm:$0xff] %v276_v13 }
  0x2d   : > { %2202 = vst [vmem:[%s2672_s9 + $0x80] sm:$0xff] %v278_v14 }
  0x2e   : > { %2203 = vst [vmem:[%s2672_s9 + $0x88] sm:$0xff] %v280_v15 }
  0x2f   : > { %287 = vsyncadd %s239_s10, 2048  ;;  %p2204_p9 = scmp.le.s32.totalorder %s2553_s18, 0 }
  0x30   : > { %s2205_s11 = sadd.s32 (!%p2204_p9), 4294967295, %s2636_s25  ;;  %s2045_s13 = scalar_lea.sflag (!%p2204_p9), %s239_s10, 1 [#allocation3] }
  0x31   : > { %291 = sbr.rel (%p2204_p9) target bundleno = 58 (0x3a), region = 59  ;;  %s2206_s14 = sshll.u32 (!%p2204_p9), %s2205_s11, 4 }
  0x32   : > { %s294_s15 = sadd.s32 (!%p2204_p9), %s2206_s14, %s2187_s26 }
  0x33   : > { %s295_s28 = scalar_lea.vmem (!%p2204_p9), %s4040_s0, %s294_s15 }
  0x36   : > { %v309_v16 = vld [vmem:[%s295_s28] sm:$0xff]  ;;  %v311_v17 = vld [vmem:[%s295_s28 + $0x8] sm:$0xff] }
  0x37   : > { %310 = vst [vmem:[%s2672_s9] sm:$0xff] %v309_v16 }
  0x38   : > { %312 = vst [vmem:[%s2672_s9 + $0x8] sm:$0xff] %v311_v17 }
  0x39   : > { %318 = vsyncadd %s2045_s13, 256 }
  0x3a PF: > { %p2207_p10 = scmp.ge.s32.totalorder %s2553_s18, 1 }
  0x3b   : > { %s2057_s29 = scalar_lea.sflag (!%p2207_p10), %s239_s10, 2 [#allocation3] }
  0x3c   : > { %322 = sbr.rel (%p2207_p10) target bundleno = 69 (0x45), region = 82 }
  0x41   : > { %v2211_v18 = vld [vmem:[%s2666_s6 + $0x80] sm:$0xff]  ;;  %v2213_v19 = vld [vmem:[%s2666_s6 + $0x88] sm:$0xff] }
  0x42   : > { %2212 = vst [vmem:[%s2672_s9 + $0x90] sm:$0xff] %v2211_v18 }
  0x43   : > { %2214 = vst [vmem:[%s2672_s9 + $0x98] sm:$0xff] %v2213_v19 }
  0x44   : > { %350 = vsyncadd %s2057_s29, 256 }
  0x45 PF: > { %s2720_s26 = sadd.s32 1, %s2553_s18 }
  0x46   : > { %p2215_p11 = scmp.ge.s32.totalorder %s2720_s26, 2 }
  0x47   : > { %s356_s30 = sand.u32 (!%p2215_p11), 1, %s2720_s26  ;;  %s2421_s7 = sadd.s32 (!%p2215_p11), 8, %s2636_s25 }
  0x48   : > { %355 = sbr.rel (%p2215_p11) target bundleno = 116 (0x74), region = 105  ;;  %s2217_s10 = sshll.u32 (!%p2215_p11), %s2557_s19, 8 }
  0x49   : > { %s2218_s6 = sshll.u32 (!%p2215_p11), %s2553_s18, 7  ;;  %s362_s11 = smul.u32 (!%p2215_p11), 160, %s356_s30 }
  0x4a   : > { %s2060_s9 = sadd.s32 (!%p2215_p11), %s2218_s6, %s2217_s10  ;;  %s2734_s17 = smul.u32 (!%p2215_p11), 3, %s356_s30 }
  0x4b   : > { %s2732_s15 = scalar_lea.vmem (!%p2215_p11), %s4040_s0, %s2060_s9  ;;  %s2739_s27 = scalar_lea.vmem (!%p2215_p11), [#allocation2], %s362_s11 }
  0x4c   : > { %s366_s28 = scalar_lea.sflag (!%p2215_p11), [#allocation3], %s2734_s17 }
  0x4d   : > { %v2220_v20 = vld [vmem:[%s2732_s15 + $0x80] sm:$0xff]  ;;  %v2222_v21 = vld [vmem:[%s2732_s15 + $0x88] sm:$0xff]  ;;  %v2224_v22 = vld [vmem:[%s2732_s15 + $0x90] sm:$0xff] }
  0x4e   : > { %2221 = vst [vmem:[%s2739_s27 + $0x10] sm:$0xff] %v2220_v20  ;;  %v2226_v23 = vld [vmem:[%s2732_s15 + $0x98] sm:$0xff]  ;;  %v2228_v24 = vld [vmem:[%s2732_s15 + $0xa0] sm:$0xff]  ;;  %v2230_v25 = vld [vmem:[%s2732_s15 + $0xa8] sm:$0xff] }
  0x4f   : > { %2223 = vst [vmem:[%s2739_s27 + $0x18] sm:$0xff] %v2222_v21  ;;  %v2232_v26 = vld [vmem:[%s2732_s15 + $0xb0] sm:$0xff]  ;;  %v2234_v27 = vld [vmem:[%s2732_s15 + $0xb8] sm:$0xff]  ;;  %v2236_v28 = vld [vmem:[%s2732_s15 + $0xc0] sm:$0xff] }
  0x50   : > { %2225 = vst [vmem:[%s2739_s27 + $0x20] sm:$0xff] %v2224_v22  ;;  %v2238_v29 = vld [vmem:[%s2732_s15 + $0xc8] sm:$0xff]  ;;  %v2240_v30 = vld [vmem:[%s2732_s15 + $0xd0] sm:$0xff]  ;;  %v2242_v31 = vld [vmem:[%s2732_s15 + $0xd8] sm:$0xff] }
  0x51   : > { %2227 = vst [vmem:[%s2739_s27 + $0x28] sm:$0xff] %v2226_v23  ;;  %v2244_v32 = vld [vmem:[%s2732_s15 + $0xe0] sm:$0xff]  ;;  %v2246_v33 = vld [vmem:[%s2732_s15 + $0xe8] sm:$0xff]  ;;  %v2248_v34 = vld [vmem:[%s2732_s15 + $0xf0] sm:$0xff] }
  0x52   : > { %2229 = vst [vmem:[%s2739_s27 + $0x30] sm:$0xff] %v2228_v24  ;;  %v2250_v35 = vld [vmem:[%s2732_s15 + $0xf8] sm:$0xff] }
  0x53   : > { %2231 = vst [vmem:[%s2739_s27 + $0x38] sm:$0xff] %v2230_v25 }
  0x54   : > { %2233 = vst [vmem:[%s2739_s27 + $0x40] sm:$0xff] %v2232_v26 }
  0x55   : > { %2235 = vst [vmem:[%s2739_s27 + $0x48] sm:$0xff] %v2234_v27 }
  0x56   : > { %2237 = vst [vmem:[%s2739_s27 + $0x50] sm:$0xff] %v2236_v28 }
  0x57   : > { %2239 = vst [vmem:[%s2739_s27 + $0x58] sm:$0xff] %v2238_v29 }
  0x58   : > { %2241 = vst [vmem:[%s2739_s27 + $0x60] sm:$0xff] %v2240_v30 }
  0x59   : > { %2243 = vst [vmem:[%s2739_s27 + $0x68] sm:$0xff] %v2242_v31 }
  0x5a   : > { %2245 = vst [vmem:[%s2739_s27 + $0x70] sm:$0xff] %v2244_v32 }
  0x5b   : > { %2247 = vst [vmem:[%s2739_s27 + $0x78] sm:$0xff] %v2246_v33 }
  0x5c   : > { %2249 = vst [vmem:[%s2739_s27 + $0x80] sm:$0xff] %v2248_v34 }
  0x5d   : > { %2251 = vst [vmem:[%s2739_s27 + $0x88] sm:$0xff] %v2250_v35 }
  0x5e   : > { %414 = vsyncadd %s366_s28, 2048  ;;  %p2252_p12 = scmp.le.s32.totalorder %s2720_s26, 0 }
  0x5f   : > { %s2253_s29 = sadd.s32 (!%p2252_p12), 4294967295, %s2421_s7  ;;  %s2076_s30 = scalar_lea.sflag (!%p2252_p12), %s366_s28, 1 [#allocation3] }
  0x60   : > { %418 = sbr.rel (%p2252_p12) target bundleno = 105 (0x69), region = 128  ;;  %s2254_s6 = sshll.u32 (!%p2252_p12), %s2253_s29, 4 }
  0x61   : > { %s421_s9 = sadd.s32 (!%p2252_p12), %s2254_s6, %s2217_s10 }
  0x62   : > { %s422_s14 = scalar_lea.vmem (!%p2252_p12), %s4040_s0, %s421_s9 }
  0x65   : > { %v436_v36 = vld [vmem:[%s422_s14] sm:$0xff]  ;;  %v438_v37 = vld [vmem:[%s422_s14 + $0x8] sm:$0xff] }
  0x66   : > { %437 = vst [vmem:[%s2739_s27] sm:$0xff] %v436_v36 }
  0x67   : > { %439 = vst [vmem:[%s2739_s27 + $0x8] sm:$0xff] %v438_v37 }
  0x68   : > { %445 = vsyncadd %s2076_s30, 256 }
  0x69 PF: > { %p2255_p13 = scmp.ge.s32.totalorder %s2720_s26, 1 }
  0x6a   : > { %s2088_s17 = scalar_lea.sflag (!%p2255_p13), %s366_s28, 2 [#allocation3] }
  0x6b   : > { %449 = sbr.rel (%p2255_p13) target bundleno = 116 (0x74), region = 151 }
  0x70   : > { %v2259_v38 = vld [vmem:[%s2732_s15 + $0x100] sm:$0xff]  ;;  %v2261_v39 = vld [vmem:[%s2732_s15 + $0x108] sm:$0xff] }
  0x71   : > { %2260 = vst [vmem:[%s2739_s27 + $0x90] sm:$0xff] %v2259_v38 }
  0x72   : > { %2262 = vst [vmem:[%s2739_s27 + $0x98] sm:$0xff] %v2261_v39 }
  0x73   : > { %477 = vsyncadd %s2088_s17, 256 }
  0x74 PF: > { %s478_s19 = smul.u32 3, %s2645_s8 }
  0x76   : > { %s479_s7 = scalar_lea.sflag [#allocation3], %s478_s19 }
  0x77   : > { %2541 = dma.done.wait %s479_s7, 2048 }
  0x78   : > { %2542 = vsyncadd %s479_s7, 4294965248  ;;  %p2475_p0 = scmp.gt.s32.totalorder %s2553_s18, 0  ;;  %s2093_s26 = scalar_lea.sflag %s479_s7, 1 [#allocation3] }
  0x7a   : > { %2544 = dma.done.wait (%p2475_p0), %s2093_s26, 256 }
  0x7b   : > { %2546 = vsyncadd (%p2475_p0), %s2093_s26, 4294967040  ;;  %p2476_p1 = scmp.lt.s32.totalorder %s2553_s18, 1  ;;  %s2096_s10 = scalar_lea.sflag %s479_s7, 2 [#allocation3] }
  0x7d   : > { %2548 = dma.done.wait (%p2476_p1), %s2096_s10, 256 }
  0x7e   : > { %2550 = vsyncadd (%p2476_p1), %s2096_s10, 4294967040  ;;  %v953_v40 = vld [vmem:[%s4041_s1 + $0x78] sm:$0xff]  ;;  %v952_v41 = vld [vmem:[%s4041_s1 + $0x70] sm:$0xff]  ;;  %s504_s18 = smul.u32 160, %s2645_s8  ;;  %v2820_v49 = vstv %s2636_s25  ;;  %vm695_vm11 = vcmask 1040384  }
  0x7f   : > { %2423 = vmatpush.msra.mxu1 %v953_v40  ;;  %2424 = vmatpush.msra.mxu2 %v953_v40  ;;  %v951_v42 = vld [vmem:[%s4041_s1 + $0x68] sm:$0xff]  ;;  %v950_v43 = vld [vmem:[%s4041_s1 + $0x60] sm:$0xff]  ;;  %v949_v44 = vld [vmem:[%s4041_s1 + $0x58] sm:$0xff]  ;;  %v529_v53 = vadd.s32 2, %v2820_v49  ;;  %v531_v59 = vadd.s32 4, %v2820_v49  ;;  %v533_v62 = vadd.s32 6, %v2820_v49 }
  0x80   : > { %2425 = vmatpush.msra.mxu3 %v953_v40  ;;  %986 = vmatpush.msra.mxu0 %v953_v40  ;;  %v948_v45 = vld [vmem:[%s4041_s1 + $0x50] sm:$0xff]  ;;  %v2811_v46 = vld [vmem:[%s4042_s2] ss:$0 sm:$0xff]  ;;  %v947_v47 = vld [vmem:[%s4041_s1 + $0x48] sm:$0xff]  ;;  %s2816_s15 = scalar_lea.vmem [#allocation2], %s504_s18  ;;  %vm537_vm9 = vcmp.ge.s32.totalorder %v2820_v49, 1 }
  0x81   : > { %2426 = vmatpush.msra.mxu1 %v952_v41  ;;  %2427 = vmatpush.msra.mxu2 %v952_v41  ;;  %v510_v48 = vld [vmem:[%s2816_s15 + $0x20] sm:$0xff]  ;;  %v945_v56 = vld [vmem:[%s4041_s1 + $0x38] sm:$0xff]  ;;  %v944_v61 = vld [vmem:[%s4041_s1 + $0x30] sm:$0xff]  ;;  %vm539_vm0 = vcmp.ge.s32.totalorder %v529_v53, 1  ;;  %vm549_vm1 = vcmp.le.s32.totalorder %v529_v53, 16  ;;  %vm541_vm2 = vcmp.ge.s32.totalorder %v531_v59, 1 }
  0x82   : > { %2428 = vmatpush.msra.mxu3 %v952_v41  ;;  %987 = vmatpush.msra.mxu0 %v952_v41  ;;  %v514_v50 = vld [vmem:[%s2816_s15 + $0x40] sm:$0xff]  ;;  %v575_v54 = vmul.f32 %v2811_v46, %v510_v48  ;;  %v515_v63 = vld [vmem:[%s2816_s15 + $0x48] sm:$0xff]  ;;  %vm551_vm3 = vcmp.le.s32.totalorder %v531_v59, 16  ;;  %vm543_vm4 = vcmp.ge.s32.totalorder %v533_v62, 1  ;;  %vm553_vm5 = vcmp.le.s32.totalorder %v533_v62, 16  ;;  %vm2863_vm6 = vmand %vm539_vm0, %vm549_vm1 }
  0x83   : > { %2429 = vmatpush.msra.mxu1 %v951_v42  ;;  %2430 = vmatpush.msra.mxu2 %v951_v42  ;;  %v518_v51 = vld [vmem:[%s2816_s15 + $0x60] sm:$0xff]  ;;  %v579_v57 = vmul.f32 %v2811_v46, %v514_v50  ;;  %v511_v1 = vld [vmem:[%s2816_s15 + $0x28] sm:$0xff]  ;;  %v580_v7 = vmul.f32 %v2811_v46, %v515_v63  ;;  %v941_v13 = vld [vmem:[%s4041_s1 + $0x18] sm:$0xff]  ;;  %vm547_vm10 = vcmp.le.s32.totalorder %v2820_v49, 16  ;;  %v530_v53 = vadd.s32 3, %v2820_v49 }
  0x84   : > { %2431 = vmatpush.msra.mxu3 %v951_v42  ;;  %988 = vmatpush.msra.mxu0 %v951_v42  ;;  %v946_v52 = vld [vmem:[%s4041_s1 + $0x40] sm:$0xff]  ;;  %v583_v58 = vmul.f32 %v2811_v46, %v518_v51  ;;  %v519_v2 = vld [vmem:[%s2816_s15 + $0x68] sm:$0xff]  ;;  %v576_v9 = vmul.f32 %v2811_v46, %v511_v1  ;;  %vm2872_vm7 = vmand %vm541_vm2, %vm551_vm3  ;;  %v534_v1 = vadd.s32 7, %v2820_v49 }
  0x85   : > { %2432 = vmatpush.msra.mxu1 %v950_v43  ;;  %2433 = vmatpush.msra.mxu2 %v950_v43  ;;  %v2832_v55 = vld [vmem:[%s4043_s3] ss:$0 sm:$0xff]  ;;  %v943_v3 = vld [vmem:[%s4041_s1 + $0x28] sm:$0xff]  ;;  %v584_v10 = vmul.f32 %v2811_v46, %v519_v2  ;;  %vm2880_vm8 = vmand %vm543_vm4, %vm553_vm5  ;;  %vm540_vm14 = vcmp.ge.s32.totalorder %v530_v53, 1  ;;  %vm550_vm15 = vcmp.le.s32.totalorder %v530_v53, 16 }
  0x86   : > { %2434 = vmatpush.msra.mxu3 %v950_v43  ;;  %989 = vmatpush.msra.mxu0 %v950_v43  ;;  %v506_v60 = vld [vmem:[%s2816_s15] sm:$0xff]  ;;  %v599_v0 = vadd.f32 %v2832_v55, %v575_v54  ;;  %v603_v4 = vadd.f32 %v2832_v55, %v579_v57  ;;  %v607_v5 = vadd.f32 %v2832_v55, %v583_v58  ;;  %v507_v17 = vld [vmem:[%s2816_s15 + $0x8] sm:$0xff]  ;;  %v940_v21 = vld [vmem:[%s4041_s1 + $0x10] sm:$0xff]  ;;  %vm544_vm2 = vcmp.ge.s32.totalorder %v534_v1, 1 }
  0x87   : > { %2435 = vmatpush.msra.mxu1 %v949_v44  ;;  %2436 = vmatpush.msra.mxu2 %v949_v44  ;;  %v571_v6 = vmul.f32 %v2811_v46, %v506_v60  ;;  %v942_v8 = vld [vmem:[%s4041_s1 + $0x20] sm:$0xff]  ;;  %v604_v20 = vadd.f32 %v2832_v55, %v580_v7  ;;  %v600_v22 = vadd.f32 %v2832_v55, %v576_v9  ;;  %v939_v26 = vld [vmem:[%s4041_s1 + $0x8] sm:$0xff]  ;;  %vm2906_vm12 = vmand %vm537_vm9, %vm547_vm10  ;;  %v532_v60 = vadd.s32 5, %v2820_v49 }
  0x88   : > { %2437 = vmatpush.msra.mxu3 %v949_v44  ;;  %990 = vmatpush.msra.mxu0 %v949_v44  ;;  %v619_v12 = vmax.f32 %v599_v0, 0.0  ;;  %v623_v15 = vmax.f32 %v603_v4, 0.0  ;;  %v627_v16 = vmax.f32 %v607_v5, 0.0  ;;  %v608_v23 = vadd.f32 %v2832_v55, %v584_v10  ;;  %v938_v32 = vld [vmem:[%s4041_s1] sm:$0xff]  ;;  %v512_v36 = vld [vmem:[%s2816_s15 + $0x30] sm:$0xff]  ;;  %vm2917_vm13 = vmneg %vm695_vm11 }
  0x89   : > { %2438 = vmatpush.msra.mxu1 %v948_v45  ;;  %2439 = vmatpush.msra.mxu2 %v948_v45  ;;  %v595_v18 = vadd.f32 %v2832_v55, %v571_v6  ;;  %v572_v25 = vmul.f32 %v2811_v46, %v507_v17  ;;  %v624_v31 = vmax.f32 %v604_v20, 0.0  ;;  %v620_v34 = vmax.f32 %v600_v22, 0.0  ;;  %v516_v41 = vld [vmem:[%s2816_s15 + $0x50] sm:$0xff]  ;;  %v985_v44 = vld [vmem:[%s4041_s1 + $0x178] sm:$0xff]  ;;  %v983_v63 = vld [vmem:[%s4041_s1 + $0x168] sm:$0xff] }
  0x8a   : > { %2440 = vmatpush.msra.mxu3 %v948_v45  ;;  %991 = vmatpush.msra.mxu0 %v948_v45  ;;  %v659_v24 = vsel %vm2863_vm6, %v619_v12, 0.0  ;;  %v663_v27 = vsel %vm2872_vm7, %v623_v15, 0.0  ;;  %v667_v28 = vsel %vm2880_vm8, %v627_v16, 0.0  ;;  %v628_v35 = vmax.f32 %v608_v23, 0.0  ;;  %v520_v43 = vld [vmem:[%s2816_s15 + $0x70] sm:$0xff]  ;;  %v2297_v45 = vld [vmem:[%s4041_s1 + $0x1f8] sm:$0xff]  ;;  %vm3042_vm4 = vmand %vm540_vm14, %vm550_vm15 }
  0x8b   : > { %2441 = vmatpush.msra.mxu1 %v947_v47  ;;  %2442 = vmatpush.msra.mxu2 %v947_v47  ;;  %v615_v29 = vmax.f32 %v595_v18, 0.0  ;;  %v2913_v33 = vrot.slane %v659_v24, 7  ;;  %v2921_v38 = vrot.slane %v663_v27, 7  ;;  %v2923_v39 = vrot.slane %v667_v28, 7  ;;  %v969_v50 = vld [vmem:[%s4041_s1 + $0xf8] sm:$0xff]  ;;  %v2296_v57 = vld [vmem:[%s4041_s1 + $0x1f0] sm:$0xff] }
  0x8c   : > { %2443 = vmatpush.msra.mxu3 %v947_v47  ;;  %992 = vmatpush.msra.mxu0 %v947_v47  ;;  %v596_v40 = vadd.f32 %v2832_v55, %v572_v25  ;;  %v2938_v47 = vsel %vm2872_vm7, %v624_v31, 0.0  ;;  %v577_v48 = vmul.f32 %v2811_v46, %v512_v36  ;;  %v2949_v51 = vsel %vm2863_vm6, %v620_v34, 0.0  ;;  %v968_v62 = vld [vmem:[%s4041_s1 + $0xf0] sm:$0xff]  ;;  %v2295_v2 = vld [vmem:[%s4041_s1 + $0x1e8] sm:$0xff]  ;;  %v982_v4 = vld [vmem:[%s4041_s1 + $0x160] sm:$0xff] }
  0x8d   : > { %2444 = vmatpush.msra.mxu1 %v946_v52  ;;  %2445 = vmatpush.msra.mxu2 %v946_v52  ;;  %v655_v42 = vsel %vm2906_vm12, %v615_v29, 0.0  ;;  %v581_v54 = vmul.f32 %v2811_v46, %v516_v41  ;;  %v709_v0 = vrot.slane %v2938_v47, 7  ;;  %v703_v5 = vrot.slane %v2949_v51, 7  ;;  %v2313_v9 = vld [vmem:[%s4041_s1 + $0x278] sm:$0xff]  ;;  %v508_v14 = vld [vmem:[%s2816_s15 + $0x10] sm:$0xff]  ;;  %v966_v17 = vld [vmem:[%s4041_s1 + $0xe0] sm:$0xff] }
  0x8e   : > { %2446 = vmatpush.msra.mxu3 %v946_v52  ;;  %993 = vmatpush.msra.mxu0 %v946_v52  ;;  %v2953_v52 = vsel %vm2880_vm8, %v628_v35, 0.0  ;;  %v616_v58 = vmax.f32 %v596_v40, 0.0  ;;  %v2969_v59 = vrot.slane %v655_v42, 7  ;;  %v601_v7 = vadd.f32 %v2832_v55, %v577_v48  ;;  %v513_v11 = vld [vmem:[%s2816_s15 + $0x38] sm:$0xff]  ;;  %v2312_v31 = vld [vmem:[%s4041_s1 + $0x270] sm:$0xff]  ;;  %v2291_v53 = vld [vmem:[%s4041_s1 + $0x1c8] sm:$0xff] }
  0x8f   : > { %2447 = vmatpush.msra.mxu1 %v945_v56  ;;  %2448 = vmatpush.msra.mxu2 %v945_v56  ;;  %v715_v6 = vrot.slane %v2953_v52, 7  ;;  %v605_v10 = vadd.f32 %v2832_v55, %v581_v54  ;;  %vm542_vm0 = vcmp.ge.s32.totalorder %v532_v60, 1  ;;  %v517_v15 = vld [vmem:[%s2816_s15 + $0x58] sm:$0xff]  ;;  %v3019_v18 = vsel %vm695_vm11, %v2921_v38, %v709_v0  ;;  %v980_v35 = vld [vmem:[%s4041_s1 + $0x150] sm:$0xff]  ;;  %v2306_v41 = vld [vmem:[%s4041_s1 + $0x240] sm:$0xff] }
  0x90   : > { %2449 = vmatpush.msra.mxu3 %v945_v56  ;;  %994 = vmatpush.msra.mxu0 %v945_v56  ;;  %v984_v56 = vld [vmem:[%s4041_s1 + $0x170] sm:$0xff]  ;;  %v3003_v12 = vsel %vm2906_vm12, %v616_v58, 0.0  ;;  %v521_v16 = vld [vmem:[%s2816_s15 + $0x78] sm:$0xff]  ;;  %vm552_vm1 = vcmp.le.s32.totalorder %v532_v60, 16  ;;  %vm554_vm3 = vcmp.le.s32.totalorder %v534_v1, 16  ;;  %v3025_v19 = vsel %vm695_vm11, %v2913_v33, %v703_v5  ;;  %v2370_v51 = vld [vmem:[%s4041_s1 + $0x3c0] sm:$0xff] }
  0x91   : > { %2450 = vmatpush.msra.mxu1 %v944_v61  ;;  %2451 = vmatpush.msra.mxu2 %v944_v61  ;;  %v3031_v20 = vsel %vm695_vm11, %v2923_v39, %v715_v6  ;;  %v578_v22 = vmul.f32 %v2811_v46, %v513_v11  ;;  %v981_v23 = vld [vmem:[%s4041_s1 + $0x158] sm:$0xff]  ;;  %v573_v27 = vmul.f32 %v2811_v46, %v508_v14  ;;  %vm3058_vm5 = vmand %vm542_vm0, %vm552_vm1  ;;  %v2292_v36 = vld [vmem:[%s4041_s1 + $0x1d0] sm:$0xff]  ;;  %v697_v40 = vrot.slane %v3003_v12, 7 }
  0x92   : > { %2452 = vmatpush.msra.mxu3 %v944_v61  ;;  %995 = vmatpush.msra.mxu0 %v944_v61  ;;  %v585_v61 = vmul.f32 %v2811_v46, %v520_v43  ;;  %v2293_v24 = vld [vmem:[%s4041_s1 + $0x1d8] sm:$0xff]  ;;  %v582_v28 = vmul.f32 %v2811_v46, %v517_v15  ;;  %v586_v29 = vmul.f32 %v2811_v46, %v521_v16  ;;  %vm3073_vm6 = vmand %vm544_vm2, %vm554_vm3  ;;  %v528_v42 = vadd.s32 1, %v2820_v49  ;;  %v964_v43 = vld [vmem:[%s4041_s1 + $0xd0] sm:$0xff] }
  0x93   : > { %2453 = vmatpush.msra.mxu1 %v943_v3  ;;  %2454 = vmatpush.msra.mxu2 %v943_v3  ;;  %v965_v30 = vld [vmem:[%s4041_s1 + $0xd8] sm:$0xff]  ;;  %v602_v48 = vadd.f32 %v2832_v55, %v578_v22  ;;  %v3111_v1 = vsel %vm695_vm11, %v2969_v59, %v697_v40  ;;  %v2288_v25 = vld [vmem:[%s4041_s1 + $0x1b0] sm:$0xff]  ;;  %vm808_vm10 = vcmask 1046528   ;;  %vm865_vm12 = vcmask 1045504   ;;  %v2366_v47 = vld [vmem:[%s4041_s1 + $0x3a0] sm:$0xff] }
  0x94   : > { %2455 = vmatpush.msra.mxu3 %v943_v3  ;;  %996 = vmatpush.msra.mxu0 %v943_v3  ;;  %v967_v3 = vld [vmem:[%s4041_s1 + $0xe8] sm:$0xff]  ;;  %v610_v58 = vadd.f32 %v2832_v55, %v586_v29  ;;  %v509_v60 = vld [vmem:[%s2816_s15 + $0x18] sm:$0xff]  ;;  %vm538_vm7 = vcmp.ge.s32.totalorder %v528_v42, 1  ;;  %vm548_vm8 = vcmp.le.s32.totalorder %v528_v42, 16  ;;  %v2346_v52 = vld [vmem:[%s4041_s1 + $0x300] sm:$0xff] }
  0x95   : > { %2456 = vmatpush.msra.mxu1 %v942_v8  ;;  %2457 = vmatpush.msra.mxu2 %v942_v8  ;;  %v2309_v11 = vld [vmem:[%s4041_s1 + $0x258] sm:$0xff]  ;;  %vm3135_vm9 = vmand %vm538_vm7, %vm548_vm8 }
  0x96   : > { %2458 = vmatpush.msra.mxu3 %v942_v8  ;;  %997 = vmatpush.msra.mxu0 %v942_v8  ;;  %v2294_v8 = vld [vmem:[%s4041_s1 + $0x1e0] sm:$0xff]  ;;  %v630_v16 = vmax.f32 %v610_v58, 0.0  ;;  %v961_v22 = vld [vmem:[%s4041_s1 + $0xb8] sm:$0xff] }
  0x97   : > { %2459 = vmatpush.msra.mxu1 %v941_v13  ;;  %2460 = vmatpush.msra.mxu2 %v941_v13  ;;  %v2329_v12 = vld [vmem:[%s4041_s1 + $0x2f8] sm:$0xff] }
  0x98   : > { %2461 = vmatpush.msra.mxu3 %v941_v13  ;;  %998 = vmatpush.msra.mxu0 %v941_v13  ;;  %v609_v13 = vadd.f32 %v2832_v55, %v585_v61  ;;  %v963_v61 = vld [vmem:[%s4041_s1 + $0xc8] sm:$0xff]  ;;  %v3179_v29 = vsel %vm3073_vm6, %v630_v16, 0.0 }
  0x99   : > { %2462 = vmatpush.msra.mxu1 %v940_v21  ;;  %2463 = vmatpush.msra.mxu2 %v940_v21  ;;  %v2283_v16 = vld [vmem:[%s4041_s1 + $0x188] sm:$0xff] }
  0x9a   : > { %2464 = vmatpush.msra.mxu3 %v940_v21  ;;  %999 = vmatpush.msra.mxu0 %v940_v21  ;;  %v621_v21 = vmax.f32 %v601_v7, 0.0  ;;  %v629_v34 = vmax.f32 %v609_v13, 0.0 }
  0x9b   : > { %2465 = vmatpush.msra.mxu1 %v939_v26  ;;  %2466 = vmatpush.msra.mxu2 %v939_v26 }
  0x9c   : > { %2467 = vmatpush.msra.mxu3 %v939_v26  ;;  %1000 = vmatpush.msra.mxu0 %v939_v26  ;;  %v625_v26 = vmax.f32 %v605_v10, 0.0  ;;  %v574_v10 = vmul.f32 %v2811_v46, %v509_v60  ;;  %v977_v46 = vld [vmem:[%s4041_s1 + $0x138] sm:$0xff] }
  0x9d   : > { %2468 = vmatpush.msra.mxu1 %v938_v32  ;;  %2469 = vmatpush.msra.mxu2 %v938_v32 }
  0x9e   : > { %2470 = vmatpush.msra.mxu3 %v938_v32  ;;  %2271 = vmatmul.msk.f32.vlgmr.msra.gmra.mxu1 %vm2917_vm13, %v2913_v33  ;;  %v665_v54 = vsel %vm3058_vm5, %v625_v26, 0.0  ;;  %v598_v26 = vadd.f32 %v2832_v55, %v574_v10 }
  0x9f   : > { %2275 = vmatmul.msk.f32.vlgmr.msra.gmra.mxu2 %vm2917_vm13, %v2921_v38  ;;  %2279 = vmatmul.msk.f32.vlgmr.msra.gmra.mxu3 %vm2917_vm13, %v2923_v39 }
  0xa0   : > { %1116 = vmatpush.msrb.mxu2 %v985_v44  ;;  %1294 = vmatpush.msrb.mxu3 %v2297_v45  ;;  %v2311_v44 = vld [vmem:[%s4041_s1 + $0x268] sm:$0xff]  ;;  %v661_v45 = vsel %vm3042_vm4, %v621_v21, 0.0  ;;  %v2289_v21 = vld [vmem:[%s4041_s1 + $0x1b8] sm:$0xff] }
  0xa1   : > { %1051 = vmatpush.msrb.mxu1 %v969_v50  ;;  %1001 = vmatpush.msra.mxu0 %v938_v32  ;;  %v979_v50 = vld [vmem:[%s4041_s1 + $0x148] sm:$0xff]  ;;  %v3122_v7 = vrot.slane %v661_v45, 7  ;;  %v618_v45 = vmax.f32 %v598_v26, 0.0 }
  0xa2   : > { %1117 = vmatpush.msrb.mxu2 %v984_v56  ;;  %1295 = vmatpush.msrb.mxu3 %v2296_v57  ;;  %v597_v56 = vadd.f32 %v2832_v55, %v573_v27  ;;  %v606_v57 = vadd.f32 %v2832_v55, %v582_v28  ;;  %v976_v27 = vld [vmem:[%s4041_s1 + $0x130] sm:$0xff]  ;;  %v975_v32 = vld [vmem:[%s4041_s1 + $0x128] sm:$0xff] }
  0xa3   : > { %1052 = vmatpush.msrb.mxu1 %v968_v62  ;;  %2267 = vmatmul.msk.f32.vlgmr.msra.gmra.mxu0 %vm2917_vm13, %v2969_v59  ;;  %v2310_v62 = vld [vmem:[%s4041_s1 + $0x260] sm:$0xff]  ;;  %v3239_v60 = vsel %vm3135_vm9, %v618_v45, 0.0  ;;  %v2300_v45 = vld [vmem:[%s4041_s1 + $0x210] sm:$0xff] }
  0xa4   : > { %1118 = vmatpush.msrb.mxu2 %v983_v63  ;;  %1296 = vmatpush.msrb.mxu3 %v2295_v2  ;;  %v669_v63 = vsel %vm3073_vm6, %v629_v34, 0.0  ;;  %v978_v2 = vld [vmem:[%s4041_s1 + $0x140] sm:$0xff]  ;;  %v617_v14 = vmax.f32 %v597_v56, 0.0  ;;  %v626_v15 = vmax.f32 %v606_v57, 0.0  ;;  %v2287_v34 = vld [vmem:[%s4041_s1 + $0x1a8] sm:$0xff]  ;;  %v700_v10 = vrot.slane %v3239_v60, 7 }
  0xa5   : > { %1053 = vmatpush.msrb.mxu1 %v967_v3  ;;  %1359 = vmatpush.msrb.mxu0 %v2313_v9  ;;  %v2290_v3 = vld [vmem:[%s4041_s1 + $0x1c0] sm:$0xff]  ;;  %v622_v9 = vmax.f32 %v602_v48, 0.0  ;;  %v3130_v13 = vrot.slane %v669_v63, 7  ;;  %v957_v63 = vld [vmem:[%s4041_s1 + $0x98] sm:$0xff] }
  0xa6   : > { %1119 = vmatpush.msrb.mxu2 %v982_v4  ;;  %1297 = vmatpush.msrb.mxu3 %v2294_v8  ;;  %v962_v4 = vld [vmem:[%s4041_s1 + $0xc0] sm:$0xff]  ;;  %v3124_v8 = vrot.slane %v665_v54, 7  ;;  %v657_v28 = vsel %vm3135_vm9, %v617_v14, 0.0  ;;  %v3175_v55 = vsel %vm3058_vm5, %v626_v15, 0.0  ;;  %v2305_v54 = vld [vmem:[%s4041_s1 + $0x238] sm:$0xff]  ;;  %v810_v14 = vrot.slane %v3111_v1, 1 }
  0xa7   : > { %1054 = vmatpush.msrb.mxu1 %v966_v17  ;;  %1029 = vmatmul.f32.gmra.mxu2 %v3019_v18  ;;  %v3200_v42 = vrot.slane %v657_v28, 7  ;;  %v974_v48 = vld [vmem:[%s4041_s1 + $0x120] sm:$0xff]  ;;  %v971_v15 = vld [vmem:[%s4041_s1 + $0x108] sm:$0xff]  ;;  %v2301_v28 = vld [vmem:[%s4041_s1 + $0x218] sm:$0xff] }
  0xa8   : > { %1017 = vmatmul.f32.gmra.mxu1 %v3025_v19  ;;  %1041 = vmatmul.f32.gmra.mxu3 %v3031_v20  ;;  %v2374_v60 = vld [vmem:[%s4041_s1 + $0x3e0] sm:$0xff] }
  0xa9   : > { %1120 = vmatpush.msrb.mxu2 %v981_v23  ;;  %1298 = vmatpush.msrb.mxu3 %v2293_v24  ;;  %v2308_v23 = vld [vmem:[%s4041_s1 + $0x250] sm:$0xff]  ;;  %v3156_v24 = vsel %vm3042_vm4, %v622_v9, 0.0  ;;  %v3289_v26 = vsel %vm695_vm11, %v3200_v42, %v700_v10 }
  0xaa   : > { %1055 = vmatpush.msrb.mxu1 %v965_v30  ;;  %1360 = vmatpush.msrb.mxu0 %v2312_v31  ;;  %v960_v30 = vld [vmem:[%s4041_s1 + $0xb0] sm:$0xff]  ;;  %v2307_v31 = vld [vmem:[%s4041_s1 + $0x248] sm:$0xff] }
  0xab   : > { %1121 = vmatpush.msrb.mxu2 %v980_v35  ;;  %1299 = vmatpush.msrb.mxu3 %v2292_v36  ;;  %v706_v35 = vrot.slane %v3156_v24, 7  ;;  %v959_v36 = vld [vmem:[%s4041_s1 + $0xa8] sm:$0xff]  ;;  %v2284_v9 = vld [vmem:[%s4041_s1 + $0x190] sm:$0xff] }
  0xac   : > { %1056 = vmatpush.msrb.mxu1 %v964_v43  ;;  %1361 = vmatpush.msrb.mxu0 %v2311_v44  ;;  %v712_v43 = vrot.slane %v3175_v55, 7  ;;  %v718_v44 = vrot.slane %v3179_v29, 7  ;;  %v2368_v24 = vld [vmem:[%s4041_s1 + $0x3b0] sm:$0xff] }
  0xad   : > { %1122 = vmatpush.msrb.mxu2 %v979_v50  ;;  %1300 = vmatpush.msrb.mxu3 %v2291_v53  ;;  %v2286_v50 = vld [vmem:[%s4041_s1 + $0x1a0] sm:$0xff]  ;;  %v3220_v56 = vsel %vm695_vm11, %v3122_v7, %v706_v35  ;;  %v2364_v55 = vld [vmem:[%s4041_s1 + $0x390] sm:$0xff] }
  0xae   : > { %1057 = vmatpush.msrb.mxu1 %v963_v61  ;;  %1362 = vmatpush.msrb.mxu0 %v2310_v62  ;;  %v958_v53 = vld [vmem:[%s4041_s1 + $0xa0] sm:$0xff]  ;;  %v3229_v57 = vsel %vm695_vm11, %v3124_v8, %v712_v43  ;;  %v3235_v58 = vsel %vm695_vm11, %v3130_v13, %v718_v44  ;;  %v973_v61 = vld [vmem:[%s4041_s1 + $0x118] sm:$0xff] }
  0xaf   : > { %1005 = vmatmul.f32.gmra.mxu0 %v3111_v1  ;;  %1123 = vmatpush.msrb.mxu2 %v978_v2  ;;  %v2285_v62 = vld [vmem:[%s4041_s1 + $0x198] sm:$0xff]  ;;  %v2304_v2 = vld [vmem:[%s4041_s1 + $0x230] sm:$0xff]  ;;  %v902_v29 = vrot.slane %v3235_v58, 2 }
  0xb0   : > { %1301 = vmatpush.msrb.mxu3 %v2290_v3  ;;  %1058 = vmatpush.msrb.mxu1 %v962_v4  ;;  %v756_v3 = vsel %vm695_vm11, 0.0, %v2969_v59  ;;  %v972_v4 = vld [vmem:[%s4041_s1 + $0x110] sm:$0xff] }
  0xb1   : > { %1363 = vmatpush.msrb.mxu0 %v2309_v11  ;;  %2273 = vmatmul.msk.f32.gmra.mxu1 %vm2917_vm13, %v3122_v7  ;;  %v956_v59 = vld [vmem:[%s4041_s1 + $0x90] sm:$0xff]  ;;  %v2303_v11 = vld [vmem:[%s4041_s1 + $0x228] sm:$0xff]  ;;  %v809_v17 = vrot.slane %v756_v3, 1 }
  0xb2   : > { %2277 = vmatmul.msk.f32.gmra.mxu2 %vm2917_vm13, %v3124_v8  ;;  %2281 = vmatmul.msk.f32.gmra.mxu3 %vm2917_vm13, %v3130_v13 }
  0xb3   : > { %1124 = vmatpush.msrb.mxu2 %v977_v46  ;;  %1302 = vmatpush.msrb.mxu3 %v2289_v21  ;;  %v867_v46 = vrot.slane %v3111_v1, 2  ;;  %v955_v21 = vld [vmem:[%s4041_s1 + $0x88] sm:$0xff]  ;;  %v970_v1 = vld [vmem:[%s4041_s1 + $0x100] sm:$0xff] }
  0xb4   : > { %1059 = vmatpush.msrb.mxu1 %v961_v22  ;;  %1364 = vmatpush.msrb.mxu0 %v2308_v23  ;;  %v2302_v22 = vld [vmem:[%s4041_s1 + $0x220] sm:$0xff]  ;;  %v866_v23 = vrot.slane %v756_v3, 2 }
  0xb5   : > { %1125 = vmatpush.msrb.mxu2 %v976_v27  ;;  %1303 = vmatpush.msrb.mxu3 %v2288_v25  ;;  %v2282_v27 = vld [vmem:[%s4041_s1 + $0x180] sm:$0xff] }
  0xb6   : > { %1060 = vmatpush.msrb.mxu1 %v960_v30  ;;  %1365 = vmatpush.msrb.mxu0 %v2307_v31  ;;  %v954_v25 = vld [vmem:[%s4041_s1 + $0x80] sm:$0xff]  ;;  %v811_v30 = vsel %vm808_vm10, %v809_v17, %v810_v14  ;;  %v868_v31 = vsel %vm865_vm12, %v866_v23, %v867_v46  ;;  %v872_v23 = vrot.slane %v3289_v26, 2 }
  0xb7   : > { %1126 = vmatpush.msrb.mxu2 %v975_v32  ;;  %1304 = vmatpush.msrb.mxu3 %v2287_v34  ;;  %v3308_v32 = vsel %vm695_vm11, 0.0, %v3200_v42  ;;  %v766_v34 = vsel %vm695_vm11, %v697_v40, 0.0  ;;  %v2298_v3 = vld [vmem:[%s4041_s1 + $0x200] sm:$0xff] }
  0xb8   : > { %1061 = vmatpush.msrb.mxu1 %v959_v36  ;;  %1366 = vmatpush.msrb.mxu0 %v2306_v41  ;;  %v2361_v36 = vld [vmem:[%s4041_s1 + $0x378] sm:$0xff]  ;;  %v814_v40 = vrot.slane %v3308_v32, 1  ;;  %v2358_v17 = vld [vmem:[%s4041_s1 + $0x360] sm:$0xff] }
  0xb9   : > { %2269 = vmatmul.msk.f32.gmra.mxu0 %vm2917_vm13, %v3200_v42  ;;  %1127 = vmatpush.msrb.mxu2 %v974_v48  ;;  %v2377_v41 = vld [vmem:[%s4041_s1 + $0x3f8] sm:$0xff]  ;;  %v815_v48 = vrot.slane %v3289_v26, 1 }
  0xba   : > { %1305 = vmatpush.msrb.mxu3 %v2286_v50  ;;  %1062 = vmatpush.msrb.mxu1 %v958_v53  ;;  %v812_v50 = vrot.slane %v766_v34, 1  ;;  %v2360_v53 = vld [vmem:[%s4041_s1 + $0x370] sm:$0xff] }
  0xbb   : > { %1367 = vmatpush.msrb.mxu0 %v2305_v54  ;;  %1023 = vmatmul.f32.gmra.mxu1 %v3220_v56  ;;  %v2376_v54 = vld [vmem:[%s4041_s1 + $0x3f0] sm:$0xff] }
  0xbc   : > { %1035 = vmatmul.f32.gmra.mxu2 %v3229_v57  ;;  %1047 = vmatmul.f32.gmra.mxu3 %v3235_v58 }
  0xbd   : > { %1128 = vmatpush.msrb.mxu2 %v973_v61  ;;  %1306 = vmatpush.msrb.mxu3 %v2285_v62  ;;  %v2299_v61 = vld [vmem:[%s4041_s1 + $0x208] sm:$0xff]  ;;  %v2328_v62 = vld [vmem:[%s4041_s1 + $0x2f0] sm:$0xff] }
  0xbe   : > { %1063 = vmatpush.msrb.mxu1 %v957_v63  ;;  %1368 = vmatpush.msrb.mxu0 %v2304_v2  ;;  %v2359_v63 = vld [vmem:[%s4041_s1 + $0x368] sm:$0xff] }
  0xbf   : > { %1129 = vmatpush.msrb.mxu2 %v972_v4  ;;  %1307 = vmatpush.msrb.mxu3 %v2284_v9  ;;  %v2375_v2 = vld [vmem:[%s4041_s1 + $0x3e8] sm:$0xff]  ;;  %v816_v9 = vsel %vm808_vm10, %v814_v40, %v815_v48 }
  0xc0   : > { %1064 = vmatpush.msrb.mxu1 %v956_v59  ;;  %1369 = vmatpush.msrb.mxu0 %v2303_v11  ;;  %v2327_v4 = vld [vmem:[%s4041_s1 + $0x2e8] sm:$0xff]  ;;  %v813_v59 = vsel %vm808_vm10, %v810_v14, %v812_v50 }
  0xc1   : > { %1130 = vmatpush.msrb.mxu2 %v971_v15  ;;  %1308 = vmatpush.msrb.mxu3 %v2283_v16  ;;  %v767_v15 = vsel %vm695_vm11, %v700_v10, 0.0  ;;  %v2393_v16 = vld [vmem:[%s4041_s1 + $0x478] sm:$0xff]  ;;  %v2326_v10 = vld [vmem:[%s4041_s1 + $0x2e0] sm:$0xff]  ;;  %v2355_v40 = vld [vmem:[%s4041_s1 + $0x348] sm:$0xff] }
  0xc2   : > { %1065 = vmatpush.msrb.mxu1 %v955_v21  ;;  %1370 = vmatpush.msrb.mxu0 %v2302_v22  ;;  %v817_v14 = vrot.slane %v767_v15, 1  ;;  %v2357_v21 = vld [vmem:[%s4041_s1 + $0x358] sm:$0xff]  ;;  %v871_v22 = vrot.slane %v3308_v32, 2  ;;  %v758_v32 = vsel %vm695_vm11, 0.0, %v2913_v33  ;;  %v874_v50 = vrot.slane %v767_v15, 2  ;;  %v2322_v15 = vld [vmem:[%s4041_s1 + $0x2c0] sm:$0xff] }
  0xc3   : > { %1011 = vmatmul.f32.gmra.mxu0 %v3289_v26  ;;  %1131 = vmatpush.msrb.mxu2 %v970_v1  ;;  %v2373_v1 = vld [vmem:[%s4041_s1 + $0x3d8] sm:$0xff] }
  0xc4   : > { %1309 = vmatpush.msrb.mxu3 %v2282_v27  ;;  %1066 = vmatpush.msrb.mxu1 %v954_v25  ;;  %v2325_v27 = vld [vmem:[%s4041_s1 + $0x2d8] sm:$0xff]  ;;  %v2391_v25 = vld [vmem:[%s4041_s1 + $0x468] sm:$0xff] }
  0xc5   : > { %1371 = vmatpush.msrb.mxu0 %v2301_v28  ;;  %1067 = vmatmul.f32.vlgmr.msrb.gmra.mxu1 %v811_v30  ;;  %v2356_v28 = vld [vmem:[%s4041_s1 + $0x350] sm:$0xff]  ;;  %v818_v30 = vsel %vm808_vm10, %v815_v48, %v817_v14  ;;  %v2371_v48 = vld [vmem:[%s4041_s1 + $0x3c8] sm:$0xff]  ;;  %v2386_v14 = vld [vmem:[%s4041_s1 + $0x440] sm:$0xff] }
  0xc6   : > { %1132 = vmatmul.f32.vlgmr.msrb.gmra.mxu2 %v868_v31  ;;  %2331 = vmatmul.msk.f32.vlgmr.msrb.gmra.mxu3 %vm2917_vm13, %v3200_v42  ;;  %v869_v42 = vrot.slane %v766_v34, 2  ;;  %v3398_v31 = vsel %vm865_vm12, %v871_v22, %v872_v23  ;;  %v2390_v34 = vld [vmem:[%s4041_s1 + $0x460] sm:$0xff] }
  0xc7   : > { %1602 = vmatpush.msra.mxu2 %v2361_v36  ;;  %1667 = vmatpush.msra.mxu3 %v2377_v41  ;;  %v2324_v36 = vld [vmem:[%s4041_s1 + $0x2d0] sm:$0xff]  ;;  %v819_v41 = vrot.slane %v758_v32, 1 }
  0xc8   : > { %1372 = vmatpush.msrb.mxu0 %v2300_v45  ;;  %1424 = vmatpush.msra.mxu1 %v2329_v12  ;;  %v870_v11 = vsel %vm865_vm12, %v867_v46, %v869_v42  ;;  %v2392_v46 = vld [vmem:[%s4041_s1 + $0x470] sm:$0xff]  ;;  %v820_v45 = vrot.slane %v3025_v19, 1  ;;  %v2389_v12 = vld [vmem:[%s4041_s1 + $0x458] sm:$0xff]  ;;  %v768_v42 = vsel %vm695_vm11, %v703_v5, 0.0  ;;  %v2387_v5 = vld [vmem:[%s4041_s1 + $0x448] sm:$0xff] }
  0xc9   : > { %1603 = vmatpush.msra.mxu2 %v2360_v53  ;;  %1668 = vmatpush.msra.mxu3 %v2376_v54  ;;  %v2388_v53 = vld [vmem:[%s4041_s1 + $0x450] sm:$0xff] }
  0xca   : > { %1373 = vmatpush.msrb.mxu0 %v2299_v61  ;;  %1425 = vmatpush.msra.mxu1 %v2328_v62  ;;  %v3426_v54 = vsel %vm808_vm10, %v819_v41, %v820_v45  ;;  %v3429_v61 = vsel %vm865_vm12, %v872_v23, %v874_v50  ;;  %v2323_v62 = vld [vmem:[%s4041_s1 + $0x2c8] sm:$0xff]  ;;  %v769_v23 = vsel %vm695_vm11, %v706_v35, 0.0  ;;  %v2385_v35 = vld [vmem:[%s4041_s1 + $0x438] sm:$0xff] }
  0xcb   : > { %1604 = vmatpush.msra.mxu2 %v2359_v63  ;;  %1669 = vmatpush.msra.mxu3 %v2375_v2  ;;  %v822_v63 = vrot.slane %v768_v42, 1  ;;  %v2354_v2 = vld [vmem:[%s4041_s1 + $0x340] sm:$0xff]  ;;  %v884_v50 = vrot.slane %v769_v23, 2 }
  0xcc   : > { %1374 = vmatpush.msrb.mxu0 %v2298_v3  ;;  %1426 = vmatpush.msra.mxu1 %v2327_v4  ;;  %v876_v3 = vrot.slane %v758_v32, 2  ;;  %v877_v4 = vrot.slane %v3025_v19, 2 }
  0xcd   : > { %1375 = vmatmul.f32.vlgmr.msrb.gmra.mxu0 %v816_v9  ;;  %1070 = vmatmul.f32.gmra.mxu1 %v813_v59 }
  0xce   : > { %1135 = vmatmul.f32.gmra.mxu2 %v870_v11  ;;  %1313 = vmatmul.f32.gmra.mxu3 %v3289_v26  ;;  %v2372_v26 = vld [vmem:[%s4041_s1 + $0x3d0] sm:$0xff]  ;;  %v3454_v59 = vsel %vm865_vm12, %v876_v3, %v877_v4  ;;  %v759_v11 = vsel %vm695_vm11, 0.0, %v3122_v7  ;;  %v887_v3 = vrot.slane %v3019_v18, 2 }
  0xcf   : > { %1732 = vmatpush.msra.mxu0 %v2393_v16  ;;  %1605 = vmatpush.msra.mxu2 %v2358_v17  ;;  %v824_v16 = vrot.slane %v759_v11, 1  ;;  %v825_v17 = vrot.slane %v3220_v56, 1 }
  0xd0   : > { %1670 = vmatpush.msra.mxu3 %v2374_v60  ;;  %1427 = vmatpush.msra.mxu1 %v2326_v10  ;;  %v2353_v60 = vld [vmem:[%s4041_s1 + $0x338] sm:$0xff] }
  0xd1   : > { %1733 = vmatpush.msra.mxu0 %v2392_v46  ;;  %1606 = vmatpush.msra.mxu2 %v2357_v21  ;;  %v2369_v10 = vld [vmem:[%s4041_s1 + $0x3b8] sm:$0xff]  ;;  %v879_v46 = vrot.slane %v768_v42, 2  ;;  %v3478_v21 = vsel %vm808_vm10, %v824_v16, %v825_v17  ;;  %v2318_v16 = vld [vmem:[%s4041_s1 + $0x2a0] sm:$0xff] }
  0xd2   : > { %1671 = vmatpush.msra.mxu3 %v2373_v1  ;;  %1428 = vmatpush.msra.mxu1 %v2325_v27  ;;  %v2321_v1 = vld [vmem:[%s4041_s1 + $0x2b8] sm:$0xff]  ;;  %v827_v27 = vrot.slane %v769_v23, 1 }
  0xd3   : > { %1734 = vmatpush.msra.mxu0 %v2391_v25  ;;  %1607 = vmatpush.msra.mxu2 %v2356_v28  ;;  %v3481_v22 = vsel %vm865_vm12, %v877_v4, %v879_v46  ;;  %v2352_v25 = vld [vmem:[%s4041_s1 + $0x330] sm:$0xff]  ;;  %v881_v28 = vrot.slane %v759_v11, 2  ;;  %v2382_v46 = vld [vmem:[%s4041_s1 + $0x420] sm:$0xff] }
  0xd4   : > { %1672 = vmatpush.msra.mxu3 %v2372_v26  ;;  %1429 = vmatpush.msra.mxu1 %v2324_v36  ;;  %v882_v26 = vrot.slane %v3220_v56, 2  ;;  %v2320_v36 = vld [vmem:[%s4041_s1 + $0x2b0] sm:$0xff] }
  0xd5   : > { %1378 = vmatmul.f32.gmra.mxu0 %v818_v30  ;;  %1073 = vmatmul.f32.gmra.mxu1 %v816_v9  ;;  %v3451_v9 = vsel %vm808_vm10, %v820_v45, %v822_v63  ;;  %v830_v45 = vrot.slane %v3019_v18, 1  ;;  %v2319_v63 = vld [vmem:[%s4041_s1 + $0x2a8] sm:$0xff] }
  0xd6   : > { %1138 = vmatmul.f32.gmra.mxu2 %v3398_v31  ;;  %2333 = vmatmul.msk.f32.gmra.mxu3 %vm2917_vm13, %v2913_v33  ;;  %v3507_v32 = vsel %vm865_vm12, %v881_v28, %v882_v26  ;;  %v3534_v42 = vsel %vm865_vm12, %v882_v26, %v884_v50  ;;  %v2348_v28 = vld [vmem:[%s4041_s1 + $0x310] sm:$0xff]  ;;  %v2347_v50 = vld [vmem:[%s4041_s1 + $0x308] sm:$0xff] }
  0xd7   : > { %1735 = vmatpush.msra.mxu0 %v2390_v34  ;;  %1608 = vmatpush.msra.mxu2 %v2355_v40  ;;  %v760_v34 = vsel %vm695_vm11, 0.0, %v2921_v38  ;;  %v2367_v40 = vld [vmem:[%s4041_s1 + $0x3a8] sm:$0xff] }
  0xd8   : > { %1673 = vmatpush.msra.mxu3 %v2371_v48  ;;  %1430 = vmatpush.msra.mxu1 %v2323_v62  ;;  %v829_v41 = vrot.slane %v760_v34, 1  ;;  %v2384_v48 = vld [vmem:[%s4041_s1 + $0x430] sm:$0xff]  ;;  %v770_v62 = vsel %vm695_vm11, %v709_v0, 0.0  ;;  %v2383_v0 = vld [vmem:[%s4041_s1 + $0x428] sm:$0xff] }
  0xd9   : > { %1736 = vmatpush.msra.mxu0 %v2389_v12  ;;  %1609 = vmatpush.msra.mxu2 %v2354_v2  ;;  %v2351_v12 = vld [vmem:[%s4041_s1 + $0x328] sm:$0xff]  ;;  %v832_v2 = vrot.slane %v770_v62, 1  ;;  %v889_v23 = vrot.slane %v770_v62, 2 }
  0xda   : > { %1674 = vmatpush.msra.mxu3 %v2370_v51  ;;  %1431 = vmatpush.msra.mxu1 %v2322_v15  ;;  %v2350_v51 = vld [vmem:[%s4041_s1 + $0x320] sm:$0xff]  ;;  %v761_v15 = vsel %vm695_vm11, 0.0, %v3124_v8  ;;  %v2363_v62 = vld [vmem:[%s4041_s1 + $0x388] sm:$0xff] }
  0xdb   : > { %1737 = vmatpush.msra.mxu0 %v2388_v53  ;;  %1610 = vmatpush.msra.mxu2 %v2353_v60  ;;  %v3531_v53 = vsel %vm808_vm10, %v829_v41, %v830_v45  ;;  %v3557_v4 = vsel %vm808_vm10, %v830_v45, %v832_v2  ;;  %v835_v60 = vrot.slane %v3229_v57, 1  ;;  %v891_v26 = vrot.slane %v761_v15, 2 }
  0xdc   : > { %1675 = vmatpush.msra.mxu3 %v2369_v10  ;;  %1432 = vmatpush.msra.mxu1 %v2321_v1  ;;  %v2349_v10 = vld [vmem:[%s4041_s1 + $0x318] sm:$0xff]  ;;  %v762_v45 = vsel %vm695_vm11, 0.0, %v2923_v39 }
  0xdd   : > { %1381 = vmatmul.f32.gmra.mxu0 %v3426_v54  ;;  %1076 = vmatmul.f32.gmra.mxu1 %v818_v30  ;;  %v3504_v30 = vsel %vm808_vm10, %v825_v17, %v827_v27  ;;  %v834_v17 = vrot.slane %v761_v15, 1  ;;  %v3587_v27 = vsel %vm865_vm12, %v887_v3, %v889_v23  ;;  %v2315_v15 = vld [vmem:[%s4041_s1 + $0x288] sm:$0xff] }
  0xde   : > { %1141 = vmatmul.f32.gmra.mxu2 %v3429_v61  ;;  %1319 = vmatmul.f32.gmra.mxu3 %v3025_v19 }
  0xdf   : > { %1738 = vmatpush.msra.mxu0 %v2387_v5  ;;  %1611 = vmatpush.msra.mxu2 %v2352_v25  ;;  %v886_v5 = vrot.slane %v760_v34, 2  ;;  %v3584_v1 = vsel %vm808_vm10, %v834_v17, %v835_v60  ;;  %v771_v25 = vsel %vm695_vm11, %v712_v43, 0.0  ;;  %v2381_v43 = vld [vmem:[%s4041_s1 + $0x418] sm:$0xff]  ;;  %v892_v34 = vrot.slane %v3229_v57, 2  ;;  %v2379_v17 = vld [vmem:[%s4041_s1 + $0x408] sm:$0xff] }
  0xe0   : > { %1676 = vmatpush.msra.mxu3 %v2368_v24  ;;  %1433 = vmatpush.msra.mxu1 %v2320_v36  ;;  %v2317_v24 = vld [vmem:[%s4041_s1 + $0x298] sm:$0xff]  ;;  %v894_v2 = vrot.slane %v771_v25, 2 }
  0xe1   : > { %1739 = vmatpush.msra.mxu0 %v2386_v14  ;;  %1612 = vmatpush.msra.mxu2 %v2351_v12  ;;  %v3560_v11 = vsel %vm865_vm12, %v886_v5, %v887_v3  ;;  %v2365_v14 = vld [vmem:[%s4041_s1 + $0x398] sm:$0xff]  ;;  %v3613_v41 = vsel %vm865_vm12, %v891_v26, %v892_v34  ;;  %v2316_v12 = vld [vmem:[%s4041_s1 + $0x290] sm:$0xff]  ;;  %v772_v5 = vsel %vm695_vm11, %v715_v6, 0.0  ;;  %v523_v3 = vld [vmem:[%s2816_s15 + $0x88] sm:$0xff]  ;;  %v763_v26 = vsel %vm695_vm11, 0.0, %v3130_v13 }
  0xe2   : > { %1677 = vmatpush.msra.mxu3 %v2367_v40  ;;  %1434 = vmatpush.msra.mxu1 %v2319_v63  ;;  %v839_v40 = vrot.slane %v762_v45, 1  ;;  %v2380_v63 = vld [vmem:[%s4041_s1 + $0x410] sm:$0xff]  ;;  %v2362_v6 = vld [vmem:[%s4041_s1 + $0x380] sm:$0xff] }
  0xe3   : > { %1740 = vmatpush.msra.mxu0 %v2385_v35  ;;  %1613 = vmatpush.msra.mxu2 %v2350_v51  ;;  %v837_v35 = vrot.slane %v771_v25, 1 }
  0xe4   : > { %1678 = vmatpush.msra.mxu3 %v2366_v47  ;;  %1435 = vmatpush.msra.mxu1 %v2318_v16  ;;  %v3640_v47 = vsel %vm865_vm12, %v892_v34, %v894_v2  ;;  %v842_v16 = vrot.slane %v772_v5, 1  ;;  %v535_v34 = vadd.s32 8, %v2820_v49  ;;  %v2378_v2 = vld [vmem:[%s4041_s1 + $0x400] sm:$0xff] }
  0xe5   : > { %1384 = vmatmul.f32.gmra.mxu0 %v3451_v9  ;;  %1079 = vmatmul.f32.gmra.mxu1 %v3426_v54  ;;  %v3610_v36 = vsel %vm808_vm10, %v835_v60, %v837_v35  ;;  %v896_v60 = vrot.slane %v762_v45, 2  ;;  %v3691_v45 = vld [vmem:[%s4043_s3] ss:$0 sm:$0xff] }
  0xe6   : > { %1144 = vmatmul.f32.gmra.mxu2 %v3454_v59  ;;  %2335 = vmatmul.msk.f32.gmra.mxu3 %vm2917_vm13, %v3122_v7  ;;  %vm545_vm14 = vcmp.ge.s32.totalorder %v535_v34, 1  ;;  %vm555_vm15 = vcmp.le.s32.totalorder %v535_v34, 16 }
  0xe7   : > { %1741 = vmatpush.msra.mxu0 %v2384_v48  ;;  %1614 = vmatpush.msra.mxu2 %v2349_v10  ;;  %v840_v48 = vrot.slane %v3031_v20, 1  ;;  %v897_v10 = vrot.slane %v3031_v20, 2  ;;  %vm565_vm0 = vmand %vm545_vm14, %vm555_vm15 }
  0xe8   : > { %1679 = vmatpush.msra.mxu3 %v2365_v14  ;;  %1436 = vmatpush.msra.mxu1 %v2317_v24  ;;  %v522_v14 = vld [vmem:[%s2816_s15 + $0x80] sm:$0xff] }
  0xe9   : > { %1742 = vmatpush.msra.mxu0 %v2383_v0  ;;  %1615 = vmatpush.msra.mxu2 %v2348_v28  ;;  %v3637_v51 = vsel %vm808_vm10, %v839_v40, %v840_v48  ;;  %v3675_v24 = vsel %vm808_vm10, %v840_v48, %v842_v16  ;;  %v2314_v48 = vld [vmem:[%s4041_s1 + $0x280] sm:$0xff] }
  0xea   : > { %1680 = vmatpush.msra.mxu3 %v2364_v55  ;;  %1437 = vmatpush.msra.mxu1 %v2316_v12 }
  0xeb   : > { %1743 = vmatpush.msra.mxu0 %v2382_v46  ;;  %1616 = vmatpush.msra.mxu2 %v2347_v50  ;;  %v3669_v46 = vld [vmem:[%s4042_s2] ss:$0 sm:$0xff]  ;;  %v844_v50 = vrot.slane %v763_v26, 1 }
  0xec   : > { %1681 = vmatpush.msra.mxu3 %v2363_v62  ;;  %1438 = vmatpush.msra.mxu1 %v2315_v15  ;;  %v588_v23 = vmul.f32 %v3669_v46, %v523_v3  ;;  %v587_v55 = vmul.f32 %v3669_v46, %v522_v14  ;;  %v845_v62 = vrot.slane %v3235_v58, 1  ;;  %v899_v3 = vrot.slane %v772_v5, 2 }
  0xed   : > { %1387 = vmatmul.f32.gmra.mxu0 %v3478_v21  ;;  %1082 = vmatmul.f32.gmra.mxu1 %v3451_v9  ;;  %v773_v5 = vsel %vm695_vm11, %v718_v44, 0.0 }
  0xee   : > { %1147 = vmatmul.f32.gmra.mxu2 %v3481_v22  ;;  %1325 = vmatmul.f32.gmra.mxu3 %v3220_v56  ;;  %v612_v12 = vadd.f32 %v3691_v45, %v588_v23  ;;  %v3711_v16 = vsel %vm808_vm10, %v844_v50, %v845_v62 }
  0xef   : > { %1744 = vmatpush.msra.mxu0 %v2381_v43  ;;  %1617 = vmatpush.msra.mxu2 %v2346_v52  ;;  %v3683_v43 = vsel %vm865_vm12, %v896_v60, %v897_v10 }
  0xf0   : > { %1682 = vmatpush.msra.mxu3 %v2362_v6  ;;  %1439 = vmatpush.msra.mxu1 %v2314_v48  ;;  %v632_v15 = vmax.f32 %v612_v12, 0.0  ;;  %v3714_v6 = vsel %vm865_vm12, %v897_v10, %v899_v3  ;;  %v901_v12 = vrot.slane %v763_v26, 2 }
  0xf1   : > { %1745 = vmatpush.msra.mxu0 %v2380_v63  ;;  %v611_v63 = vadd.f32 %v3691_v45, %v587_v55  ;;  %v847_v55 = vrot.slane %v773_v5, 1 }
  0xf2   : > { %v672_v23 = vsel %vm565_vm0, %v632_v15, 0.0 }
  0xf3   : > { %1746 = vmatpush.msra.mxu0 %v2379_v17  ;;  %v631_v52 = vmax.f32 %v611_v63, 0.0  ;;  %v721_v48 = vrot.slane %v672_v23, 7  ;;  %v3733_v50 = vsel %vm808_vm10, %v845_v62, %v847_v55  ;;  %v3736_v63 = vsel %vm865_vm12, %v901_v12, %v902_v29 }
  0xf4   : > { %v904_v55 = vrot.slane %v773_v5, 2 }
  0xf5   : > { %1390 = vmatmul.f32.gmra.mxu0 %v3504_v30  ;;  %1085 = vmatmul.f32.gmra.mxu1 %v3478_v21  ;;  %v671_v34 = vsel %vm565_vm0, %v631_v52, 0.0 }
  0xf6   : > { %1150 = vmatmul.f32.gmra.mxu2 %v3507_v32  ;;  %2337 = vmatmul.msk.f32.gmra.mxu3 %vm2917_vm13, %v2921_v38  ;;  %v3730_v44 = vrot.slane %v671_v34, 7 }
  0xf7   : > { %1747 = vmatpush.msra.mxu0 %v2378_v2 }
  0xf8   : > { %v3740_v2 = vsel %vm695_vm11, %v3730_v44, %v721_v48  ;;  %v3744_v3 = vsel %vm695_vm11, 0.0, %v3730_v44 }
  0xf9   : > { %v1215_v52 = vrot.slane %v3744_v3, 1  ;;  %v1216_v23 = vrot.slane %v3740_v2, 1 }
  0xfb   : > { %v3761_v12 = vsel %vm808_vm10, %v1215_v52, %v1216_v23 }
  0xfd   : > { %1393 = vmatmul.f32.gmra.mxu0 %v3531_v53  ;;  %1088 = vmatmul.f32.gmra.mxu1 %v3504_v30 }
  0xfe   : > { %1153 = vmatmul.f32.gmra.mxu2 %v3534_v42  ;;  %1331 = vmatmul.f32.gmra.mxu3 %v3019_v18 }
 0x105   : > { %1396 = vmatmul.f32.gmra.mxu0 %v3557_v4  ;;  %1091 = vmatmul.f32.gmra.mxu1 %v3531_v53 }
 0x106   : > { %1156 = vmatmul.f32.gmra.mxu2 %v3560_v11  ;;  %2339 = vmatmul.msk.f32.gmra.mxu3 %vm2917_vm13, %v3124_v8 }
 0x10d   : > { %1399 = vmatmul.f32.gmra.mxu0 %v3584_v1  ;;  %1094 = vmatmul.f32.gmra.mxu1 %v3557_v4 }
 0x10e   : > { %1159 = vmatmul.f32.gmra.mxu2 %v3587_v27  ;;  %1337 = vmatmul.f32.gmra.mxu3 %v3229_v57 }
 0x115   : > { %1402 = vmatmul.f32.gmra.mxu0 %v3610_v36  ;;  %1097 = vmatmul.f32.gmra.mxu1 %v3584_v1 }
 0x116   : > { %1162 = vmatmul.f32.gmra.mxu2 %v3613_v41  ;;  %2341 = vmatmul.msk.f32.gmra.mxu3 %vm2917_vm13, %v2923_v39 }
 0x11b   : > { %v3642_v0 = vpop.f32.mrf.mxu1 }
 0x11d   : > { %1405 = vmatmul.f32.gmra.mxu0 %v3637_v51  ;;  %1100 = vmatmul.f32.gmra.mxu1 %v3610_v36 }
 0x11e   : > { %1165 = vmatmul.f32.gmra.mxu2 %v3640_v47  ;;  %1343 = vmatmul.f32.gmra.mxu3 %v3031_v20 }
 0x120   : > { %v3672_v25 = vpop.f32.mrf.mxu0 }
 0x121   : > { %4065 = vst [vmem:[#allocation14_spill] sm:$0xff] %v3672_v25  ;;  %v3764_v25 = vsel %vm865_vm12, %v902_v29, %v904_v55 }
 0x122   : > { %v3677_v35 = vpop.f32.mrf.mxu2  ;;  %v3679_v28 = vpop.f32.mrf.mxu3 }
 0x123   : > { %4066 = vst [vmem:[#allocation15_spill] sm:$0xff] %v3679_v28 }
 0x125   : > { %1408 = vmatmul.f32.gmra.mxu0 %v3675_v24  ;;  %1103 = vmatmul.f32.gmra.mxu1 %v3637_v51  ;;  %v3696_v40 = vpop.f32.mrf.mxu1 }
 0x126   : > { %1168 = vmatmul.f32.gmra.mxu2 %v3683_v43  ;;  %2343 = vmatmul.msk.f32.gmra.mxu3 %vm2917_vm13, %v3130_v13 }
 0x12a   : > { %v3716_v17 = vpop.f32.mrf.mxu2 }
 0x12b   : > { %v3718_v60 = vpop.f32.mrf.mxu3 }
 0x12c   : > { %4067 = vst [vmem:[#allocation16_spill] sm:$0xff] %v3718_v60  ;;  %v1006_v14 = vpop.f32.mrf.mxu0 }
 0x12d   : > { %1411 = vmatmul.f32.gmra.mxu0 %v3711_v16  ;;  %1106 = vmatmul.f32.gmra.mxu1 %v3675_v24 }
 0x12e   : > { %1171 = vmatmul.f32.gmra.mxu2 %v3714_v6  ;;  %1349 = vmatmul.f32.gmra.mxu3 %v3235_v58  ;;  %v3727_v10 = vpop.f32.mrf.mxu1 }
 0x135   : > { %1414 = vmatmul.f32.gmra.mxu0 %v3733_v50  ;;  %1109 = vmatmul.f32.gmra.mxu1 %v3711_v16  ;;  %v3748_v26 = vpop.f32.mrf.mxu2  ;;  %v3750_v15 = vpop.f32.mrf.mxu3 }
 0x136   : > { %4068 = vst [vmem:[#allocation17_spill] sm:$0xff] %v3750_v15  ;;  %1174 = vmatmul.f32.gmra.mxu2 %v3736_v63  ;;  %2345 = vmatmul.msk.f32.gmra.mxu3 %vm2917_vm13, %v3730_v44  ;;  %v1009_v62 = vpop.f32.mrf.mxu0  ;;  %v3767_v15 = vsel %vm695_vm11, %v721_v48, 0.0 }
 0x137   : > { %4069 = vst [vmem:[#allocation18_spill] sm:$0xff] %v3767_v15  ;;  %v1218_v5 = vrot.slane %v3767_v15, 1 }
 0x138   : > { %v3758_v34 = vpop.f32.mrf.mxu1 }
 0x139   : > { %v3781_v48 = vsel %vm808_vm10, %v1216_v23, %v1218_v5 }
 0x13d   : > { %1417 = vmatmul.f32.gmra.mxu0 %v3761_v12  ;;  %1112 = vmatmul.f32.gmra.mxu1 %v3733_v50 }
 0x13e   : > { %1177 = vmatmul.f32.gmra.mxu2 %v3764_v25  ;;  %1355 = vmatmul.f32.gmra.mxu3 %v3740_v2 }
 0x13f   : > { %v3774_v60 = vpop.f32.mrf.mxu2  ;;  %v3776_v52 = vpop.f32.mrf.mxu3 }
 0x140   : > { %4070 = vst [vmem:[#allocation19_spill] sm:$0xff] %v3776_v52  ;;  %v1012_v28 = vpop.f32.mrf.mxu0 }
 0x142   : > { %v3778_v29 = vpop.f32.mrf.mxu1 }
 0x143   : > { %4071 = vst [vmem:[#allocation20_spill] sm:$0xff] %v3778_v29 }
 0x145   : > { %1420 = vmatmul.f32.gmra.mxu0 %v3781_v48  ;;  %1440 = vmatmul.f32.vlgmr.msra.gmra.mxu1 %v3398_v31 }
 0x146   : > { %2395 = vmatmul.msk.f32.vlgmr.msra.gmra.mxu2 %vm2917_vm13, %v2913_v33  ;;  %1683 = vmatmul.f32.vlgmr.msra.gmra.mxu3 %v3426_v54 }
 0x149   : > { %v3789_v55 = vpop.f32.mrf.mxu2  ;;  %v3791_v15 = vpop.f32.mrf.mxu3 }
 0x14a   : > { %4072 = vst [vmem:[#allocation21_spill] sm:$0xff] %v3789_v55  ;;  %v3793_v52 = vpop.f32.mrf.mxu0  ;;  %v1071_v29 = vpop.f32.mrf.mxu1 }
 0x14b   : > { %v1072_v31 = vadd.f32 %v1071_v29, %v1006_v14 }
 0x14d   : > { %1443 = vmatmul.f32.gmra.mxu1 %v3429_v61  ;;  %1748 = vmatmul.f32.vlgmr.msra.gmra.mxu0 %v3454_v59 }
 0x14e   : > { %1621 = vmatmul.f32.gmra.mxu2 %v3025_v19  ;;  %1686 = vmatmul.f32.gmra.mxu3 %v3451_v9 }
 0x151   : > { %v1136_v23 = vpop.f32.mrf.mxu2  ;;  %v3799_v33 = vpop.f32.mrf.mxu3 }
 0x152   : > { %v3801_v54 = vadd.f32 %v1136_v23, %v1072_v31  ;;  %v3803_v5 = vpop.f32.mrf.mxu0  ;;  %v1074_v55 = vpop.f32.mrf.mxu1 }
 0x153   : > { %v1075_v19 = vadd.f32 %v1074_v55, %v1009_v62 }
 0x155   : > { %1446 = vmatmul.f32.gmra.mxu1 %v3454_v59  ;;  %1751 = vmatmul.f32.gmra.mxu0 %v3481_v22 }
 0x156   : > { %2397 = vmatmul.msk.f32.gmra.mxu2 %vm2917_vm13, %v3122_v7  ;;  %1689 = vmatmul.f32.gmra.mxu3 %v3478_v21 }
 0x159   : > { %v1139_v61 = vpop.f32.mrf.mxu2  ;;  %v3811_v9 = vpop.f32.mrf.mxu3 }
 0x15a   : > { %v3813_v14 = vadd.f32 %v1139_v61, %v1075_v19  ;;  %v3815_v29 = vpop.f32.mrf.mxu0  ;;  %v1077_v31 = vpop.f32.mrf.mxu1 }
 0x15b   : > { %v1078_v7 = vadd.f32 %v1077_v31, %v1012_v28 }
 0x15d   : > { %1449 = vmatmul.f32.gmra.mxu1 %v3481_v22  ;;  %1754 = vmatmul.f32.gmra.mxu0 %v3507_v32 }
 0x15e   : > { %1627 = vmatmul.f32.gmra.mxu2 %v3220_v56  ;;  %1692 = vmatmul.f32.gmra.mxu3 %v3504_v30 }
 0x161   : > { %v1142_v59 = vpop.f32.mrf.mxu2  ;;  %v3821_v21 = vpop.f32.mrf.mxu3 }
 0x162   : > { %v3823_v62 = vadd.f32 %v1142_v59, %v1078_v7  ;;  %v3825_v55 = vpop.f32.mrf.mxu0  ;;  %v1080_v23 = vpop.f32.mrf.mxu1 }
 0x163   : > { %v1081_v56 = vadd.f32 %v1080_v23, %v3642_v0 }
 0x165   : > { %1452 = vmatmul.f32.gmra.mxu1 %v3507_v32  ;;  %1757 = vmatmul.f32.gmra.mxu0 %v3534_v42 }
 0x166   : > { %2399 = vmatmul.msk.f32.gmra.mxu2 %vm2917_vm13, %v2921_v38  ;;  %1695 = vmatmul.f32.gmra.mxu3 %v3531_v53 }
 0x169   : > { %v1145_v22 = vpop.f32.mrf.mxu2  ;;  %v3834_v30 = vpop.f32.mrf.mxu3 }
 0x16a   : > { %v3836_v28 = vadd.f32 %v1145_v22, %v1081_v56  ;;  %v3838_v19 = vpop.f32.mrf.mxu0  ;;  %v1083_v61 = vpop.f32.mrf.mxu1 }
 0x16b   : > { %v1084_v38 = vadd.f32 %v1083_v61, %v3696_v40 }
 0x16d   : > { %1455 = vmatmul.f32.gmra.mxu1 %v3534_v42  ;;  %1760 = vmatmul.f32.gmra.mxu0 %v3560_v11 }
 0x16e   : > { %1633 = vmatmul.f32.gmra.mxu2 %v3019_v18  ;;  %1698 = vmatmul.f32.gmra.mxu3 %v3557_v4 }
 0x171   : > { %v1148_v32 = vpop.f32.mrf.mxu2  ;;  %v3845_v53 = vpop.f32.mrf.mxu3 }
 0x172   : > { %v3847_v0 = vadd.f32 %v1148_v32, %v1084_v38  ;;  %v3849_v31 = vpop.f32.mrf.mxu0  ;;  %v1086_v7 = vpop.f32.mrf.mxu1 }
 0x173   : > { %v1087_v18 = vadd.f32 %v1086_v7, %v3727_v10 }
 0x175   : > { %1458 = vmatmul.f32.gmra.mxu1 %v3560_v11  ;;  %1763 = vmatmul.f32.gmra.mxu0 %v3587_v27 }
 0x176   : > { %2401 = vmatmul.msk.f32.gmra.mxu2 %vm2917_vm13, %v3124_v8  ;;  %1701 = vmatmul.f32.gmra.mxu3 %v3584_v1 }
 0x179   : > { %v1151_v42 = vpop.f32.mrf.mxu2  ;;  %v3858_v4 = vpop.f32.mrf.mxu3 }
 0x17a   : > { %v3860_v40 = vadd.f32 %v1151_v42, %v1087_v18  ;;  %v3862_v59 = vpop.f32.mrf.mxu0  ;;  %v1089_v23 = vpop.f32.mrf.mxu1 }
 0x17b   : > { %v1090_v8 = vadd.f32 %v1089_v23, %v3758_v34 }
 0x17d   : > { %1461 = vmatmul.f32.gmra.mxu1 %v3587_v27  ;;  %1766 = vmatmul.f32.gmra.mxu0 %v3613_v41 }
 0x17e   : > { %1639 = vmatmul.f32.gmra.mxu2 %v3229_v57  ;;  %1704 = vmatmul.f32.gmra.mxu3 %v3610_v36 }
 0x181   : > { %v1154_v11 = vpop.f32.mrf.mxu2  ;;  %v3869_v1 = vpop.f32.mrf.mxu3 }
 0x182   : > { %v3871_v10 = vadd.f32 %v1154_v11, %v1090_v8  ;;  %v3873_v56 = vpop.f32.mrf.mxu0  ;;  %v1092_v22 = vpop.f32.mrf.mxu1 }
 0x183   : > { %v1093_v57 = vadd.f32 %v1092_v22, %v3677_v35 }
 0x185   : > { %1464 = vmatmul.f32.gmra.mxu1 %v3613_v41  ;;  %1769 = vmatmul.f32.gmra.mxu0 %v3640_v47 }
 0x186   : > { %2403 = vmatmul.msk.f32.gmra.mxu2 %vm2917_vm13, %v2923_v39  ;;  %1707 = vmatmul.f32.gmra.mxu3 %v3637_v51 }
 0x189   : > { %v1157_v27 = vpop.f32.mrf.mxu2  ;;  %v1335_v36 = vpop.f32.mrf.mxu3 }
 0x18a   : > { %v3882_v34 = vadd.f32 %v1157_v27, %v1093_v57  ;;  %v1400_v61 = vpop.f32.mrf.mxu0  ;;  %v1095_v38 = vpop.f32.mrf.mxu1 }
 0x18b   : > { %v3884_v32 = vadd.f32 %v1400_v61, %v1335_v36  ;;  %v1096_v39 = vadd.f32 %v1095_v38, %v3716_v17 }
 0x18d   : > { %1467 = vmatmul.f32.gmra.mxu1 %v3640_v47  ;;  %1772 = vmatmul.f32.gmra.mxu0 %v3683_v43  ;;  %v525_v47 = vld [vmem:[%s2816_s15 + $0x98] sm:$0xff] }
 0x18e   : > { %1645 = vmatmul.f32.gmra.mxu2 %v3031_v20  ;;  %1710 = vmatmul.f32.gmra.mxu3 %v3675_v24  ;;  %v524_v20 = vld [vmem:[%s2816_s15 + $0x90] sm:$0xff]  ;;  %v590_v11 = vmul.f32 %v3669_v46, %v525_v47 }
 0x18f   : > { %v589_v8 = vmul.f32 %v3669_v46, %v524_v20 }
 0x191   : > { %v1160_v41 = vpop.f32.mrf.mxu2  ;;  %v1338_v51 = vpop.f32.mrf.mxu3 }
 0x192   : > { %v3891_v35 = vadd.f32 %v1160_v41, %v1096_v39  ;;  %v1403_v7 = vpop.f32.mrf.mxu0  ;;  %v1098_v18 = vpop.f32.mrf.mxu1 }
 0x193   : > { %v3893_v42 = vadd.f32 %v1403_v7, %v1338_v51  ;;  %v1099_v24 = vadd.f32 %v1098_v18, %v3748_v26  ;;  %v614_v26 = vadd.f32 %v3691_v45, %v590_v11  ;;  %v4073_v7 = vld [vmem:[#allocation15_spill] sm:$0xff] }
 0x195   : > { %1470 = vmatmul.f32.gmra.mxu1 %v3683_v43  ;;  %1775 = vmatmul.f32.gmra.mxu0 %v3714_v6 }
 0x196   : > { %2405 = vmatmul.msk.f32.gmra.mxu2 %vm2917_vm13, %v3130_v13  ;;  %1713 = vmatmul.f32.gmra.mxu3 %v3711_v16  ;;  %v536_v13 = vadd.s32 9, %v2820_v49  ;;  %v613_v16 = vadd.f32 %v3691_v45, %v589_v8  ;;  %v634_v49 = vmax.f32 %v614_v26, 0.0  ;;  %v4075_v26 = vld [vmem:[#allocation16_spill] sm:$0xff] }
 0x198   : > { %vm546_vm1 = vcmp.ge.s32.totalorder %v536_v13, 1  ;;  %vm556_vm2 = vcmp.le.s32.totalorder %v536_v13, 16  ;;  %v633_v38 = vmax.f32 %v613_v16, 0.0 }
 0x199   : > { %v1163_v17 = vpop.f32.mrf.mxu2  ;;  %v1341_v23 = vpop.f32.mrf.mxu3  ;;  %vm566_vm3 = vmand %vm546_vm1, %vm556_vm2 }
 0x19a   : > { %v3906_v22 = vadd.f32 %v1163_v17, %v1099_v24  ;;  %v1406_v43 = vpop.f32.mrf.mxu0  ;;  %v1101_v57 = vpop.f32.mrf.mxu1  ;;  %v674_v45 = vsel %vm566_vm3, %v634_v49, 0.0 }
 0x19b   : > { %v3908_v27 = vadd.f32 %v1406_v43, %v1341_v23  ;;  %v1102_v46 = vadd.f32 %v1101_v57, %v3774_v60  ;;  %v1222_v60 = vrot.slane %v3744_v3, 2  ;;  %v724_v47 = vrot.slane %v674_v45, 7 }
 0x19d   : > { %1473 = vmatmul.f32.gmra.mxu1 %v3714_v6  ;;  %1778 = vmatmul.f32.gmra.mxu0 %v3736_v63 }
 0x19e   : > { %1651 = vmatmul.f32.gmra.mxu2 %v3235_v58  ;;  %1716 = vmatmul.f32.gmra.mxu3 %v3733_v50  ;;  %v673_v58 = vsel %vm566_vm3, %v633_v38, 0.0  ;;  %v1223_v50 = vrot.slane %v3740_v2, 2 }
 0x19f   : > { %v723_v20 = vrot.slane %v673_v58, 7 }
 0x1a0   : > { %v1224_v11 = vsel %vm865_vm12, %v1222_v60, %v1223_v50 }
 0x1a1   : > { %v1166_v36 = vpop.f32.mrf.mxu2  ;;  %v1344_v61 = vpop.f32.mrf.mxu3  ;;  %v765_v3 = vsel %vm695_vm11, 0.0, %v723_v20 }
 0x1a2   : > { %v3918_v39 = vadd.f32 %v1166_v36, %v1102_v46  ;;  %v1409_v6 = vpop.f32.mrf.mxu0  ;;  %v1104_v41 = vpop.f32.mrf.mxu1  ;;  %v1523_v13 = vrot.slane %v765_v3, 1  ;;  %v1530_v58 = vrot.slane %v765_v3, 2 }
 0x1a3   : > { %v3920_v51 = vadd.f32 %v1409_v6, %v1344_v61  ;;  %v1105_v18 = vadd.f32 %v1104_v41, %v4073_v7  ;;  %v4076_v7 = vld [vmem:[#allocation17_spill] sm:$0xff] }
 0x1a5   : > { %1476 = vmatmul.f32.gmra.mxu1 %v3736_v63  ;;  %1781 = vmatmul.f32.gmra.mxu0 %v3764_v25 }
 0x1a6   : > { %2407 = vmatmul.msk.f32.gmra.mxu2 %vm2917_vm13, %v3730_v44  ;;  %1719 = vmatmul.f32.gmra.mxu3 %v3761_v12  ;;  %v725_v44 = vsel %vm695_vm11, %v723_v20, %v724_v47  ;;  %v4074_v12 = vld [vmem:[#allocation18_spill] sm:$0xff] }
 0x1a7   : > { %v1225_v57 = vrot.slane %v4074_v12, 2  ;;  %v1524_v16 = vrot.slane %v725_v44, 1  ;;  %v1531_v45 = vrot.slane %v725_v44, 2 }
 0x1a9   : > { %v1169_v24 = vpop.f32.mrf.mxu2  ;;  %v1347_v63 = vpop.f32.mrf.mxu3  ;;  %v1226_v41 = vsel %vm865_vm12, %v1223_v50, %v1225_v57  ;;  %v1532_v12 = vsel %vm865_vm12, %v1530_v58, %v1531_v45  ;;  %v4078_v57 = vld [vmem:[#allocation14_spill] sm:$0xff] }
 0x1aa   : > { %v3931_v17 = vadd.f32 %v1169_v24, %v1105_v18  ;;  %v1412_v23 = vpop.f32.mrf.mxu0  ;;  %v1107_v8 = vpop.f32.mrf.mxu1 }
 0x1ab   : > { %v3934_v43 = vadd.f32 %v1412_v23, %v1347_v63  ;;  %v1108_v46 = vadd.f32 %v1107_v8, %v4075_v26 }
 0x1ad   : > { %1479 = vmatmul.f32.gmra.mxu1 %v3764_v25  ;;  %1784 = vmatmul.f32.gmra.mxu0 %v1224_v11 }
 0x1ae   : > { %1657 = vmatmul.f32.gmra.mxu2 %v3740_v2  ;;  %1722 = vmatmul.f32.gmra.mxu3 %v3781_v48  ;;  %v1525_v2 = vsel %vm808_vm10, %v1523_v13, %v1524_v16  ;;  %v775_v48 = vsel %vm695_vm11, %v724_v47, 0.0  ;;  %v4079_v13 = vld [vmem:[#allocation20_spill] sm:$0xff] }
 0x1af   : > { %v1526_v60 = vrot.slane %v775_v48, 1  ;;  %v1533_v37 = vrot.slane %v775_v48, 2  ;;  %v1069_v26 = vadd.f32 %v4079_v13, %v4078_v57 }
 0x1b1   : > { %v1172_v36 = vpop.f32.mrf.mxu2  ;;  %v1350_v61 = vpop.f32.mrf.mxu3 }
 0x1b2   : > { %v3943_v38 = vadd.f32 %v1172_v36, %v1108_v46  ;;  %v1415_v49 = vpop.f32.mrf.mxu0  ;;  %v1110_v6 = vpop.f32.mrf.mxu1  ;;  %v1377_v46 = vadd.f32 %v3793_v52, %v3791_v15 }
 0x1b3   : > { %v3946_v25 = vadd.f32 %v1415_v49, %v1350_v61  ;;  %v1111_v18 = vadd.f32 %v1110_v6, %v4076_v7  ;;  %v1380_v7 = vadd.f32 %v3803_v5, %v3799_v33 }
 0x1b5   : > { %1482 = vmatmul.f32.gmra.mxu1 %v1224_v11  ;;  %1787 = vmatmul.f32.gmra.mxu0 %v1226_v41  ;;  %v1527_v11 = vsel %vm808_vm10, %v1524_v16, %v1526_v60  ;;  %v1534_v16 = vsel %vm865_vm12, %v1531_v45, %v1533_v37 }
 0x1b6   : > { %2409 = vmatmul.msk.f32.gmra.mxu2 %vm2917_vm13, %v723_v20  ;;  %1725 = vmatmul.f32.gmra.mxu3 %v1525_v2  ;;  %v4077_v20 = vld [vmem:[#allocation19_spill] sm:$0xff] }
 0x1b9   : > { %v1175_v24 = vpop.f32.mrf.mxu2  ;;  %v1353_v63 = vpop.f32.mrf.mxu3 }
 0x1ba   : > { %v3953_v50 = vadd.f32 %v1175_v24, %v1111_v18  ;;  %v1418_v23 = vpop.f32.mrf.mxu0  ;;  %v1113_v8 = vpop.f32.mrf.mxu1 }
 0x1bb   : > { %v3956_v47 = vadd.f32 %v1418_v23, %v1353_v63  ;;  %v1114_v3 = vadd.f32 %v1113_v8, %v4077_v20 }
 0x1bd   : > { %1485 = vmatmul.f32.gmra.mxu1 %v1226_v41  ;;  %1790 = vmatmul.f32.gmra.mxu0 %v1532_v12  ;;  %v4080_v41 = vld [vmem:[#allocation21_spill] sm:$0xff] }
 0x1be   : > { %1663 = vmatmul.f32.gmra.mxu2 %v725_v44  ;;  %1728 = vmatmul.f32.gmra.mxu3 %v1527_v11  ;;  %v1134_v44 = vadd.f32 %v4080_v41, %v1069_v26  ;;  %v1383_v11 = vadd.f32 %v3815_v29, %v3811_v9 }
 0x1c1   : > { %v1178_v36 = vpop.f32.mrf.mxu2  ;;  %v1356_v61 = vpop.f32.mrf.mxu3 }
 0x1c2   : > { %v3964_v49 = vadd.f32 %v1178_v36, %v1114_v3  ;;  %v1421_v6 = vpop.f32.mrf.mxu0  ;;  %v1441_v2 = vpop.f32.mrf.mxu1 }
 0x1c3   : > { %v3968_v48 = vadd.f32 %v1421_v6, %v1356_v61  ;;  %v1442_v58 = vadd.f32 %v1441_v2, %v1377_v46  ;;  %v1386_v6 = vadd.f32 %v3825_v55, %v3821_v21 }
 0x1c5   : > { %v1489_v60 = vadd.f32 %v1442_v58, %v1134_v44  ;;  %1793 = vmatmul.f32.gmra.mxu0 %v1534_v16 }
 0x1c9   : > { %v1619_v15 = vpop.f32.mrf.mxu2  ;;  %v1684_v52 = vpop.f32.mrf.mxu3 }
 0x1ca   : > { %v1685_v18 = vadd.f32 %v1684_v52, %v1619_v15  ;;  %v1444_v24 = vpop.f32.mrf.mxu1  ;;  %v1749_v63 = vpop.f32.mrf.mxu0 }
 0x1cb   : > { %v1445_v23 = vadd.f32 %v1444_v24, %v1380_v7 }
 0x1cc   : > { %v1750_v8 = vadd.f32 %v1749_v63, %v1685_v18  ;;  %v1389_v18 = vadd.f32 %v3838_v19, %v3834_v30 }
 0x1cd   : > { %v1490_v45 = vadd.f32 %v1445_v23, %v3801_v54 }
 0x1ce   : > { %v1797_v12 = vadd.f32 %v1750_v8, %v1489_v60 }
 0x1d0   : > { %1845 = vst [vmem:[%s2650_s12] sm:$0xff] %v1797_v12  ;;  %v1882_v36 = vmul.f32 %v1797_v12, %v1797_v12 }
 0x1d1   : > { %v1622_v37 = vpop.f32.mrf.mxu2  ;;  %v1687_v20 = vpop.f32.mrf.mxu3 }
 0x1d2   : > { %v1688_v3 = vadd.f32 %v1687_v20, %v1622_v37  ;;  %v1447_v57 = vpop.f32.mrf.mxu1  ;;  %v1752_v33 = vpop.f32.mrf.mxu0 }
 0x1d3   : > { %v1448_v5 = vadd.f32 %v1447_v57, %v1383_v11 }
 0x1d4   : > { %v1753_v13 = vadd.f32 %v1752_v33, %v1688_v3  ;;  %v1392_v3 = vadd.f32 %v3849_v31, %v3845_v53 }
 0x1d5   : > { %v1491_v26 = vadd.f32 %v1448_v5, %v3813_v14 }
 0x1d6   : > { %v1798_v46 = vadd.f32 %v1753_v13, %v1490_v45 }
 0x1d8   : > { %1846 = vst [vmem:[%s2650_s12 + $0x8] sm:$0xff] %v1798_v46  ;;  %v1861_v61 = vadd.f32 %v1798_v46, %v1797_v12  ;;  %v1883_v54 = vmul.f32 %v1798_v46, %v1798_v46 }
 0x1d9   : > { %v1625_v2 = vpop.f32.mrf.mxu2  ;;  %v1690_v9 = vpop.f32.mrf.mxu3 }
 0x1da   : > { %v1898_v29 = vadd.f32 %v1883_v54, %v1882_v36  ;;  %v1691_v16 = vadd.f32 %v1690_v9, %v1625_v2  ;;  %v1450_v41 = vpop.f32.mrf.mxu1  ;;  %v1755_v44 = vpop.f32.mrf.mxu0 }
 0x1db   : > { %v1451_v58 = vadd.f32 %v1450_v41, %v1386_v6  ;;  %v1395_v6 = vadd.f32 %v3862_v59, %v3858_v4 }
 0x1dc   : > { %v1756_v60 = vadd.f32 %v1755_v44, %v1691_v16 }
 0x1dd   : > { %v1492_v7 = vadd.f32 %v1451_v58, %v3823_v62 }
 0x1de   : > { %v1799_v14 = vadd.f32 %v1756_v60, %v1491_v26 }
 0x1e0   : > { %1847 = vst [vmem:[%s2650_s12 + $0x10] sm:$0xff] %v1799_v14  ;;  %v1862_v15 = vadd.f32 %v1861_v61, %v1799_v14  ;;  %v1884_v52 = vmul.f32 %v1799_v14, %v1799_v14  ;;  %v1398_v14 = vadd.f32 %v3873_v56, %v3869_v1 }
 0x1e1   : > { %v1628_v24 = vpop.f32.mrf.mxu2  ;;  %v1693_v21 = vpop.f32.mrf.mxu3 }
 0x1e2   : > { %v1899_v55 = vadd.f32 %v1898_v29, %v1884_v52  ;;  %v1694_v63 = vadd.f32 %v1693_v21, %v1628_v24  ;;  %v1453_v23 = vpop.f32.mrf.mxu1  ;;  %v1758_v8 = vpop.f32.mrf.mxu0 }
 0x1e3   : > { %v1454_v45 = vadd.f32 %v1453_v23, %v1389_v18 }
 0x1e4   : > { %v1759_v12 = vadd.f32 %v1758_v8, %v1694_v63 }
 0x1e5   : > { %v1493_v11 = vadd.f32 %v1454_v45, %v3836_v28 }
 0x1e6   : > { %v1800_v62 = vadd.f32 %v1759_v12, %v1492_v7 }
 0x1e8   : > { %1848 = vst [vmem:[%s2650_s12 + $0x18] sm:$0xff] %v1800_v62  ;;  %v1863_v37 = vadd.f32 %v1862_v15, %v1800_v62  ;;  %v1885_v20 = vmul.f32 %v1800_v62, %v1800_v62 }
 0x1e9   : > { %v1631_v57 = vpop.f32.mrf.mxu2  ;;  %v1696_v30 = vpop.f32.mrf.mxu3 }
 0x1ea   : > { %v1900_v19 = vadd.f32 %v1899_v55, %v1885_v20  ;;  %v1697_v33 = vadd.f32 %v1696_v30, %v1631_v57  ;;  %v1456_v5 = vpop.f32.mrf.mxu1  ;;  %v1761_v13 = vpop.f32.mrf.mxu0 }
 0x1eb   : > { %v1457_v26 = vadd.f32 %v1456_v5, %v1392_v3 }
 0x1ec   : > { %v1762_v46 = vadd.f32 %v1761_v13, %v1697_v33 }
 0x1ed   : > { %v1494_v36 = vadd.f32 %v1457_v26, %v3847_v0 }
 0x1ee   : > { %v1801_v28 = vadd.f32 %v1762_v46, %v1493_v11 }
 0x1f0   : > { %1849 = vst [vmem:[%s2650_s12 + $0x20] sm:$0xff] %v1801_v28  ;;  %v1864_v61 = vadd.f32 %v1863_v37, %v1801_v28  ;;  %v1886_v54 = vmul.f32 %v1801_v28, %v1801_v28 }
 0x1f1   : > { %v1634_v2 = vpop.f32.mrf.mxu2  ;;  %v1699_v53 = vpop.f32.mrf.mxu3 }
 0x1f2   : > { %v1901_v31 = vadd.f32 %v1900_v19, %v1886_v54  ;;  %v1700_v9 = vadd.f32 %v1699_v53, %v1634_v2  ;;  %v1459_v29 = vpop.f32.mrf.mxu1  ;;  %v1764_v16 = vpop.f32.mrf.mxu0 }
 0x1f3   : > { %v1460_v41 = vadd.f32 %v1459_v29, %v1395_v6 }
 0x1f4   : > { %v1765_v44 = vadd.f32 %v1764_v16, %v1700_v9 }
 0x1f5   : > { %v1495_v58 = vadd.f32 %v1460_v41, %v3860_v40 }
 0x1f6   : > { %v1802_v0 = vadd.f32 %v1765_v44, %v1494_v36 }
 0x1f8   : > { %1850 = vst [vmem:[%s2650_s12 + $0x28] sm:$0xff] %v1802_v0  ;;  %v1865_v60 = vadd.f32 %v1864_v61, %v1802_v0  ;;  %v1887_v7 = vmul.f32 %v1802_v0, %v1802_v0 }
 0x1f9   : > { %v1637_v15 = vpop.f32.mrf.mxu2  ;;  %v1702_v4 = vpop.f32.mrf.mxu3 }
 0x1fa   : > { %v1902_v59 = vadd.f32 %v1901_v31, %v1887_v7  ;;  %v1703_v52 = vadd.f32 %v1702_v4, %v1637_v15  ;;  %v1462_v18 = vpop.f32.mrf.mxu1  ;;  %v1767_v24 = vpop.f32.mrf.mxu0 }
 0x1fb   : > { %v1463_v21 = vadd.f32 %v1462_v18, %v1398_v14 }
 0x1fc   : > { %v1768_v55 = vadd.f32 %v1767_v24, %v1703_v52 }
 0x1fd   : > { %v1496_v63 = vadd.f32 %v1463_v21, %v3871_v10 }
 0x1fe   : > { %v1803_v40 = vadd.f32 %v1768_v55, %v1495_v58 }
 0x200   : > { %1851 = vst [vmem:[%s2650_s12 + $0x30] sm:$0xff] %v1803_v40  ;;  %v1866_v23 = vadd.f32 %v1865_v60, %v1803_v40  ;;  %v1888_v8 = vmul.f32 %v1803_v40, %v1803_v40 }
 0x201   : > { %v1640_v45 = vpop.f32.mrf.mxu2  ;;  %v1705_v12 = vpop.f32.mrf.mxu3 }
 0x202   : > { %v1903_v11 = vadd.f32 %v1902_v59, %v1888_v8  ;;  %v1706_v62 = vadd.f32 %v1705_v12, %v1640_v45  ;;  %v1465_v1 = vpop.f32.mrf.mxu1  ;;  %v1770_v56 = vpop.f32.mrf.mxu0 }
 0x203   : > { %v1466_v37 = vadd.f32 %v1465_v1, %v3884_v32 }
 0x204   : > { %v1771_v20 = vadd.f32 %v1770_v56, %v1706_v62 }
 0x205   : > { %v1497_v3 = vadd.f32 %v1466_v37, %v3882_v34 }
 0x206   : > { %v1804_v57 = vadd.f32 %v1771_v20, %v1496_v63 }
 0x208   : > { %1852 = vst [vmem:[%s2650_s12 + $0x38] sm:$0xff] %v1804_v57  ;;  %v1867_v30 = vadd.f32 %v1866_v23, %v1804_v57  ;;  %v1889_v10 = vmul.f32 %v1804_v57, %v1804_v57 }
 0x209   : > { %v1643_v19 = vpop.f32.mrf.mxu2  ;;  %v1708_v33 = vpop.f32.mrf.mxu3 }
 0x20a   : > { %v1904_v5 = vadd.f32 %v1903_v11, %v1889_v10  ;;  %v1709_v13 = vadd.f32 %v1708_v33, %v1643_v19  ;;  %v1468_v26 = vpop.f32.mrf.mxu1  ;;  %v1773_v46 = vpop.f32.mrf.mxu0 }
 0x20b   : > { %v1469_v36 = vadd.f32 %v1468_v26, %v3893_v42 }
 0x20c   : > { %v1774_v28 = vadd.f32 %v1773_v46, %v1709_v13 }
 0x20d   : > { %v1498_v32 = vadd.f32 %v1469_v36, %v3891_v35 }
 0x20e   : > { %v1805_v61 = vadd.f32 %v1774_v28, %v1497_v3 }
 0x210   : > { %1853 = vst [vmem:[%s2650_s12 + $0x40] sm:$0xff] %v1805_v61  ;;  %v1868_v54 = vadd.f32 %v1867_v30, %v1805_v61  ;;  %v1890_v34 = vmul.f32 %v1805_v61, %v1805_v61 }
 0x211   : > { %v1646_v6 = vpop.f32.mrf.mxu2  ;;  %v1711_v2 = vpop.f32.mrf.mxu3 }
 0x212   : > { %v1905_v53 = vadd.f32 %v1904_v5, %v1890_v34  ;;  %v1712_v31 = vadd.f32 %v1711_v2, %v1646_v6  ;;  %v1471_v9 = vpop.f32.mrf.mxu1  ;;  %v1776_v29 = vpop.f32.mrf.mxu0 }
 0x213   : > { %v1472_v16 = vadd.f32 %v1471_v9, %v3908_v27 }
 0x214   : > { %v1777_v41 = vadd.f32 %v1776_v29, %v1712_v31 }
 0x215   : > { %v1499_v42 = vadd.f32 %v1472_v16, %v3906_v22 }
 0x216   : > { %v1806_v44 = vadd.f32 %v1777_v41, %v1498_v32 }
 0x218   : > { %1854 = vst [vmem:[%s2650_s12 + $0x48] sm:$0xff] %v1806_v44  ;;  %v1869_v58 = vadd.f32 %v1868_v54, %v1806_v44  ;;  %v1891_v35 = vmul.f32 %v1806_v44, %v1806_v44 }
 0x219   : > { %v1649_v0 = vpop.f32.mrf.mxu2  ;;  %v1714_v60 = vpop.f32.mrf.mxu3 }
 0x21a   : > { %v1906_v7 = vadd.f32 %v1905_v53, %v1891_v35  ;;  %v1715_v14 = vadd.f32 %v1714_v60, %v1649_v0  ;;  %v1474_v15 = vpop.f32.mrf.mxu1  ;;  %v1779_v4 = vpop.f32.mrf.mxu0 }
 0x21b   : > { %v1475_v59 = vadd.f32 %v1474_v15, %v3920_v51 }
 0x21c   : > { %v1780_v52 = vadd.f32 %v1779_v4, %v1715_v14 }
 0x21d   : > { %v1500_v27 = vadd.f32 %v1475_v59, %v3918_v39 }
 0x21e   : > { %v1807_v18 = vadd.f32 %v1780_v52, %v1499_v42 }
 0x220   : > { %1855 = vst [vmem:[%s2650_s12 + $0x50] sm:$0xff] %v1807_v18  ;;  %v1870_v24 = vadd.f32 %v1869_v58, %v1807_v18  ;;  %v1892_v22 = vmul.f32 %v1807_v18, %v1807_v18 }
 0x221   : > { %v1652_v21 = vpop.f32.mrf.mxu2  ;;  %v1717_v55 = vpop.f32.mrf.mxu3 }
 0x222   : > { %v1907_v63 = vadd.f32 %v1906_v7, %v1892_v22  ;;  %v1718_v40 = vadd.f32 %v1717_v55, %v1652_v21  ;;  %v1477_v23 = vpop.f32.mrf.mxu1  ;;  %v1782_v8 = vpop.f32.mrf.mxu0 }
 0x223   : > { %v1478_v45 = vadd.f32 %v1477_v23, %v3934_v43 }
 0x224   : > { %v1783_v12 = vadd.f32 %v1782_v8, %v1718_v40 }
 0x225   : > { %v1501_v51 = vadd.f32 %v1478_v45, %v3931_v17 }
 0x226   : > { %v1808_v11 = vadd.f32 %v1783_v12, %v1500_v27 }
 0x228   : > { %1856 = vst [vmem:[%s2650_s12 + $0x58] sm:$0xff] %v1808_v11  ;;  %v1871_v62 = vadd.f32 %v1870_v24, %v1808_v11  ;;  %v1893_v39 = vmul.f32 %v1808_v11, %v1808_v11 }
 0x229   : > { %v1655_v1 = vpop.f32.mrf.mxu2  ;;  %v1720_v56 = vpop.f32.mrf.mxu3 }
 0x22a   : > { %v1908_v37 = vadd.f32 %v1907_v63, %v1893_v39  ;;  %v1721_v20 = vadd.f32 %v1720_v56, %v1655_v1  ;;  %v1480_v3 = vpop.f32.mrf.mxu1  ;;  %v1785_v57 = vpop.f32.mrf.mxu0 }
 0x22b   : > { %v1481_v30 = vadd.f32 %v1480_v3, %v3946_v25 }
 0x22c   : > { %v1786_v10 = vadd.f32 %v1785_v57, %v1721_v20 }
 0x22d   : > { %v1502_v43 = vadd.f32 %v1481_v30, %v3943_v38 }
 0x22e   : > { %v1809_v19 = vadd.f32 %v1786_v10, %v1501_v51 }
 0x230   : > { %1857 = vst [vmem:[%s2650_s12 + $0x60] sm:$0xff] %v1809_v19  ;;  %v1872_v33 = vadd.f32 %v1871_v62, %v1809_v19  ;;  %v1894_v17 = vmul.f32 %v1809_v19, %v1809_v19 }
 0x231   : > { %v1658_v5 = vpop.f32.mrf.mxu2  ;;  %v1723_v13 = vpop.f32.mrf.mxu3 }
 0x232   : > { %v1909_v26 = vadd.f32 %v1908_v37, %v1894_v17  ;;  %v1724_v46 = vadd.f32 %v1723_v13, %v1658_v5  ;;  %v1483_v36 = vpop.f32.mrf.mxu1  ;;  %v1788_v28 = vpop.f32.mrf.mxu0 }
 0x233   : > { %v1484_v32 = vadd.f32 %v1483_v36, %v3956_v47 }
 0x234   : > { %v1789_v61 = vadd.f32 %v1788_v28, %v1724_v46 }
 0x235   : > { %v1503_v25 = vadd.f32 %v1484_v32, %v3953_v50 }
 0x236   : > { %v1810_v54 = vadd.f32 %v1789_v61, %v1502_v43 }
 0x238   : > { %1858 = vst [vmem:[%s2650_s12 + $0x68] sm:$0xff] %v1810_v54  ;;  %v1873_v34 = vadd.f32 %v1872_v33, %v1810_v54  ;;  %v1895_v38 = vmul.f32 %v1810_v54, %v1810_v54 }
 0x239   : > { %v1661_v6 = vpop.f32.mrf.mxu2  ;;  %v1726_v2 = vpop.f32.mrf.mxu3 }
 0x23a   : > { %v1910_v53 = vadd.f32 %v1909_v26, %v1895_v38  ;;  %v1727_v31 = vadd.f32 %v1726_v2, %v1661_v6  ;;  %v1486_v9 = vpop.f32.mrf.mxu1  ;;  %v1791_v29 = vpop.f32.mrf.mxu0 }
 0x23b   : > { %v1487_v16 = vadd.f32 %v1486_v9, %v3968_v48 }
 0x23c   : > { %v1792_v41 = vadd.f32 %v1791_v29, %v1727_v31 }
 0x23d   : > { %v1504_v47 = vadd.f32 %v1487_v16, %v3964_v49 }
 0x23e   : > { %v1811_v42 = vadd.f32 %v1792_v41, %v1503_v25 }
 0x240   : > { %1859 = vst [vmem:[%s2650_s12 + $0x70] sm:$0xff] %v1811_v42  ;;  %v1874_v44 = vadd.f32 %v1873_v34, %v1811_v42  ;;  %v1896_v50 = vmul.f32 %v1811_v42, %v1811_v42 }
 0x241   : > { %v1664_v58 = vpop.f32.mrf.mxu2  ;;  %v1729_v35 = vpop.f32.mrf.mxu3 }
 0x242   : > { %v1911_v0 = vadd.f32 %v1910_v53, %v1896_v50  ;;  %v1730_v60 = vadd.f32 %v1729_v35, %v1664_v58  ;;  %v1794_v7 = vpop.f32.mrf.mxu0 }
 0x244   : > { %v1795_v14 = vadd.f32 %v1794_v7, %v1730_v60 }
 0x246   : > { %v1812_v15 = vadd.f32 %v1795_v14, %v1504_v47 }
 0x248   : > { %1860 = vst [vmem:[%s2650_s12 + $0x78] sm:$0xff] %v1812_v15  ;;  %v1875_v4 = vadd.f32 %v1874_v44, %v1812_v15  ;;  %v1897_v59 = vmul.f32 %v1812_v15, %v1812_v15 }
 0x24a   : > { %v1876_v52 = vrot.slane %v1875_v4, 4  ;;  %v1912_v48 = vadd.f32 %v1911_v0, %v1897_v59 }
 0x24c   : > { %v1877_v27 = vadd.f32 %v1876_v52, %v1875_v4  ;;  %v1913_v18 = vrot.slane %v1912_v48, 4 }
 0x24e   : > { %v1878_v49 = vrot.slane %v1877_v27, 2  ;;  %v1914_v24 = vadd.f32 %v1913_v18, %v1912_v48 }
 0x250   : > { %v1879_v22 = vadd.f32 %v1878_v49, %v1877_v27  ;;  %v1915_v21 = vrot.slane %v1914_v24, 2 }
 0x252   : > { %v1880_v55 = vrot.slane %v1879_v22, 1  ;;  %v1916_v63 = vadd.f32 %v1915_v21, %v1914_v24 }
 0x254   : > { %v1917_v40 = vrot.slane %v1916_v63, 1  ;;  %v1881_v23 = vadd.f32 %v1880_v55, %v1879_v22 }
 0x256   : > { %v1918_v8 = vadd.f32 %v1917_v40, %v1916_v63 }
 0x258   : > { %v1919_v45 = vsel %vm695_vm11, %v1881_v23, %v1918_v8 }
 0x259   : > { %1920 = vst [vmem:[%s2655_s16] sm:$0x3] %v1919_v45 }
 0x25a PF: > { %s16_s22 = sadd.s32 1, %s2569_s22   ;;  %s4081_s18 = smov %s2561_s20 }
 0x25b   : > { %p13_p2 = scmp.ge.s32.totalorder %s16_s22, 6   ;;  %s4082_s19 = smov %s2565_s21 }
 0x25c   : > { %s4083_s20 = smov %s4086_s23  ;;  %s4084_s21 = smov %s4090_s24 }
 0x25d   :  { %15 = sbr.rel (!%p13_p2) target bundleno = 3 (0x3), region = 270 }
 0x262   :  { %1973 = vsyncmov [#allocation3] }
 0x265   :  { %s1974_s12 = vpop.sfrf %1973 }
 0x266   :  { %p2412_p3 = scmp.ne.s32.totalorder %s1974_s12, 0 }
 0x268   :  { %1978 = shalt.err (%p2412_p3)  }
 0x269   :  { %1980 = vsyncmov [#allocation3 + $0x1] }
 0x26c   :  { %s1981_s16 = vpop.sfrf %1980 }
 0x26d   :  { %p2413_p4 = scmp.ne.s32.totalorder %s1981_s16, 0 }
 0x26f   :  { %1985 = shalt.err (%p2413_p4)  }
 0x270   :  { %1987 = vsyncmov [#allocation3 + $0x2] }
 0x273   :  { %s1988_s15 = vpop.sfrf %1987 }
 0x274   :  { %p2414_p5 = scmp.ne.s32.totalorder %s1988_s15, 0 }
 0x276   :  { %1992 = shalt.err (%p2414_p5)  }
 0x277   :  { %1994 = vsyncmov [#allocation3 + $0x3] }
 0x27a   :  { %s1995_s11 = vpop.sfrf %1994 }
 0x27b   :  { %p2415_p6 = scmp.ne.s32.totalorder %s1995_s11, 0 }
 0x27d   :  { %1999 = shalt.err (%p2415_p6)  }
 0x27e   :  { %2001 = vsyncmov [#allocation3 + $0x4] }
 0x281   :  { %s2002_s23 = vpop.sfrf %2001 }
 0x282   :  { %p2416_p7 = scmp.ne.s32.totalorder %s2002_s23, 0 }
 0x284   :  { %2006 = shalt.err (%p2416_p7)  }
 0x285   :  { %2008 = vsyncmov [#allocation3 + $0x5] }
 0x288   :  { %s2009_s0 = vpop.sfrf %2008 }
 0x289   :  { %p2417_p8 = scmp.ne.s32.totalorder %s2009_s0, 0 }
 0x28b   :  { %2013 = shalt.err (%p2417_p8)  }

</bundles_post_ra>
